<compile_context>
chip_gen: v6e
topology: v6e:2x2x1
jax: 0.10.0
libtpu: 0.0.40
codegen_flags: <defaults>
</compile_context>

<pallas_src>
import functools

import jax
import jax.numpy as jnp
from jax.experimental import pallas as pl
from jax.experimental.pallas import tpu as pltpu


# ------------------------------ small helpers --------------------------------

def _round_up(x, m):
    return (x + m - 1) // m * m


def _pick_tile_h(H, W):
    """Rows of output per grid step; flattened tile must stay sublane aligned."""
    wp = W + 2
    for th in (8, 16, 4, 2):
        if H % th == 0 and (th * wp) % 16 == 0:
            return th
    return H


def _bn_fold(gamma, beta, mean, var, eps=1e-5):
    scale = gamma / jnp.sqrt(var + eps)
    return scale, beta - mean * scale


def _prep_weight(wt, scale, cp, dtype):
    """ConvTranspose2d weight (Cin,Cout,3,3) -> 9 tap matrices (9,cp,cp), BN scale folded."""
    cin, cout = wt.shape[0], wt.shape[1]
    w = jnp.transpose(wt[:, :, ::-1, ::-1], (2, 3, 0, 1))      # (3,3,Cin,Cout): flip + swap
    w = w * scale[None, None, None, :]                         # fold BN scale into weights
    w = jnp.pad(w, ((0, 0), (0, 0), (0, cp - cin), (0, cp - cout)))
    return w.reshape(9, cp, cp).astype(dtype)


# ------------------------------ Pallas kernel ---------------------------------

def _make_layer_kernel(*, has_residual, lp_pad, wp, th, win, cp):
    lot = th * wp  # output rows of the flat (padded-width) layout per tile

    def kernel(*refs):
        if has_residual:
            x_hbm, w_ref, b_ref, res_ref, out_ref, xbuf, sem = refs
        else:
            x_hbm, w_ref, b_ref, out_ref, xbuf, sem = refs
            res_ref = None

        n = pl.program_id(0)
        h = pl.program_id(1)
        row0 = pl.multiple_of(n * lp_pad + h * lot, 16)

        # Fetch this tile's halo'd input window (one DMA, ~1x activation traffic).
        dma = pltpu.make_async_copy(x_hbm.at[pl.ds(row0, win), :], xbuf, sem.at[0])
        dma.start()
        dma.wait()

        # 3x3 deconv == SAME conv with flipped kernel: nine shifted matmuls, f32 accum.
        acc = jnp.zeros((lot, cp), jnp.float32)
        for kh in range(3):
            for kw in range(3):
                xt = xbuf[pl.ds(kh * wp + kw, lot), :]
                acc = acc + jnp.dot(xt, w_ref[kh * 3 + kw],
                                    preferred_element_type=jnp.float32)

        y = acc + b_ref[...]                       # folded BatchNorm bias (scale in weights)
        if has_residual:
            y = y + res_ref[0].astype(jnp.float32)
        # ELU(alpha=1): x if x > 0 else exp(x) - 1
        out_ref[0] = jnp.where(y > 0.0, y,
                               jnp.exp(jnp.minimum(y, 0.0)) - 1.0).astype(out_ref.dtype)

    return kernel


def _fused_layer(x_nhwc, w9, bias_row, residual_flat, *, compute_dtype, out_dtype, th):
    """One (deconv3x3 -> BN -> [+residual] -> ELU) layer. x_nhwc: (N,H,W,CP), CP % 128 == 0."""
    N, H, W, CP = x_nhwc.shape
    WP = W + 2
    HT = H // th
    LOT = th * WP                                   # output rows (flat) per tile
    LOUT = H * WP                                   # output rows (flat) per image
    WIN = _round_up((th + 2) * WP + 2, 16)          # input rows needed per tile (with halo)
    LP_PAD = _round_up((HT - 1) * LOT + WIN, 16)    # rows per image in the flat padded input

    # Flat "padded width" layout: row a*WP + b holds padded-image pixel (a, b).
    xin = x_nhwc.astype(compute_dtype)
    xp = jnp.pad(xin, ((0, 0), (1, 1), (1, 1), (0, 0)))          # (N, H+2, WP, CP)
    xf = xp.reshape(N, (H + 2) * WP, CP)
    xf = jnp.pad(xf, ((0, 0), (0, LP_PAD - (H + 2) * WP), (0, 0)))
    xf = xf.reshape(N * LP_PAD, CP)

    has_res = residual_flat is not None
    in_specs = [
        pl.BlockSpec(memory_space=pl.ANY),                        # raw HBM, manual DMA
        pl.BlockSpec((9, CP, CP), lambda n, h: (0, 0, 0)),        # BN-scaled tap weights
        pl.BlockSpec((1, CP), lambda n, h: (0, 0)),               # BN bias
    ]
    args = [xf, w9, bias_row]
    res_arr = None
    if has_res:
        res_arr = residual_flat.astype(compute_dtype)
        in_specs.append(pl.BlockSpec((1, LOT, CP), lambda n, h: (n, h, 0)))
        args.append(res_arr)

    kernel = _make_layer_kernel(has_residual=has_res, lp_pad=LP_PAD, wp=WP,
                                th=th, win=WIN, cp=CP)

    out_itemsize = 2 if out_dtype == jnp.bfloat16 else 4
    bytes_accessed = int(
        xf.size * xf.dtype.itemsize + w9.size * w9.dtype.itemsize
        + bias_row.size * bias_row.dtype.itemsize
        + (res_arr.size * res_arr.dtype.itemsize if has_res else 0)
        + N * LOUT * CP * out_itemsize)
    cost = pl.CostEstimate(flops=int(2 * 9 * N * LOUT * CP * CP),
                           transcendentals=int(N * LOUT * CP),
                           bytes_accessed=bytes_accessed)

    return pl.pallas_call(
        kernel,
        out_shape=jax.ShapeDtypeStruct((N, LOUT, CP), out_dtype),
        grid_spec=pltpu.PrefetchScalarGridSpec(
            num_scalar_prefetch=0,
            grid=(N, HT),
            in_specs=in_specs,
            out_specs=pl.BlockSpec((1, LOT, CP), lambda n, h: (n, h, 0)),
            scratch_shapes=[pltpu.VMEM((WIN, CP), compute_dtype),
                            pltpu.SemaphoreType.DMA((1,))],
        ),
        compiler_params=pltpu.CompilerParams(
            dimension_semantics=("parallel", "parallel"),
            vmem_limit_bytes=32 * 1024 * 1024),
        cost_estimate=cost,
    )(*args)


def _unflatten_output(yf, N, H, W, C):
    WP = W + 2
    return yf.reshape(N, H, WP, -1)[:, :, :W, :C]


# ------------------------------- block forward --------------------------------

@functools.partial(jax.jit, static_argnames=("compute_dtype",))
def decoder_basic_block(x_nchw, wt1, bn1, wt2, bn2, *, compute_dtype=jnp.bfloat16):
    """Forward of DecoderBasicBlock (inference-mode BatchNorm).

    x_nchw: (N,C,H,W); wt*: ConvTranspose2d weights (C,C,3,3); bn*: (gamma,beta,mean,var).
    """
    N, C, H, W = x_nchw.shape
    assert wt1.shape == (C, C, 3, 3) and wt2.shape == (C, C, 3, 3), \
        "residual path requires in_planes == out_planes"
    CP = _round_up(C, 128)                    # lane-dense channels
    th = _pick_tile_h(H, W)
    WP = W + 2

    x = jnp.transpose(x_nchw, (0, 2, 3, 1)).astype(jnp.float32)          # NHWC
    x_cp = jnp.pad(x, ((0, 0), (0, 0), (0, 0), (0, CP - C)))             # channel pad

    s1, b1 = _bn_fold(*bn1)
    s2, b2 = _bn_fold(*bn2)
    w1 = _prep_weight(wt1, s1, CP, compute_dtype)
    w2 = _prep_weight(wt2, s2, CP, compute_dtype)
    b1p = jnp.pad(b1, (0, CP - C)).reshape(1, CP).astype(jnp.float32)
    b2p = jnp.pad(b2, (0, CP - C)).reshape(1, CP).astype(jnp.float32)

    # layer 1: ELU(BN1(convT1(x)))   -- no residual stream
    y1f = _fused_layer(x_cp, w1, b1p, None,
                       compute_dtype=compute_dtype, out_dtype=compute_dtype, th=th)
    y1 = _unflatten_output(y1f, N, H, W, CP)                             # keep padded C

    # layer 2: ELU(BN2(convT2(y1)) + x)
    res_flat = jnp.pad(x_cp, ((0, 0), (0, 0), (0, 2), (0, 0))).reshape(N, H * WP, CP)
    y2f = _fused_layer(y1, w2, b2p, res_flat,
                       compute_dtype=compute_dtype, out_dtype=jnp.float32, th=th)
    y2 = _unflatten_output(y2f, N, H, W, C)
    return jnp.transpose(y2, (0, 3, 1, 2))                               # back to NCHW


# ----------------------------- pure-JAX reference ------------------------------

def _reference(x_nchw, wt1, bn1, wt2, bn2):
    def convT(x, wt):
        wc = jnp.transpose(wt[:, :, ::-1, ::-1], (1, 0, 2, 3))           # OIHW conv-equivalent
        return jax.lax.conv_general_dilated(
            x, wc, window_strides=(1, 1), padding=((1, 1), (1, 1)),
            dimension_numbers=("NCHW", "OIHW", "NCHW"))

    def bn(x, p):
        g, b, m, v = p
        s = g / jnp.sqrt(v + 1e-5)
        return x * s[None, :, None, None] + (b - m * s)[None, :, None, None]

    y = jax.nn.elu(bn(convT(x_nchw, wt1), bn1))
    y = bn(convT(y, wt2), bn2) + x_nchw
    return jax.nn.elu(y)


# ----------------------------------- main --------------------------------------

if __name__ == "__main__":
    N, C, H, W = 2, 4, 16, 16        # in_planes == out_planes == 4 (required by residual)
    keys = jax.random.split(jax.random.PRNGKey(0), 12)

    x = jax.random.normal(keys[0], (N, C, H, W), jnp.float32)
    wt1 = 0.1 * jax.random.normal(keys[1], (C, C, 3, 3), jnp.float32)
    wt2 = 0.1 * jax.random.normal(keys[2], (C, C, 3, 3), jnp.float32)

    bn1 = (1.0 + 0.1 * jax.random.normal(keys[3], (C,), jnp.float32),    # gamma
           0.1 * jax.random.normal(keys[4], (C,), jnp.float32),          # beta
           0.1 * jax.random.normal(keys[5], (C,), jnp.float32),          # running_mean
           jax.random.uniform(keys[6], (C,), jnp.float32, 0.5, 1.5))     # running_var
    bn2 = (1.0 + 0.1 * jax.random.normal(keys[7], (C,), jnp.float32),
           0.1 * jax.random.normal(keys[8], (C,), jnp.float32),
           0.1 * jax.random.normal(keys[9], (C,), jnp.float32),
           jax.random.uniform(keys[10], (C,), jnp.float32, 0.5, 1.5))

    ref = jax.block_until_ready(_reference(x, wt1, bn1, wt2, bn2))

    # exactness check: f32 compute path must match the lax.conv reference tightly
    out_f32 = jax.block_until_ready(
        decoder_basic_block(x, wt1, bn1, wt2, bn2, compute_dtype=jnp.float32))
    assert out_f32.shape == (N, C, H, W)
    err32 = float(jnp.max(jnp.abs(out_f32 - ref)))
    assert jnp.allclose(out_f32, ref, rtol=1e-4, atol=1e-4), err32

    # fast path: bf16 activations/weights with f32 accumulation (looser tolerance)
    out_bf16 = jax.block_until_ready(
        decoder_basic_block(x, wt1, bn1, wt2, bn2, compute_dtype=jnp.bfloat16))
    errbf = float(jnp.max(jnp.abs(out_bf16 - ref)))
    assert jnp.allclose(out_bf16, ref, rtol=1e-1, atol=1e-1), errbf

    print("KERNEL_OK")
</pallas_src>

<mosaic_0001>
module attributes {stable_mosaic.version = 11 : i64} {
  func.func @kernel(%arg0: i32, %arg1: i32, %arg2: memref<672x128xf32, #tpu.memory_space<any>>, %arg3: memref<9x128x128xf32, #tpu.memory_space<vmem>>, %arg4: memref<1x128xf32, #tpu.memory_space<vmem>>, %arg5: memref<1x144x128xf32, #tpu.memory_space<vmem>>, %arg6: memref<192x128xf32, #tpu.memory_space<vmem>>, %arg7: memref<1x!tpu.dma_semaphore, #tpu.memory_space<semaphore_mem>>) attributes {dimension_semantics = [#tpu.dimension_semantics<parallel>, #tpu.dimension_semantics<parallel>], iteration_bounds = array<i64: 2, 2>, scalar_prefetch = 0 : i64, scratch_operands = 2 : i64, tpu.core_type = #tpu.core_type<tc>, window_params = [{}, {pipeline_mode = #tpu.pipeline_mode<synchronous>, transform_indices = @transform_1, window_bounds = array<i64: 9, 128, 128>}, {pipeline_mode = #tpu.pipeline_mode<synchronous>, transform_indices = @transform_2, window_bounds = array<i64: 1, 128>}, {transform_indices = @transform_3, window_bounds = array<i64: 1, 144, 128>}]} {
    %c336_i32 = arith.constant 336 : i32
    %0 = arith.muli %arg0, %c336_i32 : i32
    %c144_i32 = arith.constant 144 : i32
    %1 = arith.muli %arg1, %c144_i32 : i32
    %2 = arith.addi %0, %1 : i32
    %3 = tpu.assume_multiple %2, 16 : i32
    %c0_i32 = arith.constant 0 : i32
    %c0_i32_0 = arith.constant 0 : i32
    %4 = tpu.memref_slice %arg2[%3, %c0_i32_0] : memref<672x128xf32, #tpu.memory_space<any>> -> memref<192x128xf32, #tpu.memory_space<any>>
    %5 = tpu.memref_slice %arg7[%c0_i32] : memref<1x!tpu.dma_semaphore, #tpu.memory_space<semaphore_mem>> -> memref<1x!tpu.dma_semaphore, #tpu.memory_space<semaphore_mem>>
    %6 = tpu.memref_squeeze %5 : memref<1x!tpu.dma_semaphore, #tpu.memory_space<semaphore_mem>> -> memref<!tpu.dma_semaphore, #tpu.memory_space<semaphore_mem>>
    tpu.enqueue_dma source(%4 : memref<192x128xf32, #tpu.memory_space<any>>) target(%arg6 : memref<192x128xf32, #tpu.memory_space<vmem>>) target_semaphore(%6 : memref<!tpu.dma_semaphore, #tpu.memory_space<semaphore_mem>>)
    %c0_i32_1 = arith.constant 0 : i32
    %c0_i32_2 = arith.constant 0 : i32
    %7 = tpu.memref_slice %arg2[%3, %c0_i32_2] : memref<672x128xf32, #tpu.memory_space<any>> -> memref<192x128xf32, #tpu.memory_space<any>>
    %8 = tpu.memref_slice %arg7[%c0_i32_1] : memref<1x!tpu.dma_semaphore, #tpu.memory_space<semaphore_mem>> -> memref<1x!tpu.dma_semaphore, #tpu.memory_space<semaphore_mem>>
    %9 = tpu.memref_squeeze %8 : memref<1x!tpu.dma_semaphore, #tpu.memory_space<semaphore_mem>> -> memref<!tpu.dma_semaphore, #tpu.memory_space<semaphore_mem>>
    tpu.wait_dma2 semaphore(%9 : memref<!tpu.dma_semaphore, #tpu.memory_space<semaphore_mem>>) src(%7 : memref<192x128xf32, #tpu.memory_space<any>>) dst(%arg6 : memref<192x128xf32, #tpu.memory_space<vmem>>)
    %cst = arith.constant 0.000000e+00 : f32
    %10 = vector.broadcast %cst : f32 to vector<144x128xf32>
    %c0 = arith.constant 0 : index
    %c0_3 = arith.constant 0 : index
    %11 = vector.load %arg6[%c0, %c0_3] : memref<192x128xf32, #tpu.memory_space<vmem>>, vector<144x128xf32>
    %c0_4 = arith.constant 0 : index
    %c0_5 = arith.constant 0 : index
    %c0_6 = arith.constant 0 : index
    %12 = vector.load %arg3[%c0_4, %c0_5, %c0_6] : memref<9x128x128xf32, #tpu.memory_space<vmem>>, vector<1x128x128xf32>
    %13 = vector.shape_cast %12 : vector<1x128x128xf32> to vector<128x128xf32>
    %cst_7 = arith.constant dense<0.000000e+00> : vector<144x128xf32>
    %14 = tpu.matmul %11, %13, %cst_7 {dimension_numbers = #tpu.dot_dimension_numbers<[1], [0], [0], [1], [0, 0, 1, 1], [], []>} : vector<144x128xf32>, vector<128x128xf32>, vector<144x128xf32> -> vector<144x128xf32>
    %15 = arith.addf %10, %14 : vector<144x128xf32>
    %c1 = arith.constant 1 : index
    %c0_8 = arith.constant 0 : index
    %16 = vector.load %arg6[%c1, %c0_8] : memref<192x128xf32, #tpu.memory_space<vmem>>, vector<144x128xf32>
    %c1_9 = arith.constant 1 : index
    %c0_10 = arith.constant 0 : index
    %c0_11 = arith.constant 0 : index
    %17 = vector.load %arg3[%c1_9, %c0_10, %c0_11] : memref<9x128x128xf32, #tpu.memory_space<vmem>>, vector<1x128x128xf32>
    %18 = vector.shape_cast %17 : vector<1x128x128xf32> to vector<128x128xf32>
    %cst_12 = arith.constant dense<0.000000e+00> : vector<144x128xf32>
    %19 = tpu.matmul %16, %18, %cst_12 {dimension_numbers = #tpu.dot_dimension_numbers<[1], [0], [0], [1], [0, 0, 1, 1], [], []>} : vector<144x128xf32>, vector<128x128xf32>, vector<144x128xf32> -> vector<144x128xf32>
    %20 = arith.addf %15, %19 : vector<144x128xf32>
    %c2 = arith.constant 2 : index
    %c0_13 = arith.constant 0 : index
    %21 = vector.load %arg6[%c2, %c0_13] : memref<192x128xf32, #tpu.memory_space<vmem>>, vector<144x128xf32>
    %c2_14 = arith.constant 2 : index
    %c0_15 = arith.constant 0 : index
    %c0_16 = arith.constant 0 : index
    %22 = vector.load %arg3[%c2_14, %c0_15, %c0_16] : memref<9x128x128xf32, #tpu.memory_space<vmem>>, vector<1x128x128xf32>
    %23 = vector.shape_cast %22 : vector<1x128x128xf32> to vector<128x128xf32>
    %cst_17 = arith.constant dense<0.000000e+00> : vector<144x128xf32>
    %24 = tpu.matmul %21, %23, %cst_17 {dimension_numbers = #tpu.dot_dimension_numbers<[1], [0], [0], [1], [0, 0, 1, 1], [], []>} : vector<144x128xf32>, vector<128x128xf32>, vector<144x128xf32> -> vector<144x128xf32>
    %25 = arith.addf %20, %24 : vector<144x128xf32>
    %c18 = arith.constant 18 : index
    %c0_18 = arith.constant 0 : index
    %26 = vector.load %arg6[%c18, %c0_18] : memref<192x128xf32, #tpu.memory_space<vmem>>, vector<144x128xf32>
    %c3 = arith.constant 3 : index
    %c0_19 = arith.constant 0 : index
    %c0_20 = arith.constant 0 : index
    %27 = vector.load %arg3[%c3, %c0_19, %c0_20] : memref<9x128x128xf32, #tpu.memory_space<vmem>>, vector<1x128x128xf32>
    %28 = vector.shape_cast %27 : vector<1x128x128xf32> to vector<128x128xf32>
    %cst_21 = arith.constant dense<0.000000e+00> : vector<144x128xf32>
    %29 = tpu.matmul %26, %28, %cst_21 {dimension_numbers = #tpu.dot_dimension_numbers<[1], [0], [0], [1], [0, 0, 1, 1], [], []>} : vector<144x128xf32>, vector<128x128xf32>, vector<144x128xf32> -> vector<144x128xf32>
    %30 = arith.addf %25, %29 : vector<144x128xf32>
    %c19 = arith.constant 19 : index
    %c0_22 = arith.constant 0 : index
    %31 = vector.load %arg6[%c19, %c0_22] : memref<192x128xf32, #tpu.memory_space<vmem>>, vector<144x128xf32>
    %c4 = arith.constant 4 : index
    %c0_23 = arith.constant 0 : index
    %c0_24 = arith.constant 0 : index
    %32 = vector.load %arg3[%c4, %c0_23, %c0_24] : memref<9x128x128xf32, #tpu.memory_space<vmem>>, vector<1x128x128xf32>
    %33 = vector.shape_cast %32 : vector<1x128x128xf32> to vector<128x128xf32>
    %cst_25 = arith.constant dense<0.000000e+00> : vector<144x128xf32>
    %34 = tpu.matmul %31, %33, %cst_25 {dimension_numbers = #tpu.dot_dimension_numbers<[1], [0], [0], [1], [0, 0, 1, 1], [], []>} : vector<144x128xf32>, vector<128x128xf32>, vector<144x128xf32> -> vector<144x128xf32>
    %35 = arith.addf %30, %34 : vector<144x128xf32>
    %c20 = arith.constant 20 : index
    %c0_26 = arith.constant 0 : index
    %36 = vector.load %arg6[%c20, %c0_26] : memref<192x128xf32, #tpu.memory_space<vmem>>, vector<144x128xf32>
    %c5 = arith.constant 5 : index
    %c0_27 = arith.constant 0 : index
    %c0_28 = arith.constant 0 : index
    %37 = vector.load %arg3[%c5, %c0_27, %c0_28] : memref<9x128x128xf32, #tpu.memory_space<vmem>>, vector<1x128x128xf32>
    %38 = vector.shape_cast %37 : vector<1x128x128xf32> to vector<128x128xf32>
    %cst_29 = arith.constant dense<0.000000e+00> : vector<144x128xf32>
    %39 = tpu.matmul %36, %38, %cst_29 {dimension_numbers = #tpu.dot_dimension_numbers<[1], [0], [0], [1], [0, 0, 1, 1], [], []>} : vector<144x128xf32>, vector<128x128xf32>, vector<144x128xf32> -> vector<144x128xf32>
    %40 = arith.addf %35, %39 : vector<144x128xf32>
    %c36 = arith.constant 36 : index
    %c0_30 = arith.constant 0 : index
    %41 = vector.load %arg6[%c36, %c0_30] : memref<192x128xf32, #tpu.memory_space<vmem>>, vector<144x128xf32>
    %c6 = arith.constant 6 : index
    %c0_31 = arith.constant 0 : index
    %c0_32 = arith.constant 0 : index
    %42 = vector.load %arg3[%c6, %c0_31, %c0_32] : memref<9x128x128xf32, #tpu.memory_space<vmem>>, vector<1x128x128xf32>
    %43 = vector.shape_cast %42 : vector<1x128x128xf32> to vector<128x128xf32>
    %cst_33 = arith.constant dense<0.000000e+00> : vector<144x128xf32>
    %44 = tpu.matmul %41, %43, %cst_33 {dimension_numbers = #tpu.dot_dimension_numbers<[1], [0], [0], [1], [0, 0, 1, 1], [], []>} : vector<144x128xf32>, vector<128x128xf32>, vector<144x128xf32> -> vector<144x128xf32>
    %45 = arith.addf %40, %44 : vector<144x128xf32>
    %c37 = arith.constant 37 : index
    %c0_34 = arith.constant 0 : index
    %46 = vector.load %arg6[%c37, %c0_34] : memref<192x128xf32, #tpu.memory_space<vmem>>, vector<144x128xf32>
    %c7 = arith.constant 7 : index
    %c0_35 = arith.constant 0 : index
    %c0_36 = arith.constant 0 : index
    %47 = vector.load %arg3[%c7, %c0_35, %c0_36] : memref<9x128x128xf32, #tpu.memory_space<vmem>>, vector<1x128x128xf32>
    %48 = vector.shape_cast %47 : vector<1x128x128xf32> to vector<128x128xf32>
    %cst_37 = arith.constant dense<0.000000e+00> : vector<144x128xf32>
    %49 = tpu.matmul %46, %48, %cst_37 {dimension_numbers = #tpu.dot_dimension_numbers<[1], [0], [0], [1], [0, 0, 1, 1], [], []>} : vector<144x128xf32>, vector<128x128xf32>, vector<144x128xf32> -> vector<144x128xf32>
    %50 = arith.addf %45, %49 : vector<144x128xf32>
    %c38 = arith.constant 38 : index
    %c0_38 = arith.constant 0 : index
    %51 = vector.load %arg6[%c38, %c0_38] : memref<192x128xf32, #tpu.memory_space<vmem>>, vector<144x128xf32>
    %c8 = arith.constant 8 : index
    %c0_39 = arith.constant 0 : index
    %c0_40 = arith.constant 0 : index
    %52 = vector.load %arg3[%c8, %c0_39, %c0_40] : memref<9x128x128xf32, #tpu.memory_space<vmem>>, vector<1x128x128xf32>
    %53 = vector.shape_cast %52 : vector<1x128x128xf32> to vector<128x128xf32>
    %cst_41 = arith.constant dense<0.000000e+00> : vector<144x128xf32>
    %54 = tpu.matmul %51, %53, %cst_41 {dimension_numbers = #tpu.dot_dimension_numbers<[1], [0], [0], [1], [0, 0, 1, 1], [], []>} : vector<144x128xf32>, vector<128x128xf32>, vector<144x128xf32> -> vector<144x128xf32>
    %55 = arith.addf %50, %54 : vector<144x128xf32>
    %c0_42 = arith.constant 0 : index
    %c0_43 = arith.constant 0 : index
    %56 = vector.load %arg4[%c0_42, %c0_43] : memref<1x128xf32, #tpu.memory_space<vmem>>, vector<1x128xf32>
    %57 = vector.broadcast %56 : vector<1x128xf32> to vector<144x128xf32>
    %58 = arith.addf %55, %57 : vector<144x128xf32>
    %cst_44 = arith.constant 0.000000e+00 : f32
    %59 = vector.broadcast %cst_44 : f32 to vector<144x128xf32>
    %60 = arith.cmpf ogt, %58, %59 : vector<144x128xf32>
    %cst_45 = arith.constant 0.000000e+00 : f32
    %61 = vector.broadcast %cst_45 : f32 to vector<144x128xf32>
    %62 = arith.minimumf %58, %61 : vector<144x128xf32>
    %63 = math.exp %62 : vector<144x128xf32>
    %cst_46 = arith.constant 1.000000e+00 : f32
    %64 = vector.broadcast %cst_46 : f32 to vector<144x128xf32>
    %65 = arith.subf %63, %64 : vector<144x128xf32>
    %66 = arith.select %60, %58, %65 : vector<144x128xi1>, vector<144x128xf32>
    %c0_47 = arith.constant 0 : index
    %c0_48 = arith.constant 0 : index
    %c0_49 = arith.constant 0 : index
    %67 = vector.load %arg5[%c0_47, %c0_48, %c0_49] : memref<1x144x128xf32, #tpu.memory_space<vmem>>, vector<1x144x128xf32>
    %68 = vector.shape_cast %67 : vector<1x144x128xf32> to vector<144x128xf32>
    %69 = vector.shape_cast %66 : vector<144x128xf32> to vector<1x144x128xf32>
    tpu.vector_store %arg5[%c0_47, %c0_48, %c0_49], %69 {strides = array<i32>} : memref<1x144x128xf32, #tpu.memory_space<vmem>>, vector<1x144x128xf32>,
    return
  }
  func.func @transform_1(%arg0: i32, %arg1: i32) -> (i32, i32, i32) {
    %c0_i32 = arith.constant 0 : i32
    %c0_i32_0 = arith.constant 0 : i32
    %c0_i32_1 = arith.constant 0 : i32
    %c0_i32_2 = arith.constant 0 : i32
    return %c0_i32, %c0_i32_0, %c0_i32_1 : i32, i32, i32
  }
  func.func @transform_2(%arg0: i32, %arg1: i32) -> (i32, i32) {
    %c0_i32 = arith.constant 0 : i32
    %c0_i32_0 = arith.constant 0 : i32
    %c0_i32_1 = arith.constant 0 : i32
    return %c0_i32, %c0_i32_0 : i32, i32
  }
  func.func @transform_3(%arg0: i32, %arg1: i32) -> (i32, i32, i32) {
    %c0_i32 = arith.constant 0 : i32
    %c0_i32_0 = arith.constant 0 : i32
    return %arg0, %arg1, %c0_i32 : i32, i32, i32
  }
}

module attributes {stable_mosaic.version = 11 : i64} {
  func.func @kernel(%arg0: i32, %arg1: i32, %arg2: memref<672x128xf32, #tpu.memory_space<any>>, %arg3: memref<9x128x128xf32, #tpu.memory_space<vmem>>, %arg4: memref<1x128xf32, #tpu.memory_space<vmem>>, %arg5: memref<1x144x128xf32, #tpu.memory_space<vmem>>, %arg6: memref<1x144x128xf32, #tpu.memory_space<vmem>>, %arg7: memref<192x128xf32, #tpu.memory_space<vmem>>, %arg8: memref<1x!tpu.dma_semaphore, #tpu.memory_space<semaphore_mem>>) attributes {dimension_semantics = [#tpu.dimension_semantics<parallel>, #tpu.dimension_semantics<parallel>], iteration_bounds = array<i64: 2, 2>, scalar_prefetch = 0 : i64, scratch_operands = 2 : i64, tpu.core_type = #tpu.core_type<tc>, window_params = [{}, {pipeline_mode = #tpu.pipeline_mode<synchronous>, transform_indices = @transform_1, window_bounds = array<i64: 9, 128, 128>}, {pipeline_mode = #tpu.pipeline_mode<synchronous>, transform_indices = @transform_2, window_bounds = array<i64: 1, 128>}, {transform_indices = @transform_3, window_bounds = array<i64: 1, 144, 128>}, {transform_indices = @transform_4, window_bounds = array<i64: 1, 144, 128>}]} {
    %c336_i32 = arith.constant 336 : i32
    %0 = arith.muli %arg0, %c336_i32 : i32
    %c144_i32 = arith.constant 144 : i32
    %1 = arith.muli %arg1, %c144_i32 : i32
    %2 = arith.addi %0, %1 : i32
    %3 = tpu.assume_multiple %2, 16 : i32
    %c0_i32 = arith.constant 0 : i32
    %c0_i32_0 = arith.constant 0 : i32
    %4 = tpu.memref_slice %arg2[%3, %c0_i32_0] : memref<672x128xf32, #tpu.memory_space<any>> -> memref<192x128xf32, #tpu.memory_space<any>>
    %5 = tpu.memref_slice %arg8[%c0_i32] : memref<1x!tpu.dma_semaphore, #tpu.memory_space<semaphore_mem>> -> memref<1x!tpu.dma_semaphore, #tpu.memory_space<semaphore_mem>>
    %6 = tpu.memref_squeeze %5 : memref<1x!tpu.dma_semaphore, #tpu.memory_space<semaphore_mem>> -> memref<!tpu.dma_semaphore, #tpu.memory_space<semaphore_mem>>
    tpu.enqueue_dma source(%4 : memref<192x128xf32, #tpu.memory_space<any>>) target(%arg7 : memref<192x128xf32, #tpu.memory_space<vmem>>) target_semaphore(%6 : memref<!tpu.dma_semaphore, #tpu.memory_space<semaphore_mem>>)
    %c0_i32_1 = arith.constant 0 : i32
    %c0_i32_2 = arith.constant 0 : i32
    %7 = tpu.memref_slice %arg2[%3, %c0_i32_2] : memref<672x128xf32, #tpu.memory_space<any>> -> memref<192x128xf32, #tpu.memory_space<any>>
    %8 = tpu.memref_slice %arg8[%c0_i32_1] : memref<1x!tpu.dma_semaphore, #tpu.memory_space<semaphore_mem>> -> memref<1x!tpu.dma_semaphore, #tpu.memory_space<semaphore_mem>>
    %9 = tpu.memref_squeeze %8 : memref<1x!tpu.dma_semaphore, #tpu.memory_space<semaphore_mem>> -> memref<!tpu.dma_semaphore, #tpu.memory_space<semaphore_mem>>
    tpu.wait_dma2 semaphore(%9 : memref<!tpu.dma_semaphore, #tpu.memory_space<semaphore_mem>>) src(%7 : memref<192x128xf32, #tpu.memory_space<any>>) dst(%arg7 : memref<192x128xf32, #tpu.memory_space<vmem>>)
    %cst = arith.constant 0.000000e+00 : f32
    %10 = vector.broadcast %cst : f32 to vector<144x128xf32>
    %c0 = arith.constant 0 : index
    %c0_3 = arith.constant 0 : index
    %11 = vector.load %arg7[%c0, %c0_3] : memref<192x128xf32, #tpu.memory_space<vmem>>, vector<144x128xf32>
    %c0_4 = arith.constant 0 : index
    %c0_5 = arith.constant 0 : index
    %c0_6 = arith.constant 0 : index
    %12 = vector.load %arg3[%c0_4, %c0_5, %c0_6] : memref<9x128x128xf32, #tpu.memory_space<vmem>>, vector<1x128x128xf32>
    %13 = vector.shape_cast %12 : vector<1x128x128xf32> to vector<128x128xf32>
    %cst_7 = arith.constant dense<0.000000e+00> : vector<144x128xf32>
    %14 = tpu.matmul %11, %13, %cst_7 {dimension_numbers = #tpu.dot_dimension_numbers<[1], [0], [0], [1], [0, 0, 1, 1], [], []>} : vector<144x128xf32>, vector<128x128xf32>, vector<144x128xf32> -> vector<144x128xf32>
    %15 = arith.addf %10, %14 : vector<144x128xf32>
    %c1 = arith.constant 1 : index
    %c0_8 = arith.constant 0 : index
    %16 = vector.load %arg7[%c1, %c0_8] : memref<192x128xf32, #tpu.memory_space<vmem>>, vector<144x128xf32>
    %c1_9 = arith.constant 1 : index
    %c0_10 = arith.constant 0 : index
    %c0_11 = arith.constant 0 : index
    %17 = vector.load %arg3[%c1_9, %c0_10, %c0_11] : memref<9x128x128xf32, #tpu.memory_space<vmem>>, vector<1x128x128xf32>
    %18 = vector.shape_cast %17 : vector<1x128x128xf32> to vector<128x128xf32>
    %cst_12 = arith.constant dense<0.000000e+00> : vector<144x128xf32>
    %19 = tpu.matmul %16, %18, %cst_12 {dimension_numbers = #tpu.dot_dimension_numbers<[1], [0], [0], [1], [0, 0, 1, 1], [], []>} : vector<144x128xf32>, vector<128x128xf32>, vector<144x128xf32> -> vector<144x128xf32>
    %20 = arith.addf %15, %19 : vector<144x128xf32>
    %c2 = arith.constant 2 : index
    %c0_13 = arith.constant 0 : index
    %21 = vector.load %arg7[%c2, %c0_13] : memref<192x128xf32, #tpu.memory_space<vmem>>, vector<144x128xf32>
    %c2_14 = arith.constant 2 : index
    %c0_15 = arith.constant 0 : index
    %c0_16 = arith.constant 0 : index
    %22 = vector.load %arg3[%c2_14, %c0_15, %c0_16] : memref<9x128x128xf32, #tpu.memory_space<vmem>>, vector<1x128x128xf32>
    %23 = vector.shape_cast %22 : vector<1x128x128xf32> to vector<128x128xf32>
    %cst_17 = arith.constant dense<0.000000e+00> : vector<144x128xf32>
    %24 = tpu.matmul %21, %23, %cst_17 {dimension_numbers = #tpu.dot_dimension_numbers<[1], [0], [0], [1], [0, 0, 1, 1], [], []>} : vector<144x128xf32>, vector<128x128xf32>, vector<144x128xf32> -> vector<144x128xf32>
    %25 = arith.addf %20, %24 : vector<144x128xf32>
    %c18 = arith.constant 18 : index
    %c0_18 = arith.constant 0 : index
    %26 = vector.load %arg7[%c18, %c0_18] : memref<192x128xf32, #tpu.memory_space<vmem>>, vector<144x128xf32>
    %c3 = arith.constant 3 : index
    %c0_19 = arith.constant 0 : index
    %c0_20 = arith.constant 0 : index
    %27 = vector.load %arg3[%c3, %c0_19, %c0_20] : memref<9x128x128xf32, #tpu.memory_space<vmem>>, vector<1x128x128xf32>
    %28 = vector.shape_cast %27 : vector<1x128x128xf32> to vector<128x128xf32>
    %cst_21 = arith.constant dense<0.000000e+00> : vector<144x128xf32>
    %29 = tpu.matmul %26, %28, %cst_21 {dimension_numbers = #tpu.dot_dimension_numbers<[1], [0], [0], [1], [0, 0, 1, 1], [], []>} : vector<144x128xf32>, vector<128x128xf32>, vector<144x128xf32> -> vector<144x128xf32>
    %30 = arith.addf %25, %29 : vector<144x128xf32>
    %c19 = arith.constant 19 : index
    %c0_22 = arith.constant 0 : index
    %31 = vector.load %arg7[%c19, %c0_22] : memref<192x128xf32, #tpu.memory_space<vmem>>, vector<144x128xf32>
    %c4 = arith.constant 4 : index
    %c0_23 = arith.constant 0 : index
    %c0_24 = arith.constant 0 : index
    %32 = vector.load %arg3[%c4, %c0_23, %c0_24] : memref<9x128x128xf32, #tpu.memory_space<vmem>>, vector<1x128x128xf32>
    %33 = vector.shape_cast %32 : vector<1x128x128xf32> to vector<128x128xf32>
    %cst_25 = arith.constant dense<0.000000e+00> : vector<144x128xf32>
    %34 = tpu.matmul %31, %33, %cst_25 {dimension_numbers = #tpu.dot_dimension_numbers<[1], [0], [0], [1], [0, 0, 1, 1], [], []>} : vector<144x128xf32>, vector<128x128xf32>, vector<144x128xf32> -> vector<144x128xf32>
    %35 = arith.addf %30, %34 : vector<144x128xf32>
    %c20 = arith.constant 20 : index
    %c0_26 = arith.constant 0 : index
    %36 = vector.load %arg7[%c20, %c0_26] : memref<192x128xf32, #tpu.memory_space<vmem>>, vector<144x128xf32>
    %c5 = arith.constant 5 : index
    %c0_27 = arith.constant 0 : index
    %c0_28 = arith.constant 0 : index
    %37 = vector.load %arg3[%c5, %c0_27, %c0_28] : memref<9x128x128xf32, #tpu.memory_space<vmem>>, vector<1x128x128xf32>
    %38 = vector.shape_cast %37 : vector<1x128x128xf32> to vector<128x128xf32>
    %cst_29 = arith.constant dense<0.000000e+00> : vector<144x128xf32>
    %39 = tpu.matmul %36, %38, %cst_29 {dimension_numbers = #tpu.dot_dimension_numbers<[1], [0], [0], [1], [0, 0, 1, 1], [], []>} : vector<144x128xf32>, vector<128x128xf32>, vector<144x128xf32> -> vector<144x128xf32>
    %40 = arith.addf %35, %39 : vector<144x128xf32>
    %c36 = arith.constant 36 : index
    %c0_30 = arith.constant 0 : index
    %41 = vector.load %arg7[%c36, %c0_30] : memref<192x128xf32, #tpu.memory_space<vmem>>, vector<144x128xf32>
    %c6 = arith.constant 6 : index
    %c0_31 = arith.constant 0 : index
    %c0_32 = arith.constant 0 : index
    %42 = vector.load %arg3[%c6, %c0_31, %c0_32] : memref<9x128x128xf32, #tpu.memory_space<vmem>>, vector<1x128x128xf32>
    %43 = vector.shape_cast %42 : vector<1x128x128xf32> to vector<128x128xf32>
    %cst_33 = arith.constant dense<0.000000e+00> : vector<144x128xf32>
    %44 = tpu.matmul %41, %43, %cst_33 {dimension_numbers = #tpu.dot_dimension_numbers<[1], [0], [0], [1], [0, 0, 1, 1], [], []>} : vector<144x128xf32>, vector<128x128xf32>, vector<144x128xf32> -> vector<144x128xf32>
    %45 = arith.addf %40, %44 : vector<144x128xf32>
    %c37 = arith.constant 37 : index
    %c0_34 = arith.constant 0 : index
    %46 = vector.load %arg7[%c37, %c0_34] : memref<192x128xf32, #tpu.memory_space<vmem>>, vector<144x128xf32>
    %c7 = arith.constant 7 : index
    %c0_35 = arith.constant 0 : index
    %c0_36 = arith.constant 0 : index
    %47 = vector.load %arg3[%c7, %c0_35, %c0_36] : memref<9x128x128xf32, #tpu.memory_space<vmem>>, vector<1x128x128xf32>
    %48 = vector.shape_cast %47 : vector<1x128x128xf32> to vector<128x128xf32>
    %cst_37 = arith.constant dense<0.000000e+00> : vector<144x128xf32>
    %49 = tpu.matmul %46, %48, %cst_37 {dimension_numbers = #tpu.dot_dimension_numbers<[1], [0], [0], [1], [0, 0, 1, 1], [], []>} : vector<144x128xf32>, vector<128x128xf32>, vector<144x128xf32> -> vector<144x128xf32>
    %50 = arith.addf %45, %49 : vector<144x128xf32>
    %c38 = arith.constant 38 : index
    %c0_38 = arith.constant 0 : index
    %51 = vector.load %arg7[%c38, %c0_38] : memref<192x128xf32, #tpu.memory_space<vmem>>, vector<144x128xf32>
    %c8 = arith.constant 8 : index
    %c0_39 = arith.constant 0 : index
    %c0_40 = arith.constant 0 : index
    %52 = vector.load %arg3[%c8, %c0_39, %c0_40] : memref<9x128x128xf32, #tpu.memory_space<vmem>>, vector<1x128x128xf32>
    %53 = vector.shape_cast %52 : vector<1x128x128xf32> to vector<128x128xf32>
    %cst_41 = arith.constant dense<0.000000e+00> : vector<144x128xf32>
    %54 = tpu.matmul %51, %53, %cst_41 {dimension_numbers = #tpu.dot_dimension_numbers<[1], [0], [0], [1], [0, 0, 1, 1], [], []>} : vector<144x128xf32>, vector<128x128xf32>, vector<144x128xf32> -> vector<144x128xf32>
    %55 = arith.addf %50, %54 : vector<144x128xf32>
    %c0_42 = arith.constant 0 : index
    %c0_43 = arith.constant 0 : index
    %56 = vector.load %arg4[%c0_42, %c0_43] : memref<1x128xf32, #tpu.memory_space<vmem>>, vector<1x128xf32>
    %57 = vector.broadcast %56 : vector<1x128xf32> to vector<144x128xf32>
    %58 = arith.addf %55, %57 : vector<144x128xf32>
    %c0_44 = arith.constant 0 : index
    %c0_45 = arith.constant 0 : index
    %c0_46 = arith.constant 0 : index
    %59 = vector.load %arg5[%c0_44, %c0_45, %c0_46] : memref<1x144x128xf32, #tpu.memory_space<vmem>>, vector<1x144x128xf32>
    %60 = vector.shape_cast %59 : vector<1x144x128xf32> to vector<144x128xf32>
    %61 = arith.addf %58, %60 : vector<144x128xf32>
    %cst_47 = arith.constant 0.000000e+00 : f32
    %62 = vector.broadcast %cst_47 : f32 to vector<144x128xf32>
    %63 = arith.cmpf ogt, %61, %62 : vector<144x128xf32>
    %cst_48 = arith.constant 0.000000e+00 : f32
    %64 = vector.broadcast %cst_48 : f32 to vector<144x128xf32>
    %65 = arith.minimumf %61, %64 : vector<144x128xf32>
    %66 = math.exp %65 : vector<144x128xf32>
    %cst_49 = arith.constant 1.000000e+00 : f32
    %67 = vector.broadcast %cst_49 : f32 to vector<144x128xf32>
    %68 = arith.subf %66, %67 : vector<144x128xf32>
    %69 = arith.select %63, %61, %68 : vector<144x128xi1>, vector<144x128xf32>
    %c0_50 = arith.constant 0 : index
    %c0_51 = arith.constant 0 : index
    %c0_52 = arith.constant 0 : index
    %70 = vector.load %arg6[%c0_50, %c0_51, %c0_52] : memref<1x144x128xf32, #tpu.memory_space<vmem>>, vector<1x144x128xf32>
    %71 = vector.shape_cast %70 : vector<1x144x128xf32> to vector<144x128xf32>
    %72 = vector.shape_cast %69 : vector<144x128xf32> to vector<1x144x128xf32>
    tpu.vector_store %arg6[%c0_50, %c0_51, %c0_52], %72 {strides = array<i32>} : memref<1x144x128xf32, #tpu.memory_space<vmem>>, vector<1x144x128xf32>,
    return
  }
  func.func @transform_1(%arg0: i32, %arg1: i32) -> (i32, i32, i32) {
    %c0_i32 = arith.constant 0 : i32
    %c0_i32_0 = arith.constant 0 : i32
    %c0_i32_1 = arith.constant 0 : i32
    %c0_i32_2 = arith.constant 0 : i32
    return %c0_i32, %c0_i32_0, %c0_i32_1 : i32, i32, i32
  }
  func.func @transform_2(%arg0: i32, %arg1: i32) -> (i32, i32) {
    %c0_i32 = arith.constant 0 : i32
    %c0_i32_0 = arith.constant 0 : i32
    %c0_i32_1 = arith.constant 0 : i32
    return %c0_i32, %c0_i32_0 : i32, i32
  }
  func.func @transform_3(%arg0: i32, %arg1: i32) -> (i32, i32, i32) {
    %c0_i32 = arith.constant 0 : i32
    %c0_i32_0 = arith.constant 0 : i32
    return %arg0, %arg1, %c0_i32 : i32, i32, i32
  }
  func.func @transform_4(%arg0: i32, %arg1: i32) -> (i32, i32, i32) {
    %c0_i32 = arith.constant 0 : i32
    %c0_i32_0 = arith.constant 0 : i32
    return %arg0, %arg1, %c0_i32 : i32, i32, i32
  }
}

</mosaic_0001>

<bundles_post_ra>
// kernel: decoder_basic_block.3
= control target key start
LH: loop header
LB: loop body
LE: loop exit
PB: predicated region body
PF: predicated region fallthrough
CT: control target
= control target key end

     0   :  { %s3607_s15 = smov 0   ;;  %s3609_s16 = smov 0   ;;  %s4559_s0 = inlined_call_operand.vmem [shape: f32[672,128], index: 0, kind: input, shape index: {}]   ;;  %s4560_s1 = inlined_call_operand.vmem [shape: f32[9,128,128], index: 1, kind: input, shape index: {}]   ;;  %s4561_s2 = inlined_call_operand.vmem [shape: f32[1,128], index: 2, kind: input, shape index: {}]   ;;  %s4562_s3 = inlined_call_operand.vmem [shape: f32[2,288,128], index: 3, kind: input, shape index: {}]   ;;  %s4563_s4 = inlined_call_operand.vmem [shape: f32[2,288,128], index: 4, kind: output, shape index: {}]  }
   0x1   :  { %s3611_s17 = smov 0   ;;  %s3613_s18 = smov 0  }
   0x2   :  { %s3615_s19 = smov 0  }
   0x3 LB: > { %s23_s20 = sadd.s32 1, %s3572_s17  ;;  %s26_s21 = sadd.s32 1, %s3576_s18  ;;  %s3580_s19 = sphi %s3615_s19, %s14_s19   ;;  %s3576_s18 = sphi %s3613_s18, %s4589_s18   ;;  %s3572_s17 = sphi %s3611_s17, %s4588_s17   ;;  %s3568_s16 = sphi %s3609_s16, %s4587_s16   ;;  %s3564_s15 = sphi %s3607_s15, %s4586_s15  }
   0x4   : > { %p24_p0 = scmp.ge.s32.totalorder %s23_s20, 2  ;;  %p2441_p1 = scmp.ge.s32.totalorder %s3580_s19, 1 }
   0x5   : > { %p159_p2 = scmp.lt.s32.totalorder %s3580_s19, 5 }
   0x6   : > { %s4591_s20 = smov (%p24_p0, %s23_s20), 0  ;;  %s4593_s21 = smov (!%p24_p0, %s26_s21), %s3576_s18 }
   0x7   : > { %p160_p3 = pnand %p2441_p1, %p159_p2  ;;  %p28_p4 = scmp.ge.s32.totalorder %s4593_s21, 2 }
   0x9   : > { %s4595_s21 = smov (%p28_p4, %s4593_s21), 0  ;;  %163 = sbr.rel (%p160_p3) target bundleno = 521 (0x209), region = 32 }
   0xe   : > { %s191_s22 = smul.u32 18, %s3564_s15  ;;  %p192_p5 = scmp.lt.s32.totalorder %s3568_s16, 1 }
   0xf   : > { %s211_s23 = smul.u32 336, %s3568_s16 }
  0x10   : > { %s4597_s16 = smov (!%p192_p5, %s3568_s16), 1  ;;  %p194_p6 = scmp.lt.s32.totalorder %s191_s22, 35 }
  0x11   : > { %s212_s24 = smul.u32 144, %s3564_s15 }
  0x12   : > { %s3463_s25 = smul.u32 36, %s4597_s16  ;;  %s4599_s22 = smov (!%p194_p6, %s191_s22), 35 }
  0x13   : > { %s213_s26 = sadd.s32 %s212_s24, %s211_s23 }
  0x14   : > { %s197_s27 = sadd.s32 %s3463_s25, %s4599_s22  ;;  %s3640_s30 = scalar_lea.vmem %s4559_s0, %s213_s26 }
  0x15   : > { %s2442_s5 = sshll.u32 %s197_s27, 3  ;;  %v248_v0 = vld [vmem:[%s3640_s30] sm:$0xff]  ;;  %v250_v1 = vld [vmem:[%s3640_s30 + $0x8] sm:$0xff]  ;;  %v252_v2 = vld [vmem:[%s3640_s30 + $0x10] sm:$0xff] }
  0x16   : > { %s3648_s8 = scalar_lea.vmem %s4562_s3, %s2442_s5  ;;  %s3653_s11 = scalar_lea.vmem %s4563_s4, %s2442_s5  ;;  %249 = vst [vmem:[#allocation2] sm:$0xff] %v248_v0  ;;  %251 = vst [vmem:[#allocation2 + $0x8] sm:$0xff] %v250_v1  ;;  %v254_v3 = vld [vmem:[%s3640_s30 + $0x18] sm:$0xff]  ;;  %v256_v4 = vld [vmem:[%s3640_s30 + $0x20] sm:$0xff] }
  0x17   : > { %253 = vst [vmem:[#allocation2 + $0x10] sm:$0xff] %v252_v2  ;;  %v258_v5 = vld [vmem:[%s3640_s30 + $0x28] sm:$0xff]  ;;  %255 = vst [vmem:[#allocation2 + $0x18] sm:$0xff] %v254_v3  ;;  %v260_v6 = vld [vmem:[%s3640_s30 + $0x30] sm:$0xff] }
  0x18   : > { %257 = vst [vmem:[#allocation2 + $0x20] sm:$0xff] %v256_v4  ;;  %259 = vst [vmem:[#allocation2 + $0x28] sm:$0xff] %v258_v5  ;;  %v262_v7 = vld [vmem:[%s3640_s30 + $0x38] sm:$0xff]  ;;  %v264_v8 = vld [vmem:[%s3640_s30 + $0x40] sm:$0xff] }
  0x19   : > { %261 = vst [vmem:[#allocation2 + $0x30] sm:$0xff] %v260_v6  ;;  %263 = vst [vmem:[#allocation2 + $0x38] sm:$0xff] %v262_v7  ;;  %v266_v9 = vld [vmem:[%s3640_s30 + $0x48] sm:$0xff]  ;;  %v268_v10 = vld [vmem:[%s3640_s30 + $0x50] sm:$0xff] }
  0x1a   : > { %265 = vst [vmem:[#allocation2 + $0x40] sm:$0xff] %v264_v8  ;;  %v270_v11 = vld [vmem:[%s3640_s30 + $0x58] sm:$0xff]  ;;  %267 = vst [vmem:[#allocation2 + $0x48] sm:$0xff] %v266_v9  ;;  %v272_v12 = vld [vmem:[%s3640_s30 + $0x60] sm:$0xff] }
  0x1b   : > { %269 = vst [vmem:[#allocation2 + $0x50] sm:$0xff] %v268_v10  ;;  %271 = vst [vmem:[#allocation2 + $0x58] sm:$0xff] %v270_v11  ;;  %v274_v13 = vld [vmem:[%s3640_s30 + $0x68] sm:$0xff]  ;;  %v276_v14 = vld [vmem:[%s3640_s30 + $0x70] sm:$0xff] }
  0x1c   : > { %273 = vst [vmem:[#allocation2 + $0x60] sm:$0xff] %v272_v12  ;;  %275 = vst [vmem:[#allocation2 + $0x68] sm:$0xff] %v274_v13  ;;  %v278_v15 = vld [vmem:[%s3640_s30 + $0x78] sm:$0xff]  ;;  %v280_v16 = vld [vmem:[%s3640_s30 + $0x80] sm:$0xff] }
  0x1d   : > { %277 = vst [vmem:[#allocation2 + $0x70] sm:$0xff] %v276_v14  ;;  %v282_v17 = vld [vmem:[%s3640_s30 + $0x88] sm:$0xff]  ;;  %279 = vst [vmem:[#allocation2 + $0x78] sm:$0xff] %v278_v15  ;;  %v284_v18 = vld [vmem:[%s3640_s30 + $0x90] sm:$0xff] }
  0x1e   : > { %281 = vst [vmem:[#allocation2 + $0x80] sm:$0xff] %v280_v16  ;;  %283 = vst [vmem:[#allocation2 + $0x88] sm:$0xff] %v282_v17  ;;  %v286_v19 = vld [vmem:[%s3640_s30 + $0x98] sm:$0xff]  ;;  %v288_v20 = vld [vmem:[%s3640_s30 + $0xa0] sm:$0xff] }
  0x1f   : > { %285 = vst [vmem:[#allocation2 + $0x90] sm:$0xff] %v284_v18  ;;  %287 = vst [vmem:[#allocation2 + $0x98] sm:$0xff] %v286_v19  ;;  %v290_v21 = vld [vmem:[%s3640_s30 + $0xa8] sm:$0xff]  ;;  %v292_v22 = vld [vmem:[%s3640_s30 + $0xb0] sm:$0xff] }
  0x20   : > { %289 = vst [vmem:[#allocation2 + $0xa0] sm:$0xff] %v288_v20  ;;  %291 = vst [vmem:[#allocation2 + $0xa8] sm:$0xff] %v290_v21 }
  0x21   : > { %293 = vst [vmem:[#allocation2 + $0xb0] sm:$0xff] %v292_v22 }
  0x22   : > { %303 = vsyncadd [#allocation3], 3072 }
  0x23   : > { %3560 = dma.done.wait [#allocation3], 3072 }
  0x24   : > { %3561 = vsyncadd [#allocation3], 4294964224  ;;  %v2459_v23 = vld [vmem:[%s4560_s1 + $0xf8] sm:$0xff]  ;;  %v2458_v25 = vld [vmem:[%s4560_s1 + $0xf0] sm:$0xff] }
  0x25   : > { %v340_v24 = vld [vmem:[%s4560_s1 + $0x78] sm:$0xff]  ;;  %2900 = vmatprep.subr.mxu0 %v2459_v23  ;;  %v339_v26 = vld [vmem:[%s4560_s1 + $0x70] sm:$0xff]  ;;  %v2457_v27 = vld [vmem:[%s4560_s1 + $0xe8] sm:$0xff] }
  0x26   : > { %2959 = vmatprep.subr.mxu1 %v340_v24  ;;  %2901 = vmatpush3.msra.mxu0 %v2459_v23  ;;  %v338_v28 = vld [vmem:[%s4560_s1 + $0x68] sm:$0xff]  ;;  %v2456_v29 = vld [vmem:[%s4560_s1 + $0xe0] sm:$0xff]  ;;  %v2455_v31 = vld [vmem:[%s4560_s1 + $0xd8] sm:$0xff] }
  0x27   : > { %2960 = vmatpush3.msra.mxu1 %v340_v24  ;;  %2902 = vmatprep.subr.mxu0 %v2458_v25  ;;  %v337_v30 = vld [vmem:[%s4560_s1 + $0x60] sm:$0xff]  ;;  %v336_v32 = vld [vmem:[%s4560_s1 + $0x58] sm:$0xff]  ;;  %v2454_v33 = vld [vmem:[%s4560_s1 + $0xd0] sm:$0xff] }
  0x28   : > { %2961 = vmatprep.subr.mxu1 %v339_v26  ;;  %2903 = vmatpush3.msra.mxu0 %v2458_v25  ;;  %v335_v34 = vld [vmem:[%s4560_s1 + $0x50] sm:$0xff]  ;;  %v2453_v35 = vld [vmem:[%s4560_s1 + $0xc8] sm:$0xff]  ;;  %v2452_v37 = vld [vmem:[%s4560_s1 + $0xc0] sm:$0xff] }
  0x29   : > { %2962 = vmatpush3.msra.mxu1 %v339_v26  ;;  %2904 = vmatprep.subr.mxu0 %v2457_v27  ;;  %v334_v36 = vld [vmem:[%s4560_s1 + $0x48] sm:$0xff]  ;;  %v333_v38 = vld [vmem:[%s4560_s1 + $0x40] sm:$0xff]  ;;  %v2451_v39 = vld [vmem:[%s4560_s1 + $0xb8] sm:$0xff] }
  0x2a   : > { %2963 = vmatprep.subr.mxu1 %v338_v28  ;;  %2905 = vmatpush3.msra.mxu0 %v2457_v27  ;;  %v332_v40 = vld [vmem:[%s4560_s1 + $0x38] sm:$0xff]  ;;  %v2450_v41 = vld [vmem:[%s4560_s1 + $0xb0] sm:$0xff]  ;;  %v2449_v43 = vld [vmem:[%s4560_s1 + $0xa8] sm:$0xff] }
  0x2b   : > { %2964 = vmatpush3.msra.mxu1 %v338_v28  ;;  %2906 = vmatprep.subr.mxu0 %v2456_v29  ;;  %v331_v42 = vld [vmem:[%s4560_s1 + $0x30] sm:$0xff]  ;;  %v330_v44 = vld [vmem:[%s4560_s1 + $0x28] sm:$0xff]  ;;  %v2448_v45 = vld [vmem:[%s4560_s1 + $0xa0] sm:$0xff] }
  0x2c   : > { %2965 = vmatprep.subr.mxu1 %v337_v30  ;;  %2907 = vmatpush3.msra.mxu0 %v2456_v29  ;;  %v329_v46 = vld [vmem:[%s4560_s1 + $0x20] sm:$0xff]  ;;  %v2447_v47 = vld [vmem:[%s4560_s1 + $0x98] sm:$0xff]  ;;  %v2446_v49 = vld [vmem:[%s4560_s1 + $0x90] sm:$0xff] }
  0x2d   : > { %2966 = vmatpush3.msra.mxu1 %v337_v30  ;;  %2908 = vmatprep.subr.mxu0 %v2455_v31  ;;  %v328_v48 = vld [vmem:[%s4560_s1 + $0x18] sm:$0xff]  ;;  %v327_v50 = vld [vmem:[%s4560_s1 + $0x10] sm:$0xff]  ;;  %v2445_v51 = vld [vmem:[%s4560_s1 + $0x88] sm:$0xff] }
  0x2e   : > { %2967 = vmatprep.subr.mxu1 %v336_v32  ;;  %2909 = vmatpush3.msra.mxu0 %v2455_v31  ;;  %v326_v52 = vld [vmem:[%s4560_s1 + $0x8] sm:$0xff]  ;;  %v2444_v53 = vld [vmem:[%s4560_s1 + $0x80] sm:$0xff]  ;;  %v2475_v59 = vld [vmem:[%s4560_s1 + $0x178] sm:$0xff] }
  0x2f   : > { %2968 = vmatpush3.msra.mxu1 %v336_v32  ;;  %2910 = vmatprep.subr.mxu0 %v2454_v33  ;;  %v325_v54 = vld [vmem:[%s4560_s1] sm:$0xff]  ;;  %v342_v57 = vld [vmem:[#allocation2 + $0x9] sm:$0xff]  ;;  %v343_v60 = vld [vmem:[#allocation2 + $0x11] sm:$0xff] }
  0x30   : > { %2969 = vmatprep.subr.mxu1 %v335_v34  ;;  %2911 = vmatpush3.msra.mxu0 %v2454_v33  ;;  %v341_v55 = vld [vmem:[#allocation2 + $0x1] sm:$0xff]  ;;  %v309_v61 = vld [vmem:[#allocation2 + $0x10] sm:$0xff]  ;;  %v2491_v63 = vld [vmem:[%s4560_s1 + $0x1f8] sm:$0xff] }
  0x31   : > { %2970 = vmatpush3.msra.mxu1 %v335_v34  ;;  %2912 = vmatprep.subr.mxu0 %v2453_v35  ;;  %v307_v56 = vld [vmem:[#allocation2] sm:$0xff]  ;;  %v308_v58 = vld [vmem:[#allocation2 + $0x8] sm:$0xff]  ;;  %v2474_v62 = vld [vmem:[%s4560_s1 + $0x170] sm:$0xff] }
  0x32   : > { %2971 = vmatprep.subr.mxu1 %v334_v36  ;;  %2913 = vmatpush3.msra.mxu0 %v2453_v35  ;;  %v344_v0 = vld [vmem:[#allocation2 + $0x19] sm:$0xff]  ;;  %v2473_v2 = vld [vmem:[%s4560_s1 + $0x168] sm:$0xff]  ;;  %v2490_v3 = vld [vmem:[%s4560_s1 + $0x1f0] sm:$0xff] }
  0x33   : > { %2972 = vmatpush3.msra.mxu1 %v334_v36  ;;  %2914 = vmatprep.subr.mxu0 %v2452_v37  ;;  %v310_v1 = vld [vmem:[#allocation2 + $0x18] sm:$0xff]  ;;  %v345_v4 = vld [vmem:[#allocation2 + $0x21] sm:$0xff]  ;;  %v346_v7 = vld [vmem:[#allocation2 + $0x29] sm:$0xff] }
  0x34   : > { %2973 = vmatprep.subr.mxu1 %v333_v38  ;;  %2915 = vmatpush3.msra.mxu0 %v2452_v37  ;;  %v311_v5 = vld [vmem:[#allocation2 + $0x20] sm:$0xff]  ;;  %v312_v8 = vld [vmem:[#allocation2 + $0x28] sm:$0xff]  ;;  %v2471_v10 = vld [vmem:[%s4560_s1 + $0x158] sm:$0xff] }
  0x35   : > { %2974 = vmatpush3.msra.mxu1 %v333_v38  ;;  %2916 = vmatprep.subr.mxu0 %v2451_v39  ;;  %v2472_v6 = vld [vmem:[%s4560_s1 + $0x160] sm:$0xff]  ;;  %v2489_v9 = vld [vmem:[%s4560_s1 + $0x1e8] sm:$0xff]  ;;  %v347_v12 = vld [vmem:[#allocation2 + $0x31] sm:$0xff] }
  0x36   : > { %2975 = vmatprep.subr.mxu1 %v332_v40  ;;  %2917 = vmatpush3.msra.mxu0 %v2451_v39  ;;  %v2488_v11 = vld [vmem:[%s4560_s1 + $0x1e0] sm:$0xff]  ;;  %v313_v13 = vld [vmem:[#allocation2 + $0x30] sm:$0xff]  ;;  %v314_v15 = vld [vmem:[#allocation2 + $0x38] sm:$0xff] }
  0x37   : > { %2976 = vmatpush3.msra.mxu1 %v332_v40  ;;  %2918 = vmatprep.subr.mxu0 %v2450_v41  ;;  %v348_v14 = vld [vmem:[#allocation2 + $0x39] sm:$0xff]  ;;  %v2470_v16 = vld [vmem:[%s4560_s1 + $0x150] sm:$0xff]  ;;  %v2469_v18 = vld [vmem:[%s4560_s1 + $0x148] sm:$0xff] }
  0x38   : > { %2977 = vmatprep.subr.mxu1 %v331_v42  ;;  %2919 = vmatpush3.msra.mxu0 %v2450_v41  ;;  %v2487_v17 = vld [vmem:[%s4560_s1 + $0x1d8] sm:$0xff]  ;;  %v2486_v19 = vld [vmem:[%s4560_s1 + $0x1d0] sm:$0xff]  ;;  %v349_v20 = vld [vmem:[#allocation2 + $0x41] sm:$0xff] }
  0x39   : > { %2978 = vmatpush3.msra.mxu1 %v331_v42  ;;  %2920 = vmatprep.subr.mxu0 %v2449_v43  ;;  %v315_v21 = vld [vmem:[#allocation2 + $0x40] sm:$0xff]  ;;  %v350_v22 = vld [vmem:[#allocation2 + $0x49] sm:$0xff]  ;;  %v2467_v26 = vld [vmem:[%s4560_s1 + $0x138] sm:$0xff] }
  0x3a   : > { %2979 = vmatprep.subr.mxu1 %v330_v44  ;;  %2921 = vmatpush3.msra.mxu0 %v2449_v43  ;;  %v316_v23 = vld [vmem:[#allocation2 + $0x48] sm:$0xff]  ;;  %v2468_v24 = vld [vmem:[%s4560_s1 + $0x140] sm:$0xff]  ;;  %v351_v28 = vld [vmem:[#allocation2 + $0x51] sm:$0xff] }
  0x3b   : > { %2980 = vmatpush3.msra.mxu1 %v330_v44  ;;  %2922 = vmatprep.subr.mxu0 %v2448_v45  ;;  %v2485_v25 = vld [vmem:[%s4560_s1 + $0x1c8] sm:$0xff]  ;;  %v2484_v27 = vld [vmem:[%s4560_s1 + $0x1c0] sm:$0xff]  ;;  %v317_v29 = vld [vmem:[#allocation2 + $0x50] sm:$0xff] }
  0x3c   : > { %2981 = vmatprep.subr.mxu1 %v329_v46  ;;  %2923 = vmatpush3.msra.mxu0 %v2448_v45  ;;  %v352_v30 = vld [vmem:[#allocation2 + $0x59] sm:$0xff]  ;;  %v2466_v33 = vld [vmem:[%s4560_s1 + $0x130] sm:$0xff]  ;;  %v353_v35 = vld [vmem:[#allocation2 + $0x61] sm:$0xff] }
  0x3d   : > { %2982 = vmatpush3.msra.mxu1 %v329_v46  ;;  %2924 = vmatprep.subr.mxu0 %v2447_v47  ;;  %v318_v31 = vld [vmem:[#allocation2 + $0x58] sm:$0xff]  ;;  %v2482_v34 = vld [vmem:[%s4560_s1 + $0x1b0] sm:$0xff]  ;;  %v319_v36 = vld [vmem:[#allocation2 + $0x60] sm:$0xff] }
  0x3e   : > { %2983 = vmatprep.subr.mxu1 %v328_v48  ;;  %2925 = vmatpush3.msra.mxu0 %v2447_v47  ;;  %v2483_v32 = vld [vmem:[%s4560_s1 + $0x1b8] sm:$0xff]  ;;  %v2465_v37 = vld [vmem:[%s4560_s1 + $0x128] sm:$0xff]  ;;  %v2464_v41 = vld [vmem:[%s4560_s1 + $0x120] sm:$0xff] }
  0x3f   : > { %2984 = vmatpush3.msra.mxu1 %v328_v48  ;;  %2926 = vmatprep.subr.mxu0 %v2446_v49  ;;  %v354_v38 = vld [vmem:[#allocation2 + $0x69] sm:$0xff]  ;;  %v2480_v42 = vld [vmem:[%s4560_s1 + $0x1a0] sm:$0xff]  ;;  %v355_v43 = vld [vmem:[#allocation2 + $0x71] sm:$0xff] }
  0x40   : > { %2985 = vmatprep.subr.mxu1 %v327_v50  ;;  %2927 = vmatpush3.msra.mxu0 %v2446_v49  ;;  %v320_v39 = vld [vmem:[#allocation2 + $0x68] sm:$0xff]  ;;  %v321_v44 = vld [vmem:[#allocation2 + $0x70] sm:$0xff]  ;;  %v2463_v45 = vld [vmem:[%s4560_s1 + $0x118] sm:$0xff] }
  0x41   : > { %2986 = vmatpush3.msra.mxu1 %v327_v50  ;;  %2928 = vmatprep.subr.mxu0 %v2445_v51  ;;  %v2481_v40 = vld [vmem:[%s4560_s1 + $0x1a8] sm:$0xff]  ;;  %v356_v46 = vld [vmem:[#allocation2 + $0x79] sm:$0xff]  ;;  %v2462_v49 = vld [vmem:[%s4560_s1 + $0x110] sm:$0xff] }
  0x42   : > { %2987 = vmatprep.subr.mxu1 %v326_v52  ;;  %2929 = vmatpush3.msra.mxu0 %v2445_v51  ;;  %v322_v47 = vld [vmem:[#allocation2 + $0x78] sm:$0xff]  ;;  %v357_v50 = vld [vmem:[#allocation2 + $0x81] sm:$0xff]  ;;  %v2478_v51 = vld [vmem:[%s4560_s1 + $0x190] sm:$0xff] }
  0x43   : > { %2988 = vmatpush3.msra.mxu1 %v326_v52  ;;  %2930 = vmatprep.subr.mxu0 %v2444_v53  ;;  %v2479_v48 = vld [vmem:[%s4560_s1 + $0x198] sm:$0xff]  ;;  %v323_v52 = vld [vmem:[#allocation2 + $0x80] sm:$0xff] }
  0x44   : > { %2989 = vmatprep.subr.mxu1 %v325_v54  ;;  %2931 = vmatpush3.msra.mxu0 %v2444_v53  ;;  %v358_v53 = vld [vmem:[#allocation2 + $0x89] sm:$0xff] }
  0x45   : > { %2932 = vmatprep.mubr.f32.mxu0 %v341_v55  ;;  %2990 = vmatpush3.msra.mxu1 %v325_v54  ;;  %v324_v54 = vld [vmem:[#allocation2 + $0x88] sm:$0xff] }
  0x46   : > { %2991 = vmatprep.mubr.f32.mxu1 %v307_v56  ;;  %2933 = vmatmul.mubr.f32.vlgmr.msra.gmra.mxu0 %v342_v57  ;;  %v2461_v55 = vld [vmem:[%s4560_s1 + $0x108] sm:$0xff]  ;;  %v2460_v57 = vld [vmem:[%s4560_s1 + $0x100] sm:$0xff] }
  0x47   : > { %2992 = vmatmul.mubr.f32.vlgmr.msra.gmra.mxu1 %v308_v58  ;;  %3018 = vmatprep.subr.mxu0 %v2475_v59  ;;  %v2477_v56 = vld [vmem:[%s4560_s1 + $0x188] sm:$0xff]  ;;  %v2476_v58 = vld [vmem:[%s4560_s1 + $0x180] sm:$0xff] }
  0x48   : > { %2935 = vmatprep.mubr.f32.mxu0 %v343_v60  ;;  %3019 = vmatpush3.msra.mxu0 %v2475_v59  ;;  %v686_v59 = vld [vmem:[#allocation2 + $0x2] sm:$0xff]  ;;  %v894_v60 = vld [vmem:[#allocation2 + $0x12] sm:$0xff] }
  0x49   : > { %2994 = vmatprep.mubr.f32.mxu1 %v309_v61  ;;  %3020 = vmatprep.subr.mxu0 %v2474_v62  ;;  %v687_v61 = vld [vmem:[#allocation2 + $0xa] sm:$0xff] }
  0x4a   : > { %3077 = vmatprep.subr.mxu1 %v2491_v63  ;;  %2936 = vmatmul.mubr.f32.gmra.mxu0 %v344_v0  ;;  %v896_v0 = vld [vmem:[#allocation2 + $0x22] sm:$0xff] }
  0x4b   : > { %2995 = vmatmul.mubr.f32.gmra.mxu1 %v310_v1  ;;  %3021 = vmatpush3.msra.mxu0 %v2474_v62  ;;  %v895_v62 = vld [vmem:[#allocation2 + $0x1a] sm:$0xff]  ;;  %v2506_v1 = vld [vmem:[%s4560_s1 + $0x270] sm:$0xff] }
  0x4c   : > { %3078 = vmatpush3.msra.mxu1 %v2491_v63  ;;  %3022 = vmatprep.subr.mxu0 %v2473_v2  ;;  %v2507_v63 = vld [vmem:[%s4560_s1 + $0x278] sm:$0xff] }
  0x4d   : > { %3079 = vmatprep.subr.mxu1 %v2490_v3  ;;  %3023 = vmatpush3.msra.mxu0 %v2473_v2  ;;  %v2523_v2 = vld [vmem:[%s4560_s1 + $0x2f8] sm:$0xff] }
  0x4e   : > { %2938 = vmatprep.mubr.f32.mxu0 %v345_v4  ;;  %2997 = vmatprep.mubr.f32.mxu1 %v311_v5  ;;  %v2505_v4 = vld [vmem:[%s4560_s1 + $0x268] sm:$0xff]  ;;  %v2522_v5 = vld [vmem:[%s4560_s1 + $0x2f0] sm:$0xff] }
  0x4f   : > { %3024 = vmatprep.subr.mxu0 %v2472_v6  ;;  %3080 = vmatpush3.msra.mxu1 %v2490_v3  ;;  %v897_v3 = vld [vmem:[#allocation2 + $0x2a] sm:$0xff] }
  0x50   : > { %2939 = vmatmul.mubr.f32.gmra.mxu0 %v346_v7  ;;  %2998 = vmatmul.mubr.f32.gmra.mxu1 %v312_v8  ;;  %v2504_v7 = vld [vmem:[%s4560_s1 + $0x260] sm:$0xff] }
  0x51   : > { %3025 = vmatpush3.msra.mxu0 %v2472_v6  ;;  %3081 = vmatprep.subr.mxu1 %v2489_v9  ;;  %v898_v6 = vld [vmem:[#allocation2 + $0x32] sm:$0xff]  ;;  %v899_v8 = vld [vmem:[#allocation2 + $0x3a] sm:$0xff] }
  0x52   : > { %3026 = vmatprep.subr.mxu0 %v2471_v10  ;;  %3082 = vmatpush3.msra.mxu1 %v2489_v9  ;;  %v2521_v9 = vld [vmem:[%s4560_s1 + $0x2e8] sm:$0xff] }
  0x53   : > { %3027 = vmatpush3.msra.mxu0 %v2471_v10  ;;  %3083 = vmatprep.subr.mxu1 %v2488_v11  ;;  %v2503_v10 = vld [vmem:[%s4560_s1 + $0x258] sm:$0xff] }
  0x54   : > { %2941 = vmatprep.mubr.f32.mxu0 %v347_v12  ;;  %3000 = vmatprep.mubr.f32.mxu1 %v313_v13  ;;  %v900_v12 = vld [vmem:[#allocation2 + $0x42] sm:$0xff]  ;;  %v901_v13 = vld [vmem:[#allocation2 + $0x4a] sm:$0xff] }
  0x55   : > { %3084 = vmatpush3.msra.mxu1 %v2488_v11  ;;  %2942 = vmatmul.mubr.f32.gmra.mxu0 %v348_v14  ;;  %v2520_v11 = vld [vmem:[%s4560_s1 + $0x2e0] sm:$0xff]  ;;  %v2502_v14 = vld [vmem:[%s4560_s1 + $0x250] sm:$0xff] }
  0x56   : > { %3001 = vmatmul.mubr.f32.gmra.mxu1 %v314_v15  ;;  %3028 = vmatprep.subr.mxu0 %v2470_v16  ;;  %v2519_v15 = vld [vmem:[%s4560_s1 + $0x2d8] sm:$0xff] }
  0x57   : > { %3085 = vmatprep.subr.mxu1 %v2487_v17  ;;  %3029 = vmatpush3.msra.mxu0 %v2470_v16  ;;  %v2501_v16 = vld [vmem:[%s4560_s1 + $0x248] sm:$0xff] }
  0x58   : > { %3086 = vmatpush3.msra.mxu1 %v2487_v17  ;;  %3030 = vmatprep.subr.mxu0 %v2469_v18  ;;  %v2518_v17 = vld [vmem:[%s4560_s1 + $0x2d0] sm:$0xff] }
  0x59   : > { %3087 = vmatprep.subr.mxu1 %v2486_v19  ;;  %2944 = vmatprep.mubr.f32.mxu0 %v349_v20  ;;  %v2500_v20 = vld [vmem:[%s4560_s1 + $0x240] sm:$0xff] }
  0x5a   : > { %3003 = vmatprep.mubr.f32.mxu1 %v315_v21  ;;  %3031 = vmatpush3.msra.mxu0 %v2469_v18  ;;  %v902_v18 = vld [vmem:[#allocation2 + $0x52] sm:$0xff]  ;;  %v2517_v21 = vld [vmem:[%s4560_s1 + $0x2c8] sm:$0xff] }
  0x5b   : > { %3088 = vmatpush3.msra.mxu1 %v2486_v19  ;;  %2945 = vmatmul.mubr.f32.gmra.mxu0 %v350_v22  ;;  %v903_v19 = vld [vmem:[#allocation2 + $0x5a] sm:$0xff] }
  0x5c   : > { %3004 = vmatmul.mubr.f32.gmra.mxu1 %v316_v23  ;;  %3032 = vmatprep.subr.mxu0 %v2468_v24  ;;  %v2499_v22 = vld [vmem:[%s4560_s1 + $0x238] sm:$0xff]  ;;  %v2516_v23 = vld [vmem:[%s4560_s1 + $0x2c0] sm:$0xff] }
  0x5d   : > { %3089 = vmatprep.subr.mxu1 %v2485_v25  ;;  %3033 = vmatpush3.msra.mxu0 %v2468_v24  ;;  %v904_v24 = vld [vmem:[#allocation2 + $0x62] sm:$0xff] }
  0x5e   : > { %3090 = vmatpush3.msra.mxu1 %v2485_v25  ;;  %3034 = vmatprep.subr.mxu0 %v2467_v26  ;;  %v905_v25 = vld [vmem:[#allocation2 + $0x6a] sm:$0xff] }
  0x5f   : > { %3091 = vmatprep.subr.mxu1 %v2484_v27  ;;  %2947 = vmatprep.mubr.f32.mxu0 %v351_v28  ;;  %v2514_v28 = vld [vmem:[%s4560_s1 + $0x2b0] sm:$0xff] }
  0x60   : > { %3006 = vmatprep.mubr.f32.mxu1 %v317_v29  ;;  %3035 = vmatpush3.msra.mxu0 %v2467_v26  ;;  %v2515_v26 = vld [vmem:[%s4560_s1 + $0x2b8] sm:$0xff] }
  0x61   : > { %3092 = vmatpush3.msra.mxu1 %v2484_v27  ;;  %2948 = vmatmul.mubr.f32.gmra.mxu0 %v352_v30  ;;  %v2498_v27 = vld [vmem:[%s4560_s1 + $0x230] sm:$0xff]  ;;  %v2497_v30 = vld [vmem:[%s4560_s1 + $0x228] sm:$0xff] }
  0x62   : > { %3007 = vmatmul.mubr.f32.gmra.mxu1 %v318_v31  ;;  %3093 = vmatprep.subr.mxu1 %v2483_v32  ;;  %v906_v29 = vld [vmem:[#allocation2 + $0x72] sm:$0xff]  ;;  %v907_v31 = vld [vmem:[#allocation2 + $0x7a] sm:$0xff] }
  0x63   : > { %3036 = vmatprep.subr.mxu0 %v2466_v33  ;;  %3094 = vmatpush3.msra.mxu1 %v2483_v32  ;;  %v2513_v32 = vld [vmem:[%s4560_s1 + $0x2a8] sm:$0xff] }
  0x64   : > { %3037 = vmatpush3.msra.mxu0 %v2466_v33  ;;  %3095 = vmatprep.subr.mxu1 %v2482_v34  ;;  %v2496_v33 = vld [vmem:[%s4560_s1 + $0x220] sm:$0xff] }
  0x65   : > { %2950 = vmatprep.mubr.f32.mxu0 %v353_v35  ;;  %3009 = vmatprep.mubr.f32.mxu1 %v319_v36  ;;  %v908_v35 = vld [vmem:[#allocation2 + $0x82] sm:$0xff]  ;;  %v2495_v36 = vld [vmem:[%s4560_s1 + $0x218] sm:$0xff] }
  0x66   : > { %3038 = vmatprep.subr.mxu0 %v2465_v37  ;;  %3096 = vmatpush3.msra.mxu1 %v2482_v34  ;;  %v2512_v34 = vld [vmem:[%s4560_s1 + $0x2a0] sm:$0xff] }
  0x67   : > { %2951 = vmatmul.mubr.f32.gmra.mxu0 %v354_v38  ;;  %3010 = vmatmul.mubr.f32.gmra.mxu1 %v320_v39  ;;  %v2511_v38 = vld [vmem:[%s4560_s1 + $0x298] sm:$0xff]  ;;  %v2494_v39 = vld [vmem:[%s4560_s1 + $0x210] sm:$0xff] }
  0x68   : > { %3039 = vmatpush3.msra.mxu0 %v2465_v37  ;;  %3097 = vmatprep.subr.mxu1 %v2481_v40  ;;  %v909_v37 = vld [vmem:[#allocation2 + $0x8a] sm:$0xff] }
  0x69   : > { %3040 = vmatprep.subr.mxu0 %v2464_v41  ;;  %3098 = vmatpush3.msra.mxu1 %v2481_v40  ;;  %v2510_v40 = vld [vmem:[%s4560_s1 + $0x290] sm:$0xff] }
  0x6a   : > { %3041 = vmatpush3.msra.mxu0 %v2464_v41  ;;  %3099 = vmatprep.subr.mxu1 %v2480_v42  ;;  %v910_v41 = vld [vmem:[#allocation2 + $0x92] sm:$0xff] }
  0x6b   : > { %2953 = vmatprep.mubr.f32.mxu0 %v355_v43  ;;  %3012 = vmatprep.mubr.f32.mxu1 %v321_v44  ;;  %v2493_v43 = vld [vmem:[%s4560_s1 + $0x208] sm:$0xff] }
  0x6c   : > { %3042 = vmatprep.subr.mxu0 %v2463_v45  ;;  %3100 = vmatpush3.msra.mxu1 %v2480_v42  ;;  %v911_v42 = vld [vmem:[#allocation2 + $0x9a] sm:$0xff]  ;;  %v2509_v44 = vld [vmem:[%s4560_s1 + $0x288] sm:$0xff] }
  0x6d   : > { %2954 = vmatmul.mubr.f32.gmra.mxu0 %v356_v46  ;;  %3013 = vmatmul.mubr.f32.gmra.mxu1 %v322_v47  ;;  %v2508_v46 = vld [vmem:[%s4560_s1 + $0x280] sm:$0xff]  ;;  %v1102_v47 = vld [vmem:[#allocation2 + $0x13] sm:$0xff] }
  0x6e   : > { %3043 = vmatpush3.msra.mxu0 %v2463_v45  ;;  %3101 = vmatprep.subr.mxu1 %v2479_v48  ;;  %v2492_v45 = vld [vmem:[%s4560_s1 + $0x200] sm:$0xff] }
  0x6f   : > { %3044 = vmatprep.subr.mxu0 %v2462_v49  ;;  %3102 = vmatpush3.msra.mxu1 %v2479_v48  ;;  %v1310_v48 = vld [vmem:[#allocation2 + $0x14] sm:$0xff] }
  0x70   : > { %2956 = vmatprep.mubr.f32.mxu0 %v357_v50  ;;  %3103 = vmatprep.subr.mxu1 %v2478_v51  ;;  %v1311_v50 = vld [vmem:[#allocation2 + $0x1c] sm:$0xff] }
  0x71   : > { %3015 = vmatprep.mubr.f32.mxu1 %v323_v52  ;;  %3045 = vmatpush3.msra.mxu0 %v2462_v49  ;;  %v1103_v49 = vld [vmem:[#allocation2 + $0x1b] sm:$0xff]  ;;  %v1104_v52 = vld [vmem:[#allocation2 + $0x23] sm:$0xff] }
  0x72   : > { %3104 = vmatpush3.msra.mxu1 %v2478_v51  ;;  %2957 = vmatmul.mubr.f32.gmra.mxu0 %v358_v53  ;;  %v2539_v51 = vld [vmem:[%s4560_s1 + $0x378] sm:$0xff]  ;;  %v3966_v53 = vld [vmem:[#allocation2 + $0x24] sm:$0xff] }
  0x73   : > { %3016 = vmatmul.mubr.f32.gmra.mxu1 %v324_v54  ;;  %3046 = vmatprep.subr.mxu0 %v2461_v55  ;;  %v2538_v54 = vld [vmem:[%s4560_s1 + $0x370] sm:$0xff] }
  0x74   : > { %3105 = vmatprep.subr.mxu1 %v2477_v56  ;;  %3047 = vmatpush3.msra.mxu0 %v2461_v55  ;;  %v2555_v55 = vld [vmem:[%s4560_s1 + $0x3f8] sm:$0xff] }
  0x75   : > { %3106 = vmatpush3.msra.mxu1 %v2477_v56  ;;  %3048 = vmatprep.subr.mxu0 %v2460_v57  ;;  %v1105_v56 = vld [vmem:[#allocation2 + $0x2b] sm:$0xff] }
  0x76   : > { %3107 = vmatprep.subr.mxu1 %v2476_v58  ;;  %3049 = vmatpush3.msra.mxu0 %v2460_v57  ;;  %v3974_v57 = vld [vmem:[#allocation2 + $0x2c] sm:$0xff] }
  0x77   : > { %3050 = vmatprep.mubr.f32.mxu0 %v686_v59  ;;  %3108 = vmatpush3.msra.mxu1 %v2476_v58  ;;  %v2537_v58 = vld [vmem:[%s4560_s1 + $0x368] sm:$0xff]  ;;  %v2554_v59 = vld [vmem:[%s4560_s1 + $0x3f0] sm:$0xff] }
  0x78   : > { %3109 = vmatprep.mubr.f32.mxu1 %v894_v60  ;;  %3051 = vmatmul.mubr.f32.vlgmr.msra.gmra.mxu0 %v687_v61  ;;  %v3984_v61 = vld [vmem:[#allocation2 + $0x34] sm:$0xff] }
  0x79   : > { %3110 = vmatmul.mubr.f32.vlgmr.msra.gmra.mxu1 %v895_v62  ;;  %3136 = vmatprep.subr.mxu0 %v2507_v63 }
  0x7a   : > { %3053 = vmatprep.mubr.f32.mxu0 %v894_v60  ;;  %3137 = vmatpush3.msra.mxu0 %v2507_v63  ;;  %v1106_v60 = vld [vmem:[#allocation2 + $0x33] sm:$0xff]  ;;  %v1107_v63 = vld [vmem:[#allocation2 + $0x3b] sm:$0xff] }
  0x7b   : > { %3112 = vmatprep.mubr.f32.mxu1 %v896_v0  ;;  %3138 = vmatprep.subr.mxu0 %v2506_v1 }
  0x7c   : > { %3195 = vmatprep.subr.mxu1 %v2523_v2  ;;  %3054 = vmatmul.mubr.f32.gmra.mxu0 %v895_v62  ;;  %v2536_v62 = vld [vmem:[%s4560_s1 + $0x360] sm:$0xff] }
  0x7d   : > { %3113 = vmatmul.mubr.f32.gmra.mxu1 %v897_v3  ;;  %3139 = vmatpush3.msra.mxu0 %v2506_v1  ;;  %v2553_v1 = vld [vmem:[%s4560_s1 + $0x3e8] sm:$0xff] }
  0x7e   : > { %3196 = vmatpush3.msra.mxu1 %v2523_v2  ;;  %3140 = vmatprep.subr.mxu0 %v2505_v4  ;;  %v2535_v2 = vld [vmem:[%s4560_s1 + $0x358] sm:$0xff] }
  0x7f   : > { %3197 = vmatprep.subr.mxu1 %v2522_v5  ;;  %3141 = vmatpush3.msra.mxu0 %v2505_v4  ;;  %v1108_v4 = vld [vmem:[#allocation2 + $0x43] sm:$0xff] }
  0x80   : > { %3056 = vmatprep.mubr.f32.mxu0 %v896_v0  ;;  %3115 = vmatprep.mubr.f32.mxu1 %v898_v6  ;;  %v3989_v0 = vld [vmem:[#allocation2 + $0x3c] sm:$0xff] }
  0x81   : > { %3142 = vmatprep.subr.mxu0 %v2504_v7  ;;  %3198 = vmatpush3.msra.mxu1 %v2522_v5  ;;  %v4002_v5 = vld [vmem:[#allocation2 + $0x44] sm:$0xff] }
  0x82   : > { %3057 = vmatmul.mubr.f32.gmra.mxu0 %v897_v3  ;;  %3116 = vmatmul.mubr.f32.gmra.mxu1 %v899_v8  ;;  %v2552_v3 = vld [vmem:[%s4560_s1 + $0x3e0] sm:$0xff] }
  0x83   : > { %3143 = vmatpush3.msra.mxu0 %v2504_v7  ;;  %3199 = vmatprep.subr.mxu1 %v2521_v9  ;;  %v4004_v7 = vld [vmem:[#allocation2 + $0x4c] sm:$0xff] }
  0x84   : > { %3144 = vmatprep.subr.mxu0 %v2503_v10  ;;  %3200 = vmatpush3.msra.mxu1 %v2521_v9  ;;  %v2551_v9 = vld [vmem:[%s4560_s1 + $0x3d8] sm:$0xff] }
  0x85   : > { %3145 = vmatpush3.msra.mxu0 %v2503_v10  ;;  %3201 = vmatprep.subr.mxu1 %v2520_v11  ;;  %v2533_v10 = vld [vmem:[%s4560_s1 + $0x348] sm:$0xff] }
  0x86   : > { %3059 = vmatprep.mubr.f32.mxu0 %v898_v6  ;;  %3118 = vmatprep.mubr.f32.mxu1 %v900_v12  ;;  %v1109_v6 = vld [vmem:[#allocation2 + $0x4b] sm:$0xff] }
  0x87   : > { %3202 = vmatpush3.msra.mxu1 %v2520_v11  ;;  %3060 = vmatmul.mubr.f32.gmra.mxu0 %v899_v8  ;;  %v2534_v8 = vld [vmem:[%s4560_s1 + $0x350] sm:$0xff] }
  0x88   : > { %3119 = vmatmul.mubr.f32.gmra.mxu1 %v901_v13  ;;  %3146 = vmatprep.subr.mxu0 %v2502_v14  ;;  %v2550_v11 = vld [vmem:[%s4560_s1 + $0x3d0] sm:$0xff] }
  0x89   : > { %3203 = vmatprep.subr.mxu1 %v2519_v15  ;;  %3147 = vmatpush3.msra.mxu0 %v2502_v14  ;;  %v1111_v14 = vld [vmem:[#allocation2 + $0x5b] sm:$0xff] }
  0x8a   : > { %3204 = vmatpush3.msra.mxu1 %v2519_v15  ;;  %3148 = vmatprep.subr.mxu0 %v2501_v16  ;;  %v4022_v15 = vld [vmem:[#allocation2 + $0x5c] sm:$0xff] }
  0x8b   : > { %3205 = vmatprep.subr.mxu1 %v2518_v17  ;;  %3062 = vmatprep.mubr.f32.mxu0 %v900_v12  ;;  %v1110_v12 = vld [vmem:[#allocation2 + $0x53] sm:$0xff] }
  0x8c   : > { %3121 = vmatprep.mubr.f32.mxu1 %v902_v18  ;;  %3149 = vmatpush3.msra.mxu0 %v2501_v16  ;;  %v2532_v16 = vld [vmem:[%s4560_s1 + $0x340] sm:$0xff] }
  0x8d   : > { %3206 = vmatpush3.msra.mxu1 %v2518_v17  ;;  %3063 = vmatmul.mubr.f32.gmra.mxu0 %v901_v13  ;;  %v4020_v13 = vld [vmem:[#allocation2 + $0x54] sm:$0xff]  ;;  %v2549_v17 = vld [vmem:[%s4560_s1 + $0x3c8] sm:$0xff] }
  0x8e   : > { %3122 = vmatmul.mubr.f32.gmra.mxu1 %v903_v19  ;;  %3150 = vmatprep.subr.mxu0 %v2500_v20 }
  0x8f   : > { %3207 = vmatprep.subr.mxu1 %v2517_v21  ;;  %3151 = vmatpush3.msra.mxu0 %v2500_v20  ;;  %v1112_v20 = vld [vmem:[#allocation2 + $0x63] sm:$0xff] }
  0x90   : > { %3208 = vmatpush3.msra.mxu1 %v2517_v21  ;;  %3152 = vmatprep.subr.mxu0 %v2499_v22  ;;  %v4038_v21 = vld [vmem:[#allocation2 + $0x64] sm:$0xff] }
  0x91   : > { %3209 = vmatprep.subr.mxu1 %v2516_v23  ;;  %3065 = vmatprep.mubr.f32.mxu0 %v902_v18  ;;  %v2531_v18 = vld [vmem:[%s4560_s1 + $0x338] sm:$0xff] }
  0x92   : > { %3124 = vmatprep.mubr.f32.mxu1 %v904_v24  ;;  %3153 = vmatpush3.msra.mxu0 %v2499_v22  ;;  %v1113_v22 = vld [vmem:[#allocation2 + $0x6b] sm:$0xff] }
  0x93   : > { %3210 = vmatpush3.msra.mxu1 %v2516_v23  ;;  %3066 = vmatmul.mubr.f32.gmra.mxu0 %v903_v19  ;;  %v2548_v19 = vld [vmem:[%s4560_s1 + $0x3c0] sm:$0xff]  ;;  %v4040_v23 = vld [vmem:[#allocation2 + $0x6c] sm:$0xff] }
  0x94   : > { %3125 = vmatmul.mubr.f32.gmra.mxu1 %v905_v25  ;;  %3211 = vmatprep.subr.mxu1 %v2515_v26 }
  0x95   : > { %3154 = vmatprep.subr.mxu0 %v2498_v27  ;;  %3212 = vmatpush3.msra.mxu1 %v2515_v26  ;;  %v2546_v26 = vld [vmem:[%s4560_s1 + $0x3b0] sm:$0xff] }
  0x96   : > { %3155 = vmatpush3.msra.mxu0 %v2498_v27  ;;  %3213 = vmatprep.subr.mxu1 %v2514_v28  ;;  %v1114_v27 = vld [vmem:[#allocation2 + $0x73] sm:$0xff] }
  0x97   : > { %3068 = vmatprep.mubr.f32.mxu0 %v904_v24  ;;  %3127 = vmatprep.mubr.f32.mxu1 %v906_v29  ;;  %v2547_v24 = vld [vmem:[%s4560_s1 + $0x3b8] sm:$0xff] }
  0x98   : > { %3156 = vmatprep.subr.mxu0 %v2497_v30  ;;  %3214 = vmatpush3.msra.mxu1 %v2514_v28  ;;  %v4053_v28 = vld [vmem:[#allocation2 + $0x74] sm:$0xff] }
  0x99   : > { %3069 = vmatmul.mubr.f32.gmra.mxu0 %v905_v25  ;;  %3128 = vmatmul.mubr.f32.gmra.mxu1 %v907_v31  ;;  %v2530_v25 = vld [vmem:[%s4560_s1 + $0x330] sm:$0xff] }
  0x9a   : > { %3157 = vmatpush3.msra.mxu0 %v2497_v30  ;;  %3215 = vmatprep.subr.mxu1 %v2513_v32  ;;  %v1115_v30 = vld [vmem:[#allocation2 + $0x7b] sm:$0xff] }
  0x9b   : > { %3158 = vmatprep.subr.mxu0 %v2496_v33  ;;  %3216 = vmatpush3.msra.mxu1 %v2513_v32  ;;  %v2545_v32 = vld [vmem:[%s4560_s1 + $0x3a8] sm:$0xff] }
  0x9c   : > { %3159 = vmatpush3.msra.mxu0 %v2496_v33  ;;  %3217 = vmatprep.subr.mxu1 %v2512_v34  ;;  %v2528_v33 = vld [vmem:[%s4560_s1 + $0x320] sm:$0xff] }
  0x9d   : > { %3071 = vmatprep.mubr.f32.mxu0 %v906_v29  ;;  %3130 = vmatprep.mubr.f32.mxu1 %v908_v35  ;;  %v2529_v29 = vld [vmem:[%s4560_s1 + $0x328] sm:$0xff] }
  0x9e   : > { %3160 = vmatprep.subr.mxu0 %v2495_v36  ;;  %3218 = vmatpush3.msra.mxu1 %v2512_v34  ;;  %v2544_v34 = vld [vmem:[%s4560_s1 + $0x3a0] sm:$0xff] }
  0x9f   : > { %3072 = vmatmul.mubr.f32.gmra.mxu0 %v907_v31  ;;  %3131 = vmatmul.mubr.f32.gmra.mxu1 %v909_v37  ;;  %v4058_v31 = vld [vmem:[#allocation2 + $0x7c] sm:$0xff] }
  0xa0   : > { %3161 = vmatpush3.msra.mxu0 %v2495_v36  ;;  %3219 = vmatprep.subr.mxu1 %v2511_v38  ;;  %v4071_v36 = vld [vmem:[#allocation2 + $0x84] sm:$0xff] }
  0xa1   : > { %3162 = vmatprep.subr.mxu0 %v2494_v39  ;;  %3220 = vmatpush3.msra.mxu1 %v2511_v38  ;;  %v1117_v38 = vld [vmem:[#allocation2 + $0x8b] sm:$0xff] }
  0xa2   : > { %3074 = vmatprep.mubr.f32.mxu0 %v908_v35  ;;  %3221 = vmatprep.subr.mxu1 %v2510_v40  ;;  %v1116_v35 = vld [vmem:[#allocation2 + $0x83] sm:$0xff] }
  0xa3   : > { %3133 = vmatprep.mubr.f32.mxu1 %v910_v41  ;;  %3163 = vmatpush3.msra.mxu0 %v2494_v39  ;;  %v4076_v39 = vld [vmem:[#allocation2 + $0x8c] sm:$0xff] }
  0xa4   : > { %3222 = vmatpush3.msra.mxu1 %v2510_v40  ;;  %3075 = vmatmul.mubr.f32.gmra.mxu0 %v909_v37  ;;  %v2527_v37 = vld [vmem:[%s4560_s1 + $0x318] sm:$0xff]  ;;  %v2526_v41 = vld [vmem:[%s4560_s1 + $0x310] sm:$0xff] }
  0xa5   : > { %3134 = vmatmul.mubr.f32.gmra.mxu1 %v911_v42  ;;  %3164 = vmatprep.subr.mxu0 %v2493_v43  ;;  %v2543_v40 = vld [vmem:[%s4560_s1 + $0x398] sm:$0xff] }
  0xa6   : > { %3223 = vmatprep.subr.mxu1 %v2509_v44  ;;  %3165 = vmatpush3.msra.mxu0 %v2493_v43  ;;  %v1118_v42 = vld [vmem:[#allocation2 + $0x93] sm:$0xff] }
  0xa7   : > { %3224 = vmatpush3.msra.mxu1 %v2509_v44  ;;  %3166 = vmatprep.subr.mxu0 %v2492_v45  ;;  %v2542_v43 = vld [vmem:[%s4560_s1 + $0x390] sm:$0xff] }
  0xa8   : > { %3225 = vmatprep.subr.mxu1 %v2508_v46  ;;  %3167 = vmatpush3.msra.mxu0 %v2492_v45  ;;  %v4089_v44 = vld [vmem:[#allocation2 + $0x94] sm:$0xff] }
  0xa9   : > { %3168 = vmatprep.mubr.f32.mxu0 %v1102_v47  ;;  %3226 = vmatpush3.msra.mxu1 %v2508_v46  ;;  %v1119_v45 = vld [vmem:[#allocation2 + $0x9b] sm:$0xff]  ;;  %v2525_v47 = vld [vmem:[%s4560_s1 + $0x308] sm:$0xff] }
  0xaa   : > { %3227 = vmatprep.mubr.f32.mxu1 %v1310_v48  ;;  %3169 = vmatmul.mubr.f32.vlgmr.msra.gmra.mxu0 %v1103_v49  ;;  %v4091_v46 = vld [vmem:[#allocation2 + $0x9c] sm:$0xff]  ;;  %v2541_v48 = vld [vmem:[%s4560_s1 + $0x388] sm:$0xff] }
  0xab   : > { %3228 = vmatmul.mubr.f32.vlgmr.msra.gmra.mxu1 %v1311_v50  ;;  %3254 = vmatprep.subr.mxu0 %v2539_v51  ;;  %v2524_v49 = vld [vmem:[%s4560_s1 + $0x300] sm:$0xff] }
  0xac   : > { %3171 = vmatprep.mubr.f32.mxu0 %v1104_v52  ;;  %3255 = vmatpush3.msra.mxu0 %v2539_v51  ;;  %v2540_v50 = vld [vmem:[%s4560_s1 + $0x380] sm:$0xff]  ;;  %v1727_v52 = vld [vmem:[#allocation2 + $0x2d] sm:$0xff] }
  0xad   : > { %3230 = vmatprep.mubr.f32.mxu1 %v3966_v53  ;;  %3256 = vmatprep.subr.mxu0 %v2538_v54  ;;  %v1726_v51 = vld [vmem:[#allocation2 + $0x25] sm:$0xff] }
  0xae   : > { %3313 = vmatprep.subr.mxu1 %v2555_v55  ;;  %3172 = vmatmul.mubr.f32.gmra.mxu0 %v1105_v56  ;;  %v2570_v56 = vld [vmem:[%s4560_s1 + $0x470] sm:$0xff] }
  0xaf   : > { %3231 = vmatmul.mubr.f32.gmra.mxu1 %v3974_v57  ;;  %3257 = vmatpush3.msra.mxu0 %v2538_v54  ;;  %v2571_v54 = vld [vmem:[%s4560_s1 + $0x478] sm:$0xff] }
  0xb0   : > { %3314 = vmatpush3.msra.mxu1 %v2555_v55  ;;  %3258 = vmatprep.subr.mxu0 %v2537_v58  ;;  %v1728_v55 = vld [vmem:[#allocation2 + $0x35] sm:$0xff] }
  0xb1   : > { %3315 = vmatprep.subr.mxu1 %v2554_v59  ;;  %3259 = vmatpush3.msra.mxu0 %v2537_v58  ;;  %v1729_v58 = vld [vmem:[#allocation2 + $0x3d] sm:$0xff] }
  0xb2   : > { %3174 = vmatprep.mubr.f32.mxu0 %v1106_v60  ;;  %3233 = vmatprep.mubr.f32.mxu1 %v3984_v61  ;;  %v1731_v60 = vld [vmem:[#allocation2 + $0x4d] sm:$0xff] }
  0xb3   : > { %3260 = vmatprep.subr.mxu0 %v2536_v62  ;;  %3316 = vmatpush3.msra.mxu1 %v2554_v59  ;;  %v2568_v59 = vld [vmem:[%s4560_s1 + $0x460] sm:$0xff] }
  0xb4   : > { %3175 = vmatmul.mubr.f32.gmra.mxu0 %v1107_v63  ;;  %3234 = vmatmul.mubr.f32.gmra.mxu1 %v3989_v0  ;;  %v1733_v63 = vld [vmem:[#allocation2 + $0x5d] sm:$0xff] }
  0xb5   : > { %3261 = vmatpush3.msra.mxu0 %v2536_v62  ;;  %3317 = vmatprep.subr.mxu1 %v2553_v1  ;;  %v1732_v62 = vld [vmem:[#allocation2 + $0x55] sm:$0xff] }
  0xb6   : > { %3262 = vmatprep.subr.mxu0 %v2535_v2  ;;  %3318 = vmatpush3.msra.mxu1 %v2553_v1  ;;  %v2565_v1 = vld [vmem:[%s4560_s1 + $0x448] sm:$0xff] }
  0xb7   : > { %3263 = vmatpush3.msra.mxu0 %v2535_v2  ;;  %3319 = vmatprep.subr.mxu1 %v2552_v3  ;;  %v1734_v2 = vld [vmem:[#allocation2 + $0x65] sm:$0xff] }
  0xb8   : > { %3177 = vmatprep.mubr.f32.mxu0 %v1108_v4  ;;  %3236 = vmatprep.mubr.f32.mxu1 %v4002_v5  ;;  %v2564_v4 = vld [vmem:[%s4560_s1 + $0x440] sm:$0xff] }
  0xb9   : > { %3320 = vmatpush3.msra.mxu1 %v2552_v3  ;;  %3178 = vmatmul.mubr.f32.gmra.mxu0 %v1109_v6  ;;  %v1735_v3 = vld [vmem:[#allocation2 + $0x6d] sm:$0xff]  ;;  %v1736_v6 = vld [vmem:[#allocation2 + $0x75] sm:$0xff] }
  0xba   : > { %3237 = vmatmul.mubr.f32.gmra.mxu1 %v4004_v7  ;;  %3264 = vmatprep.subr.mxu0 %v2534_v8 }
  0xbb   : > { %3321 = vmatprep.subr.mxu1 %v2551_v9  ;;  %3265 = vmatpush3.msra.mxu0 %v2534_v8  ;;  %v2562_v8 = vld [vmem:[%s4560_s1 + $0x430] sm:$0xff] }
  0xbc   : > { %3322 = vmatpush3.msra.mxu1 %v2551_v9  ;;  %3266 = vmatprep.subr.mxu0 %v2533_v10  ;;  %v1738_v9 = vld [vmem:[#allocation2 + $0x85] sm:$0xff] }
  0xbd   : > { %3323 = vmatprep.subr.mxu1 %v2550_v11  ;;  %3180 = vmatprep.mubr.f32.mxu0 %v1110_v12  ;;  %v2560_v12 = vld [vmem:[%s4560_s1 + $0x420] sm:$0xff] }
  0xbe   : > { %3239 = vmatprep.mubr.f32.mxu1 %v4020_v13  ;;  %3267 = vmatpush3.msra.mxu0 %v2533_v10  ;;  %v2561_v10 = vld [vmem:[%s4560_s1 + $0x428] sm:$0xff] }
  0xbf   : > { %3324 = vmatpush3.msra.mxu1 %v2550_v11  ;;  %3181 = vmatmul.mubr.f32.gmra.mxu0 %v1111_v14  ;;  %v1739_v11 = vld [vmem:[#allocation2 + $0x8d] sm:$0xff]  ;;  %v2559_v14 = vld [vmem:[%s4560_s1 + $0x418] sm:$0xff] }
  0xc0   : > { %3240 = vmatmul.mubr.f32.gmra.mxu1 %v4022_v15  ;;  %3268 = vmatprep.subr.mxu0 %v2532_v16 }
  0xc1   : > { %3325 = vmatprep.subr.mxu1 %v2549_v17  ;;  %3269 = vmatpush3.msra.mxu0 %v2532_v16  ;;  %v2558_v16 = vld [vmem:[%s4560_s1 + $0x410] sm:$0xff] }
  0xc2   : > { %3326 = vmatpush3.msra.mxu1 %v2549_v17  ;;  %3270 = vmatprep.subr.mxu0 %v2531_v18  ;;  %v1534_v17 = vld [vmem:[#allocation2 + $0xa4] sm:$0xff] }
  0xc3   : > { %3327 = vmatprep.subr.mxu1 %v2548_v19  ;;  %3183 = vmatprep.mubr.f32.mxu0 %v1112_v20  ;;  %v1743_v20 = vld [vmem:[#allocation2 + $0xad] sm:$0xff] }
  0xc4   : > { %3242 = vmatprep.mubr.f32.mxu1 %v4038_v21  ;;  %3271 = vmatpush3.msra.mxu0 %v2531_v18  ;;  %v1742_v18 = vld [vmem:[#allocation2 + $0xa5] sm:$0xff] }
  0xc5   : > { %3328 = vmatpush3.msra.mxu1 %v2548_v19  ;;  %3184 = vmatmul.mubr.f32.gmra.mxu0 %v1113_v22  ;;  %v1535_v19 = vld [vmem:[#allocation2 + $0xac] sm:$0xff] }
  0xc6   : > { %3243 = vmatmul.mubr.f32.gmra.mxu1 %v4040_v23  ;;  %3329 = vmatprep.subr.mxu1 %v2547_v24 }
  0xc7   : > { %3272 = vmatprep.subr.mxu0 %v2530_v25  ;;  %3330 = vmatpush3.msra.mxu1 %v2547_v24 }
  0xc8   : > { %3273 = vmatpush3.msra.mxu0 %v2530_v25  ;;  %3331 = vmatprep.subr.mxu1 %v2546_v26  ;;  %v2556_v25 = vld [vmem:[%s4560_s1 + $0x400] sm:$0xff] }
  0xc9   : > { %3186 = vmatprep.mubr.f32.mxu0 %v1114_v27  ;;  %3245 = vmatprep.mubr.f32.mxu1 %v4053_v28 }
  0xca   : > { %3274 = vmatprep.subr.mxu0 %v2529_v29  ;;  %3332 = vmatpush3.msra.mxu1 %v2546_v26 }
  0xcb   : > { %3187 = vmatmul.mubr.f32.gmra.mxu0 %v1115_v30  ;;  %3246 = vmatmul.mubr.f32.gmra.mxu1 %v4058_v31  ;;  %v1944_v30 = vld [vmem:[#allocation2 + $0x76] sm:$0xff] }
  0xcc   : > { %3275 = vmatpush3.msra.mxu0 %v2529_v29  ;;  %3333 = vmatprep.subr.mxu1 %v2545_v32  ;;  %v1934_v29 = vld [vmem:[#allocation2 + $0x26] sm:$0xff] }
  0xcd   : > { %3276 = vmatprep.subr.mxu0 %v2528_v33  ;;  %3334 = vmatpush3.msra.mxu1 %v2545_v32 }
  0xce   : > { %3277 = vmatpush3.msra.mxu0 %v2528_v33  ;;  %3335 = vmatprep.subr.mxu1 %v2544_v34  ;;  %v1935_v33 = vld [vmem:[#allocation2 + $0x2e] sm:$0xff] }
  0xcf   : > { %3189 = vmatprep.mubr.f32.mxu0 %v1116_v35  ;;  %3248 = vmatprep.mubr.f32.mxu1 %v4071_v36 }
  0xd0   : > { %3278 = vmatprep.subr.mxu0 %v2527_v37  ;;  %3336 = vmatpush3.msra.mxu1 %v2544_v34  ;;  %v1945_v34 = vld [vmem:[#allocation2 + $0x7e] sm:$0xff] }
  0xd1   : > { %3190 = vmatmul.mubr.f32.gmra.mxu0 %v1117_v38  ;;  %3249 = vmatmul.mubr.f32.gmra.mxu1 %v4076_v39 }
  0xd2   : > { %3279 = vmatpush3.msra.mxu0 %v2527_v37  ;;  %3337 = vmatprep.subr.mxu1 %v2543_v40  ;;  %v1946_v37 = vld [vmem:[#allocation2 + $0x86] sm:$0xff] }
  0xd3   : > { %3280 = vmatprep.subr.mxu0 %v2526_v41  ;;  %3338 = vmatpush3.msra.mxu1 %v2543_v40 }
  0xd4   : > { %3192 = vmatprep.mubr.f32.mxu0 %v1118_v42  ;;  %3339 = vmatprep.subr.mxu1 %v2542_v43  ;;  %v1947_v42 = vld [vmem:[#allocation2 + $0x8e] sm:$0xff] }
  0xd5   : > { %3251 = vmatprep.mubr.f32.mxu1 %v4089_v44  ;;  %3281 = vmatpush3.msra.mxu0 %v2526_v41  ;;  %v1937_v41 = vld [vmem:[#allocation2 + $0x3e] sm:$0xff] }
  0xd6   : > { %3340 = vmatpush3.msra.mxu1 %v2542_v43  ;;  %3193 = vmatmul.mubr.f32.gmra.mxu0 %v1119_v45  ;;  %v1948_v45 = vld [vmem:[#allocation2 + $0x96] sm:$0xff] }
  0xd7   : > { %3252 = vmatmul.mubr.f32.gmra.mxu1 %v4091_v46  ;;  %3282 = vmatprep.subr.mxu0 %v2525_v47 }
  0xd8   : > { %3341 = vmatprep.subr.mxu1 %v2541_v48  ;;  %3283 = vmatpush3.msra.mxu0 %v2525_v47 }
  0xd9   : > { %3342 = vmatpush3.msra.mxu1 %v2541_v48  ;;  %3284 = vmatprep.subr.mxu0 %v2524_v49 }
  0xda   : > { %3343 = vmatprep.subr.mxu1 %v2540_v50  ;;  %3285 = vmatpush3.msra.mxu0 %v2524_v49 }
  0xdb   : > { %3286 = vmatprep.mubr.f32.mxu0 %v3966_v53  ;;  %3344 = vmatpush3.msra.mxu1 %v2540_v50  ;;  %v2569_v53 = vld [vmem:[%s4560_s1 + $0x468] sm:$0xff] }
  0xdc   : > { %3345 = vmatprep.mubr.f32.mxu1 %v1726_v51  ;;  %3287 = vmatmul.mubr.f32.vlgmr.msra.gmra.mxu0 %v3974_v57  ;;  %v1730_v57 = vld [vmem:[#allocation2 + $0x45] sm:$0xff]  ;;  %v1939_v50 = vld [vmem:[#allocation2 + $0x4e] sm:$0xff] }
  0xdd   : > { %3346 = vmatmul.mubr.f32.vlgmr.msra.gmra.mxu1 %v1727_v52  ;;  %3372 = vmatprep.subr.mxu0 %v2571_v54  ;;  %v1949_v51 = vld [vmem:[#allocation2 + $0x9e] sm:$0xff] }
  0xde   : > { %3289 = vmatprep.mubr.f32.mxu0 %v3984_v61  ;;  %3373 = vmatpush3.msra.mxu0 %v2571_v54  ;;  %v2567_v61 = vld [vmem:[%s4560_s1 + $0x458] sm:$0xff] }
  0xdf   : > { %3348 = vmatprep.mubr.f32.mxu1 %v1728_v55  ;;  %3374 = vmatprep.subr.mxu0 %v2570_v56  ;;  %v1950_v55 = vld [vmem:[#allocation2 + $0xa6] sm:$0xff] }
  0xe0   : > { %3431 = vmatprep.subr.mxu1 %v2571_v54  ;;  %3290 = vmatmul.mubr.f32.gmra.mxu0 %v3989_v0  ;;  %v2566_v0 = vld [vmem:[%s4560_s1 + $0x450] sm:$0xff] }
  0xe1   : > { %3349 = vmatmul.mubr.f32.gmra.mxu1 %v1729_v58  ;;  %3375 = vmatpush3.msra.mxu0 %v2570_v56 }
  0xe2   : > { %3447 = vmatpush3.msra.mxu1 %v2571_v54  ;;  %3376 = vmatprep.subr.mxu0 %v2569_v53  ;;  %v1940_v54 = vld [vmem:[#allocation2 + $0x56] sm:$0xff] }
  0xe3   : > { %3432 = vmatprep.subr.mxu1 %v2570_v56  ;;  %3377 = vmatpush3.msra.mxu0 %v2569_v53 }
  0xe4   : > { %3292 = vmatprep.mubr.f32.mxu0 %v4002_v5  ;;  %3351 = vmatprep.mubr.f32.mxu1 %v1730_v57  ;;  %v2563_v5 = vld [vmem:[%s4560_s1 + $0x438] sm:$0xff] }
  0xe5   : > { %3448 = vmatpush3.msra.mxu1 %v2570_v56  ;;  %3378 = vmatprep.subr.mxu0 %v2568_v59  ;;  %v1941_v57 = vld [vmem:[#allocation2 + $0x5e] sm:$0xff] }
  0xe6   : > { %3293 = vmatmul.mubr.f32.gmra.mxu0 %v4004_v7  ;;  %3352 = vmatmul.mubr.f32.gmra.mxu1 %v1731_v60  ;;  %v1737_v7 = vld [vmem:[#allocation2 + $0x7d] sm:$0xff] }
  0xe7   : > { %3433 = vmatprep.subr.mxu1 %v2569_v53  ;;  %3379 = vmatpush3.msra.mxu0 %v2568_v59 }
  0xe8   : > { %3449 = vmatpush3.msra.mxu1 %v2569_v53  ;;  %3380 = vmatprep.subr.mxu0 %v2567_v61 }
  0xe9   : > { %3434 = vmatprep.subr.mxu1 %v2568_v59  ;;  %3381 = vmatpush3.msra.mxu0 %v2567_v61 }
  0xea   : > { %3295 = vmatprep.mubr.f32.mxu0 %v4020_v13  ;;  %3354 = vmatprep.mubr.f32.mxu1 %v1732_v62  ;;  %v1740_v13 = vld [vmem:[#allocation2 + $0x95] sm:$0xff]  ;;  %v1942_v62 = vld [vmem:[#allocation2 + $0x66] sm:$0xff] }
  0xeb   : > { %3450 = vmatpush3.msra.mxu1 %v2568_v59  ;;  %3296 = vmatmul.mubr.f32.gmra.mxu0 %v4022_v15  ;;  %v1741_v15 = vld [vmem:[#allocation2 + $0x9d] sm:$0xff]  ;;  %v1951_v59 = vld [vmem:[#allocation2 + $0xae] sm:$0xff] }
  0xec   : > { %3355 = vmatmul.mubr.f32.gmra.mxu1 %v1733_v63  ;;  %3435 = vmatprep.subr.mxu1 %v2567_v61 }
  0xed   : > { %3382 = vmatprep.subr.mxu0 %v2566_v0  ;;  %3451 = vmatpush3.msra.mxu1 %v2567_v61 }
  0xee   : > { %3383 = vmatpush3.msra.mxu0 %v2566_v0  ;;  %3436 = vmatprep.subr.mxu1 %v2566_v0 }
  0xef   : > { %3384 = vmatprep.subr.mxu0 %v2565_v1  ;;  %3298 = vmatprep.mubr.f32.mxu0 %v4038_v21  ;;  %v2557_v21 = vld [vmem:[%s4560_s1 + $0x408] sm:$0xff] }
  0xf0   : > { %3357 = vmatprep.mubr.f32.mxu1 %v1734_v2  ;;  %3452 = vmatpush3.msra.mxu1 %v2566_v0  ;;  %v1943_v0 = vld [vmem:[#allocation2 + $0x6e] sm:$0xff] }
  0xf1   : > { %3385 = vmatpush3.msra.mxu0 %v2565_v1  ;;  %3358 = vmatmul.mubr.f32.gmra.mxu1 %v1735_v3 }
  0xf2   : > { %3299 = vmatmul.mubr.f32.gmra.mxu0 %v4040_v23  ;;  %3437 = vmatprep.subr.mxu1 %v2565_v1 }
  0xf3   : > { %3386 = vmatprep.subr.mxu0 %v2564_v4  ;;  %3453 = vmatpush3.msra.mxu1 %v2565_v1 }
  0xf4   : > { %3387 = vmatpush3.msra.mxu0 %v2564_v4  ;;  %3438 = vmatprep.subr.mxu1 %v2564_v4 }
  0xf5   : > { %3388 = vmatprep.subr.mxu0 %v2563_v5  ;;  %3301 = vmatprep.mubr.f32.mxu0 %v4053_v28 }
  0xf6   : > { %3360 = vmatprep.mubr.f32.mxu1 %v1736_v6  ;;  %3454 = vmatpush3.msra.mxu1 %v2564_v4 }
  0xf7   : > { %3389 = vmatpush3.msra.mxu0 %v2563_v5  ;;  %3361 = vmatmul.mubr.f32.gmra.mxu1 %v1737_v7 }
  0xf8   : > { %3302 = vmatmul.mubr.f32.gmra.mxu0 %v4058_v31  ;;  %3439 = vmatprep.subr.mxu1 %v2563_v5 }
  0xf9   : > { %3390 = vmatprep.subr.mxu0 %v2562_v8  ;;  %3455 = vmatpush3.msra.mxu1 %v2563_v5 }
  0xfa   : > { %3391 = vmatpush3.msra.mxu0 %v2562_v8  ;;  %3440 = vmatprep.subr.mxu1 %v2562_v8 }
  0xfb   : > { %3304 = vmatprep.mubr.f32.mxu0 %v4071_v36  ;;  %3363 = vmatprep.mubr.f32.mxu1 %v1738_v9  ;;  %v1936_v36 = vld [vmem:[#allocation2 + $0x36] sm:$0xff] }
  0xfc   : > { %3456 = vmatpush3.msra.mxu1 %v2562_v8  ;;  %3392 = vmatprep.subr.mxu0 %v2561_v10 }
  0xfd   : > { %3305 = vmatmul.mubr.f32.gmra.mxu0 %v4076_v39  ;;  %3364 = vmatmul.mubr.f32.gmra.mxu1 %v1739_v11 }
  0xfe   : > { %3441 = vmatprep.subr.mxu1 %v2561_v10  ;;  %3393 = vmatpush3.msra.mxu0 %v2561_v10 }
  0xff   : > { %3457 = vmatpush3.msra.mxu1 %v2561_v10  ;;  %3394 = vmatprep.subr.mxu0 %v2560_v12 }
 0x100   : > { %3442 = vmatprep.subr.mxu1 %v2560_v12  ;;  %3395 = vmatpush3.msra.mxu0 %v2560_v12 }
 0x101   : > { %3307 = vmatprep.mubr.f32.mxu0 %v4089_v44  ;;  %3366 = vmatprep.mubr.f32.mxu1 %v1740_v13  ;;  %v1938_v44 = vld [vmem:[#allocation2 + $0x46] sm:$0xff] }
 0x102   : > { %3458 = vmatpush3.msra.mxu1 %v2560_v12  ;;  %3396 = vmatprep.subr.mxu0 %v2559_v14 }
 0x103   : > { %3308 = vmatmul.mubr.f32.gmra.mxu0 %v4091_v46  ;;  %3367 = vmatmul.mubr.f32.gmra.mxu1 %v1741_v15 }
 0x104   : > { %3443 = vmatprep.subr.mxu1 %v2559_v14  ;;  %3397 = vmatpush3.msra.mxu0 %v2559_v14 }
 0x105   : > { %3459 = vmatpush3.msra.mxu1 %v2559_v14  ;;  %3398 = vmatprep.subr.mxu0 %v2558_v16 }
 0x106   : > { %3444 = vmatprep.subr.mxu1 %v2558_v16  ;;  %3310 = vmatprep.mubr.f32.mxu0 %v1534_v17  ;;  %v2934_v22 = vpop.f32.mrf.mxu0 }
 0x107   : > { %3369 = vmatprep.mubr.f32.mxu1 %v1742_v18  ;;  %v2993_v23 = vpop.f32.mrf.mxu1  ;;  %3399 = vmatpush3.msra.mxu0 %v2558_v16 }
 0x108   : > { %3460 = vmatpush3.msra.mxu1 %v2558_v16  ;;  %v4168_v24 = vadd.f32 %v2993_v23, %v2934_v22  ;;  %3311 = vmatmul.mubr.f32.gmra.mxu0 %v1535_v19  ;;  %v442_v26 = vpop.f32.mrf.mxu0 }
 0x109   : > { %3370 = vmatmul.mubr.f32.gmra.mxu1 %v1743_v20  ;;  %v597_v27 = vpop.f32.mrf.mxu1  ;;  %3400 = vmatprep.subr.mxu0 %v2557_v21 }
 0x10a   : > { %3445 = vmatprep.subr.mxu1 %v2557_v21  ;;  %v4173_v28 = vadd.f32 %v597_v27, %v442_v26  ;;  %3401 = vmatpush3.msra.mxu0 %v2557_v21  ;;  %v2937_v31 = vpop.f32.mrf.mxu0 }
 0x10b   : > { %3461 = vmatpush3.msra.mxu1 %v2557_v21  ;;  %v2996_v32 = vpop.f32.mrf.mxu1  ;;  %3402 = vmatprep.subr.mxu0 %v2556_v25 }
 0x10c   : > { %3446 = vmatprep.subr.mxu1 %v2556_v25  ;;  %v4175_v35 = vadd.f32 %v2996_v32, %v2937_v31  ;;  %3403 = vmatpush3.msra.mxu0 %v2556_v25  ;;  %v452_v38 = vpop.f32.mrf.mxu0 }
 0x10d   : > { %3462 = vmatpush3.msra.mxu1 %v2556_v25  ;;  %v607_v39 = vpop.f32.mrf.mxu1  ;;  %3404 = vmatprep.mubr.f32.mxu0 %v1934_v29 }
 0x10e   : > { %3419 = vmatprep.mubr.f32.mxu1 %v1944_v30  ;;  %v4177_v40 = vadd.f32 %v607_v39, %v452_v38  ;;  %3405 = vmatmul.mubr.f32.vlgmr.msra.gmra.mxu0 %v1935_v33 }
 0x10f   : > { %3420 = vmatmul.mubr.f32.vlgmr.msra.gmra.mxu1 %v1945_v34  ;;  %3407 = vmatprep.mubr.f32.mxu0 %v1936_v36 }
 0x110   : > { %3422 = vmatprep.mubr.f32.mxu1 %v1946_v37  ;;  %v2940_v43 = vpop.f32.mrf.mxu0  ;;  %v2999_v46 = vpop.f32.mrf.mxu1 }
 0x111   : > { %v4179_v47 = vadd.f32 %v2999_v46, %v2940_v43 }
 0x112   : > { %v462_v48 = vpop.f32.mrf.mxu0  ;;  %3408 = vmatmul.mubr.f32.gmra.mxu0 %v1937_v41  ;;  %v617_v49 = vpop.f32.mrf.mxu1 }
 0x113   : > { %3423 = vmatmul.mubr.f32.gmra.mxu1 %v1947_v42  ;;  %3410 = vmatprep.mubr.f32.mxu0 %v1938_v44  ;;  %v4181_v52 = vadd.f32 %v617_v49, %v462_v48 }
 0x114   : > { %3425 = vmatprep.mubr.f32.mxu1 %v1948_v45 }
 0x115   : > { %v2943_v56 = vpop.f32.mrf.mxu0 }
 0x116   : > { %v3002_v58 = vpop.f32.mrf.mxu1  ;;  %3411 = vmatmul.mubr.f32.gmra.mxu0 %v1939_v50 }
 0x117   : > { %3426 = vmatmul.mubr.f32.gmra.mxu1 %v1949_v51  ;;  %v4183_v53 = vadd.f32 %v3002_v58, %v2943_v56  ;;  %3413 = vmatprep.mubr.f32.mxu0 %v1940_v54  ;;  %v472_v60 = vpop.f32.mrf.mxu0 }
 0x118   : > { %3428 = vmatprep.mubr.f32.mxu1 %v1950_v55  ;;  %v627_v61 = vpop.f32.mrf.mxu1 }
 0x119   : > { %v4185_v63 = vadd.f32 %v627_v61, %v472_v60 }
 0x11a   : > { %3414 = vmatmul.mubr.f32.gmra.mxu0 %v1941_v57 }
 0x11b   : > { %3429 = vmatmul.mubr.f32.gmra.mxu1 %v1951_v59  ;;  %3416 = vmatprep.mubr.f32.mxu0 %v1942_v62  ;;  %v2946_v1 = vpop.f32.mrf.mxu0 }
 0x11c   : > { %v3005_v2 = vpop.f32.mrf.mxu1 }
 0x11d   : > { %v4187_v3 = vadd.f32 %v3005_v2, %v2946_v1  ;;  %v482_v4 = vpop.f32.mrf.mxu0 }
 0x11e   : > { %v637_v5 = vpop.f32.mrf.mxu1  ;;  %3417 = vmatmul.mubr.f32.gmra.mxu0 %v1943_v0 }
 0x11f   : > { %v4189_v6 = vadd.f32 %v637_v5, %v482_v4 }
 0x121   : > { %v2949_v7 = vpop.f32.mrf.mxu0 }
 0x122   : > { %v3008_v8 = vpop.f32.mrf.mxu1 }
 0x123   : > { %v4191_v9 = vadd.f32 %v3008_v8, %v2949_v7  ;;  %v492_v10 = vpop.f32.mrf.mxu0 }
 0x124   : > { %v647_v11 = vpop.f32.mrf.mxu1 }
 0x125   : > { %v4193_v12 = vadd.f32 %v647_v11, %v492_v10 }
 0x127   : > { %v2952_v13 = vpop.f32.mrf.mxu0  ;;  %v3011_v14 = vpop.f32.mrf.mxu1 }
 0x128   : > { %v4195_v15 = vadd.f32 %v3011_v14, %v2952_v13 }
 0x129   : > { %v502_v16 = vpop.f32.mrf.mxu0  ;;  %v657_v17 = vpop.f32.mrf.mxu1 }
 0x12a   : > { %v4197_v18 = vadd.f32 %v657_v17, %v502_v16 }
 0x12d   : > { %v2955_v19 = vpop.f32.mrf.mxu0  ;;  %v3014_v20 = vpop.f32.mrf.mxu1 }
 0x12e   : > { %v4199_v21 = vadd.f32 %v3014_v20, %v2955_v19 }
 0x12f   : > { %v512_v22 = vpop.f32.mrf.mxu0  ;;  %v667_v23 = vpop.f32.mrf.mxu1 }
 0x130   : > { %v4201_v25 = vadd.f32 %v667_v23, %v512_v22 }
 0x132   : > { %v2958_v26 = vpop.f32.mrf.mxu0 }
 0x133   : > { %v3017_v27 = vpop.f32.mrf.mxu1 }
 0x134   : > { %v4203_v29 = vadd.f32 %v3017_v27, %v2958_v26  ;;  %v522_v30 = vpop.f32.mrf.mxu0 }
 0x135   : > { %v677_v31 = vpop.f32.mrf.mxu1 }
 0x136   : > { %v4205_v32 = vadd.f32 %v677_v31, %v522_v30 }
 0x138   : > { %v3052_v33 = vpop.f32.mrf.mxu0 }
 0x139   : > { %v3111_v34 = vpop.f32.mrf.mxu1  ;;  %v877_v36 = vadd.f32 %v3052_v33, %v4168_v24 }
 0x13a   : > { %v787_v37 = vpop.f32.mrf.mxu0 }
 0x13b   : > { %v995_v38 = vpop.f32.mrf.mxu1  ;;  %v4208_v39 = vadd.f32 %v3111_v34, %v877_v36  ;;  %v876_v41 = vadd.f32 %v787_v37, %v4173_v28 }
 0x13c   : > { %v3055_v42 = vpop.f32.mrf.mxu0 }
 0x13d   : > { %v3114_v43 = vpop.f32.mrf.mxu1  ;;  %v4211_v44 = vadd.f32 %v995_v38, %v876_v41  ;;  %v879_v45 = vadd.f32 %v3055_v42, %v4175_v35 }
 0x13e   : > { %v797_v46 = vpop.f32.mrf.mxu0 }
 0x13f   : > { %v1005_v48 = vpop.f32.mrf.mxu1  ;;  %v4214_v49 = vadd.f32 %v3114_v43, %v879_v45  ;;  %v878_v50 = vadd.f32 %v797_v46, %v4177_v40 }
 0x141   : > { %v4217_v51 = vadd.f32 %v1005_v48, %v878_v50 }
 0x142   : > { %v3058_v24 = vpop.f32.mrf.mxu0  ;;  %v3117_v55 = vpop.f32.mrf.mxu1 }
 0x143   : > { %v881_v54 = vadd.f32 %v3058_v24, %v4179_v47 }
 0x144   : > { %v807_v56 = vpop.f32.mrf.mxu0  ;;  %v1015_v57 = vpop.f32.mrf.mxu1 }
 0x145   : > { %v4220_v28 = vadd.f32 %v3117_v55, %v881_v54  ;;  %v880_v58 = vadd.f32 %v807_v56, %v4181_v52 }
 0x147   : > { %v4223_v59 = vadd.f32 %v1015_v57, %v880_v58  ;;  %v3061_v35 = vpop.f32.mrf.mxu0 }
 0x148   : > { %v3120_v60 = vpop.f32.mrf.mxu1  ;;  %v883_v61 = vadd.f32 %v3061_v35, %v4183_v53 }
 0x149   : > { %v817_v62 = vpop.f32.mrf.mxu0 }
 0x14a   : > { %v1025_v40 = vpop.f32.mrf.mxu1  ;;  %v4226_v0 = vadd.f32 %v3120_v60, %v883_v61  ;;  %v882_v1 = vadd.f32 %v817_v62, %v4185_v63 }
 0x14c   : > { %v4229_v47 = vadd.f32 %v1025_v40, %v882_v1 }
 0x14d   : > { %v3064_v2 = vpop.f32.mrf.mxu0 }
 0x14e   : > { %v3123_v4 = vpop.f32.mrf.mxu1  ;;  %v885_v5 = vadd.f32 %v3064_v2, %v4187_v3 }
 0x14f   : > { %v827_v52 = vpop.f32.mrf.mxu0 }
 0x150   : > { %v1035_v7 = vpop.f32.mrf.mxu1  ;;  %v4232_v8 = vadd.f32 %v3123_v4, %v885_v5  ;;  %v884_v10 = vadd.f32 %v827_v52, %v4189_v6 }
 0x152   : > { %v4235_v11 = vadd.f32 %v1035_v7, %v884_v10 }
 0x153   : > { %v3067_v53 = vpop.f32.mrf.mxu0 }
 0x154   : > { %v3126_v13 = vpop.f32.mrf.mxu1  ;;  %v887_v14 = vadd.f32 %v3067_v53, %v4191_v9 }
 0x155   : > { %v837_v16 = vpop.f32.mrf.mxu0 }
 0x156   : > { %v1045_v63 = vpop.f32.mrf.mxu1  ;;  %v4238_v17 = vadd.f32 %v3126_v13, %v887_v14  ;;  %v886_v19 = vadd.f32 %v837_v16, %v4193_v12 }
 0x158   : > { %v4241_v20 = vadd.f32 %v1045_v63, %v886_v19 }
 0x159   : > { %v3070_v3 = vpop.f32.mrf.mxu0  ;;  %v3129_v23 = vpop.f32.mrf.mxu1 }
 0x15a   : > { %v889_v22 = vadd.f32 %v3070_v3, %v4195_v15 }
 0x15b   : > { %v847_v26 = vpop.f32.mrf.mxu0  ;;  %v1055_v30 = vpop.f32.mrf.mxu1 }
 0x15c   : > { %v4244_v6 = vadd.f32 %v3129_v23, %v889_v22  ;;  %v888_v27 = vadd.f32 %v847_v26, %v4197_v18 }
 0x15e   : > { %v4247_v31 = vadd.f32 %v1055_v30, %v888_v27 }
 0x15f   : > { %v3073_v9 = vpop.f32.mrf.mxu0  ;;  %v3132_v34 = vpop.f32.mrf.mxu1 }
 0x160   : > { %v891_v33 = vadd.f32 %v3073_v9, %v4199_v21 }
 0x161   : > { %v857_v36 = vpop.f32.mrf.mxu0  ;;  %v1065_v38 = vpop.f32.mrf.mxu1 }
 0x162   : > { %v4250_v12 = vadd.f32 %v3132_v34, %v891_v33  ;;  %v890_v37 = vadd.f32 %v857_v36, %v4201_v25 }
 0x164   : > { %v4253_v15 = vadd.f32 %v1065_v38, %v890_v37  ;;  %v3076_v41 = vpop.f32.mrf.mxu0 }
 0x165   : > { %v3135_v42 = vpop.f32.mrf.mxu1  ;;  %v893_v43 = vadd.f32 %v3076_v41, %v4203_v29 }
 0x166   : > { %v867_v18 = vpop.f32.mrf.mxu0 }
 0x167   : > { %v1075_v45 = vpop.f32.mrf.mxu1  ;;  %v4256_v46 = vadd.f32 %v3135_v42, %v893_v43  ;;  %v892_v48 = vadd.f32 %v867_v18, %v4205_v32 }
 0x169   : > { %v4259_v21 = vadd.f32 %v1075_v45, %v892_v48 }
 0x16a   : > { %v3170_v50 = vpop.f32.mrf.mxu0 }
 0x16b   : > { %v3229_v24 = vpop.f32.mrf.mxu1  ;;  %v1293_v54 = vadd.f32 %v3170_v50, %v4208_v39 }
 0x16c   : > { %v1203_v25 = vpop.f32.mrf.mxu0 }
 0x16d   : > { %v1411_v55 = vpop.f32.mrf.mxu1  ;;  %v4262_v56 = vadd.f32 %v3229_v24, %v1293_v54  ;;  %v1292_v58 = vadd.f32 %v1203_v25, %v4211_v44 }
 0x16e   : > { %v3173_v57 = vpop.f32.mrf.mxu0 }
 0x16f   : > { %v3232_v29 = vpop.f32.mrf.mxu1  ;;  %v4265_v35 = vadd.f32 %v1411_v55, %v1292_v58  ;;  %v1295_v60 = vadd.f32 %v3173_v57, %v4214_v49 }
 0x170   : > { %v1213_v61 = vpop.f32.mrf.mxu0 }
 0x171   : > { %v1421_v32 = vpop.f32.mrf.mxu1  ;;  %v4268_v62 = vadd.f32 %v3232_v29, %v1295_v60  ;;  %v1294_v40 = vadd.f32 %v1213_v61, %v4217_v51 }
 0x173   : > { %v4271_v1 = vadd.f32 %v1421_v32, %v1294_v40 }
 0x174   : > { %v3176_v39 = vpop.f32.mrf.mxu0  ;;  %v3235_v4 = vpop.f32.mrf.mxu1 }
 0x175   : > { %v1297_v2 = vadd.f32 %v3176_v39, %v4220_v28 }
 0x176   : > { %v1223_v5 = vpop.f32.mrf.mxu0  ;;  %v1431_v7 = vpop.f32.mrf.mxu1 }
 0x177   : > { %v4274_v44 = vadd.f32 %v3235_v4, %v1297_v2  ;;  %v1296_v52 = vadd.f32 %v1223_v5, %v4223_v59 }
 0x179   : > { %v4277_v10 = vadd.f32 %v1431_v7, %v1296_v52  ;;  %v3179_v49 = vpop.f32.mrf.mxu0 }
 0x17a   : > { %v3238_v53 = vpop.f32.mrf.mxu1  ;;  %v1299_v13 = vadd.f32 %v3179_v49, %v4226_v0 }
 0x17b   : > { %v1233_v14 = vpop.f32.mrf.mxu0 }
 0x17c   : > { %v1441_v51 = vpop.f32.mrf.mxu1  ;;  %v4280_v16 = vadd.f32 %v3238_v53, %v1299_v13  ;;  %v1298_v63 = vadd.f32 %v1233_v14, %v4229_v47 }
 0x17e   : > { %v4283_v28 = vadd.f32 %v1441_v51, %v1298_v63 }
 0x17f   : > { %v3182_v19 = vpop.f32.mrf.mxu0 }
 0x180   : > { %v3241_v3 = vpop.f32.mrf.mxu1  ;;  %v1301_v22 = vadd.f32 %v3182_v19, %v4232_v8 }
 0x181   : > { %v1243_v59 = vpop.f32.mrf.mxu0 }
 0x182   : > { %v1451_v23 = vpop.f32.mrf.mxu1  ;;  %v4286_v26 = vadd.f32 %v3241_v3, %v1301_v22  ;;  %v1300_v27 = vadd.f32 %v1243_v59, %v4235_v11 }
 0x184   : > { %v4289_v30 = vadd.f32 %v1451_v23, %v1300_v27 }
 0x185   : > { %v3185_v0 = vpop.f32.mrf.mxu0 }
 0x186   : > { %4564 = vst [vmem:[#allocation6_spill] sm:$0xff] %v4289_v30  ;;  %v3244_v9 = vpop.f32.mrf.mxu1  ;;  %v1303_v27 = vadd.f32 %v3185_v0, %v4238_v17 }
 0x187   : > { %v1253_v33 = vpop.f32.mrf.mxu0 }
 0x188   : > { %v1461_v34 = vpop.f32.mrf.mxu1 }
 0x18b   : > { %v3188_v36 = vpop.f32.mrf.mxu0  ;;  %v3247_v47 = vpop.f32.mrf.mxu1 }
 0x18d   : > { %v1263_v37 = vpop.f32.mrf.mxu0  ;;  %v1471_v38 = vpop.f32.mrf.mxu1 }
 0x191   : > { %v3191_v41 = vpop.f32.mrf.mxu0  ;;  %v3250_v42 = vpop.f32.mrf.mxu1 }
 0x193   : > { %v1273_v43 = vpop.f32.mrf.mxu0  ;;  %v1481_v8 = vpop.f32.mrf.mxu1 }
 0x196   : > { %v3194_v18 = vpop.f32.mrf.mxu0 }
 0x197   : > { %v3253_v45 = vpop.f32.mrf.mxu1  ;;  %v1309_v17 = vadd.f32 %v3194_v18, %v4256_v46 }
 0x198   : > { %v1283_v48 = vpop.f32.mrf.mxu0 }
 0x199   : > { %v1491_v50 = vpop.f32.mrf.mxu1 }
 0x19c   : > { %v3288_v24 = vpop.f32.mrf.mxu0 }
 0x19d   : > { %v3347_v11 = vpop.f32.mrf.mxu1 }
 0x19e   : > { %v1619_v54 = vpop.f32.mrf.mxu0 }
 0x19f   : > { %v1827_v25 = vpop.f32.mrf.mxu1 }
 0x1a0   : > { %v3291_v55 = vpop.f32.mrf.mxu0 }
 0x1a1   : > { %v4291_v58 = vpop.f32.mrf.mxu1  ;;  %v1711_v46 = vadd.f32 %v3291_v55, %v4268_v62 }
 0x1a2   : > { %v1629_v57 = vpop.f32.mrf.mxu0 }
 0x1a3   : > { %v4293_v29 = vpop.f32.mrf.mxu1 }
 0x1a6   : > { %v3294_v60 = vpop.f32.mrf.mxu0  ;;  %v4295_v61 = vpop.f32.mrf.mxu1 }
 0x1a8   : > { %v1639_v32 = vpop.f32.mrf.mxu0  ;;  %v4297_v40 = vpop.f32.mrf.mxu1 }
 0x1a9   : > { %4565 = vst [vmem:[#allocation7_spill] sm:$0xff] %v4297_v40  ;;  %v1307_v40 = vadd.f32 %v3191_v41, %v4250_v12 }
 0x1ab   : > { %v3297_v39 = vpop.f32.mrf.mxu0 }
 0x1ac   : > { %v4299_v2 = vpop.f32.mrf.mxu1 }
 0x1ad   : > { %4566 = vst [vmem:[#allocation8_spill] sm:$0xff] %v4299_v2  ;;  %v1649_v4 = vpop.f32.mrf.mxu0  ;;  %v1304_v2 = vadd.f32 %v1263_v37, %v4247_v31 }
 0x1ae   : > { %v4301_v5 = vpop.f32.mrf.mxu1  ;;  %v1714_v62 = vadd.f32 %v1649_v4, %v4283_v28 }
 0x1af   : > { %4567 = vst [vmem:[#allocation9_spill] sm:$0xff] %v4301_v5  ;;  %v1305_v5 = vadd.f32 %v3188_v36, %v4244_v6  ;;  %v1708_v6 = vadd.f32 %v1619_v54, %v4265_v35  ;;  %v1712_v35 = vadd.f32 %v1639_v32, %v4277_v10  ;;  %v1919_v10 = vadd.f32 %v4291_v58, %v1711_v46 }
 0x1b0   : > { %v4575_v28 = vld [vmem:[#allocation7_spill] sm:$0xff] }
 0x1b1   : > { %v4303_v7 = vpop.f32.mrf.mxu1  ;;  %v1513_v31 = vadd.f32 %v3247_v47, %v1305_v5 }
 0x1b2   : > { %v3300_v52 = vpop.f32.mrf.mxu0  ;;  %4568 = vst [vmem:[#allocation10_spill] sm:$0xff] %v4303_v7 }
 0x1b3   : > { %v4307_v53 = vpop.f32.mrf.mxu1 }
 0x1b4   : > { %v4305_v49 = vpop.f32.mrf.mxu0  ;;  %4570 = vst [vmem:[#allocation12_spill] sm:$0xff] %v4307_v53 }
 0x1b5   : > { %4569 = vst [vmem:[#allocation11_spill] sm:$0xff] %v4305_v49  ;;  %v1302_v49 = vadd.f32 %v1253_v33, %v4241_v20  ;;  %v1308_v20 = vadd.f32 %v1283_v48, %v4259_v21  ;;  %v1709_v33 = vadd.f32 %v3288_v24, %v4262_v56  ;;  %v1710_v21 = vadd.f32 %v1629_v57, %v4271_v1  ;;  %v4353_v1 = vld [vmem:[%s4561_s2] ss:$0 sm:$0xff]  ;;  %v2168_v57 = vld [vmem:[%s3648_s8 + $0x8] sm:$0xff] }
 0x1b6   : > { %v1713_v56 = vadd.f32 %v3294_v60, %v4274_v44  ;;  %v2178_v60 = vld [vmem:[%s3648_s8 + $0x58] sm:$0xff] }
 0x1b7   : > { %v3362_v14 = vpop.f32.mrf.mxu1  ;;  %v4345_v18 = vadd.f32 %v1491_v50, %v1308_v20  ;;  %v1917_v47 = vadd.f32 %v3347_v11, %v1709_v33  ;;  %v4580_v20 = vld [vmem:[#allocation6_spill] sm:$0xff] }
 0x1b8   : > { %v3303_v13 = vpop.f32.mrf.mxu0 }
 0x1b9   : > { %v1877_v63 = vpop.f32.mrf.mxu1 }
 0x1ba   : > { %v1669_v51 = vpop.f32.mrf.mxu0 }
 0x1bc   : > { %v4581_v33 = vld [vmem:[#allocation11_spill] sm:$0xff] }
 0x1bd   : > { %v3306_v19 = vpop.f32.mrf.mxu0  ;;  %v4309_v3 = vpop.f32.mrf.mxu1 }
 0x1be   : > { %4571 = vst [vmem:[#allocation13_spill] sm:$0xff] %v4309_v3  ;;  %v1511_v3 = vadd.f32 %v3244_v9, %v1303_v27  ;;  %v1512_v9 = vadd.f32 %v1471_v38, %v1304_v2  ;;  %v1916_v38 = vadd.f32 %v1827_v25, %v1708_v6  ;;  %v4358_v25 = vadd.f32 %v4295_v61, %v1713_v56  ;;  %v4577_v61 = vld [vmem:[#allocation9_spill] sm:$0xff] }
 0x1bf   : > { %v1679_v22 = vpop.f32.mrf.mxu0  ;;  %v4311_v59 = vpop.f32.mrf.mxu1  ;;  %v1716_v6 = vadd.f32 %v4581_v33, %v4580_v20 }
 0x1c0   : > { %4572 = vst [vmem:[#allocation14_spill] sm:$0xff] %v4311_v59  ;;  %v1306_v59 = vadd.f32 %v1273_v43, %v4253_v15  ;;  %v1719_v36 = vadd.f32 %v3303_v13, %v1511_v3  ;;  %v1515_v15 = vadd.f32 %v3250_v42, %v1307_v40  ;;  %v4340_v43 = vadd.f32 %v3253_v45, %v1309_v17  ;;  %v2177_v17 = vld [vmem:[%s3648_s8 + $0x50] sm:$0xff] }
 0x1c1   : > { %v1715_v42 = vadd.f32 %v3297_v39, %v4280_v16  ;;  %v1721_v45 = vadd.f32 %v3306_v19, %v1513_v31  ;;  %v1918_v16 = vadd.f32 %v4293_v29, %v1710_v21  ;;  %v1720_v55 = vadd.f32 %v1679_v22, %v1512_v9  ;;  %v4576_v29 = vld [vmem:[#allocation8_spill] sm:$0xff] }
 0x1c2   : > { %v1927_v48 = vadd.f32 %v3362_v14, %v1719_v36 }
 0x1c3   : > { %v4313_v23 = vpop.f32.mrf.mxu0  ;;  %v4316_v30 = vpop.f32.mrf.mxu1  ;;  %v4368_v5 = vadd.f32 %v4576_v29, %v1715_v42 }
 0x1c4   : > { %4573 = vst [vmem:[#allocation15_spill] sm:$0xff] %v4313_v23  ;;  %4574 = vst [vmem:[#allocation16_spill] sm:$0xff] %v4316_v30  ;;  %v1510_v23 = vadd.f32 %v1461_v34, %v1302_v49  ;;  %v1514_v34 = vadd.f32 %v1481_v8, %v1306_v59  ;;  %v1717_v8 = vadd.f32 %v3300_v52, %v4286_v26  ;;  %v4578_v49 = vld [vmem:[#allocation10_spill] sm:$0xff] }
 0x1c5   : > { %v4319_v7 = vpop.f32.mrf.mxu0  ;;  %v4321_v53 = vpop.f32.mrf.mxu1  ;;  %v4361_v26 = vadd.f32 %v4575_v28, %v1712_v35  ;;  %v4371_v52 = vadd.f32 %v4577_v61, %v1714_v62  ;;  %v4579_v14 = vld [vmem:[#allocation13_spill] sm:$0xff] }
 0x1c6   : > { %v1718_v41 = vadd.f32 %v1669_v51, %v1510_v23  ;;  %v4374_v13 = vadd.f32 %v4578_v49, %v1717_v8  ;;  %v1929_v51 = vadd.f32 %v4579_v14, %v1721_v45  ;;  %v2167_v23 = vld [vmem:[%s3648_s8] sm:$0xff]  ;;  %v2170_v45 = vld [vmem:[%s3648_s8 + $0x18] sm:$0xff] }
 0x1c7   : > { %v4582_v36 = vld [vmem:[#allocation14_spill] sm:$0xff] }
 0x1c8   : > { %v4328_v0 = vpop.f32.mrf.mxu0  ;;  %v1926_v50 = vadd.f32 %v1877_v63, %v1718_v41  ;;  %v1928_v31 = vadd.f32 %v4582_v36, %v1720_v55 }
 0x1c9   : > { %v4330_v30 = vpop.f32.mrf.mxu1  ;;  %v1725_v55 = vadd.f32 %v4328_v0, %v4340_v43 }
 0x1ca   : > { %v4335_v37 = vpop.f32.mrf.mxu0 }
 0x1cb   : > { %v4337_v12 = vpop.f32.mrf.mxu1  ;;  %v4583_v56 = vld [vmem:[#allocation15_spill] sm:$0xff]  ;;  %v4585_v0 = vld [vmem:[#allocation16_spill] sm:$0xff] }
 0x1cc   : > { %v1723_v35 = vadd.f32 %v4583_v56, %v1515_v15 }
 0x1ce   : > { %v3406_v24 = vpop.f32.mrf.mxu0  ;;  %v1931_v43 = vadd.f32 %v4585_v0, %v1723_v35 }
 0x1cf   : > { %v3421_v44 = vpop.f32.mrf.mxu1  ;;  %v2125_v11 = vadd.f32 %v3406_v24, %v1917_v47  ;;  %v1722_v47 = vadd.f32 %v4319_v7, %v1514_v34 }
 0x1d0   : > { %v2135_v54 = vadd.f32 %v3421_v44, %v1927_v48  ;;  %v2035_v32 = vpop.f32.mrf.mxu0  ;;  %v2180_v44 = vld [vmem:[%s3648_s8 + $0x68] sm:$0xff] }
 0x1d1   : > { %v2085_v40 = vpop.f32.mrf.mxu1  ;;  %v2150_v58 = vadd.f32 %v4353_v1, %v2125_v11  ;;  %v2124_v2 = vadd.f32 %v2035_v32, %v1916_v38  ;;  %v1930_v49 = vadd.f32 %v4321_v53, %v1722_v47  ;;  %v1933_v53 = vadd.f32 %v4330_v30, %v1725_v55  ;;  %v2174_v55 = vld [vmem:[%s3648_s8 + $0x38] sm:$0xff] }
 0x1d2   : > { %v2160_v39 = vadd.f32 %v4353_v1, %v2135_v54  ;;  %v2134_v4 = vadd.f32 %v2085_v40, %v1926_v50  ;;  %v3409_v63 = vpop.f32.mrf.mxu0  ;;  %v4584_v54 = vld [vmem:[#allocation12_spill] sm:$0xff] }
 0x1d3   : > { %v3424_v19 = vpop.f32.mrf.mxu1  ;;  %v4377_v3 = vadd.f32 %v2168_v57, %v2150_v58  ;;  %v2149_v59 = vadd.f32 %v4353_v1, %v2124_v2  ;;  %v2127_v9 = vadd.f32 %v3409_v63, %v1919_v10  ;;  %v4401_v28 = vadd.f32 %v4584_v54, %v1716_v6  ;;  %v2179_v2 = vld [vmem:[%s3648_s8 + $0x60] sm:$0xff] }
 0x1d4   : > { %v4379_v22 = vadd.f32 %v2178_v60, %v2160_v39  ;;  %v2159_v27 = vadd.f32 %v4353_v1, %v2134_v4  ;;  %v2137_v46 = vadd.f32 %v3424_v19, %v1929_v51  ;;  %v2045_v41 = vpop.f32.mrf.mxu0  ;;  %v2169_v39 = vld [vmem:[%s3648_s8 + $0x10] sm:$0xff]  ;;  %v1724_v6 = vadd.f32 %v4335_v37, %v4345_v18 }
 0x1d5   : > { %v2095_v21 = vpop.f32.mrf.mxu1  ;;  %v2222_v38 = vmin.f32 %v4377_v3, 0.0  ;;  %v4392_v42 = vadd.f32 %v2167_v23, %v2149_v59  ;;  %v2152_v8 = vadd.f32 %v4353_v1, %v2127_v9  ;;  %v2126_v7 = vadd.f32 %v2045_v41, %v1918_v16  ;;  %v2172_v9 = vld [vmem:[%s3648_s8 + $0x28] sm:$0xff] }
 0x1d6   : > { %v2232_v48 = vmin.f32 %v4379_v22, 0.0  ;;  %v4394_v62 = vadd.f32 %v2177_v17, %v2159_v27  ;;  %v2162_v24 = vadd.f32 %v4353_v1, %v2137_v46  ;;  %v3412_v10 = vpop.f32.mrf.mxu0  ;;  %v2136_v34 = vadd.f32 %v2095_v21, %v1928_v31  ;;  %v2182_v46 = vld [vmem:[%s3648_s8 + $0x78] sm:$0xff] }
 0x1d7   : > { %v2241_v15 = vmul.f32 1.442695, %v2222_v38  ;;  %v3427_v11 = vpop.f32.mrf.mxu1  ;;  %v2221_v57 = vmin.f32 %v4392_v42, 0.0  ;;  %v4407_v40 = vadd.f32 %v2170_v45, %v2152_v8  ;;  %v2151_v16 = vadd.f32 %v4353_v1, %v2126_v7  ;;  %v2171_v8 = vld [vmem:[%s3648_s8 + $0x20] sm:$0xff]  ;;  %v2181_v45 = vld [vmem:[%s3648_s8 + $0x70] sm:$0xff] }
 0x1d8   : > { %v2261_v50 = vmul.f32 1.442695, %v2232_v48  ;;  %v2231_v60 = vmin.f32 %v4394_v62, 0.0  ;;  %v2055_v32 = vpop.f32.mrf.mxu0  ;;  %v4409_v58 = vadd.f32 %v2180_v44, %v2162_v24  ;;  %v2161_v61 = vadd.f32 %v4353_v1, %v2136_v34 }
 0x1d9   : > { %3504 = vpow2.f32 %v2241_v15  ;;  %v2239_v4 = vmul.f32 1.442695, %v2221_v57  ;;  %v2224_v14 = vmin.f32 %v4407_v40, 0.0  ;;  %v2105_v63 = vpop.f32.mrf.mxu1  ;;  %v4419_v59 = vadd.f32 %v2169_v39, %v2151_v16  ;;  %v2184_v57 = vld [vmem:[%s3648_s8 + $0x88] sm:$0xff] }
 0x1da   : > { %3506 = vpow2.f32 %v2261_v50  ;;  %v2259_v29 = vmul.f32 1.442695, %v2231_v60  ;;  %v2234_v51 = vmin.f32 %v4409_v58, 0.0  ;;  %v3415_v19 = vpop.f32.mrf.mxu0  ;;  %v4421_v23 = vadd.f32 %v2179_v2, %v2161_v61 }
 0x1db   : > { %3508 = vpow2.f32 %v2239_v4  ;;  %v2129_v27 = vadd.f32 %v3412_v10, %v4358_v25  ;;  %v2245_v17 = vmul.f32 1.442695, %v2224_v14  ;;  %v2139_v33 = vadd.f32 %v3427_v11, %v1931_v43  ;;  %v3430_v56 = vpop.f32.mrf.mxu1 }
 0x1dc   : > { %3510 = vpow2.f32 %v2259_v29  ;;  %v2265_v20 = vmul.f32 1.442695, %v2234_v51  ;;  %v2223_v36 = vmin.f32 %v4419_v59, 0.0  ;;  %v2233_v31 = vmin.f32 %v4421_v23, 0.0  ;;  %v2065_v30 = vpop.f32.mrf.mxu0 }
 0x1dd   : > { %3512 = vpow2.f32 %v2245_v17  ;;  %v2154_v25 = vadd.f32 %v4353_v1, %v2129_v27  ;;  %v2164_v41 = vadd.f32 %v4353_v1, %v2139_v33  ;;  %v2128_v21 = vadd.f32 %v2055_v32, %v4361_v26  ;;  %v2115_v7 = vpop.f32.mrf.mxu1 }
 0x1de   : > { %3514 = vpow2.f32 %v2265_v20  ;;  %v2243_v35 = vmul.f32 1.442695, %v2223_v36  ;;  %v2263_v37 = vmul.f32 1.442695, %v2233_v31  ;;  %v2138_v18 = vadd.f32 %v2105_v63, %v1930_v49  ;;  %v3418_v51 = vpop.f32.mrf.mxu0  ;;  %v2173_v20 = vld [vmem:[%s3648_s8 + $0x30] sm:$0xff] }
 0x1df   : > { %v4434_v47 = vadd.f32 %v2172_v9, %v2154_v25  ;;  %v4436_v38 = vadd.f32 %v2182_v46, %v2164_v41  ;;  %v2153_v48 = vadd.f32 %v4353_v1, %v2128_v21  ;;  %v2131_v24 = vadd.f32 %v3415_v19, %v4368_v5  ;;  %v2183_v9 = vld [vmem:[%s3648_s8 + $0x80] sm:$0xff] }
 0x1e0   : > { %3516 = vpow2.f32 %v2243_v35  ;;  %v2163_v26 = vadd.f32 %v4353_v1, %v2138_v18  ;;  %v2141_v44 = vadd.f32 %v3430_v56, %v1933_v53  ;;  %v2130_v10 = vadd.f32 %v2065_v30, %v4371_v52  ;;  %v2075_v56 = vpop.f32.mrf.mxu0 }
 0x1e1   : > { %v1932_v15 = vadd.f32 %v4337_v12, %v1724_v6  ;;  %vm2204_vm0 = vcmp.gt.f32.partialorder %v4377_v3, 0.0  ;;  %3518 = vpow2.f32 %v2263_v37  ;;  %v2226_v50 = vmin.f32 %v4434_v47, 0.0 }
 0x1e2   : > { %v2236_v34 = vmin.f32 %v4436_v38, 0.0  ;;  %v4448_v11 = vadd.f32 %v2171_v8, %v2153_v48  ;;  %v4450_v5 = vadd.f32 %v2181_v45, %v2163_v26  ;;  %v2156_v54 = vadd.f32 %v4353_v1, %v2131_v24 }
 0x1e3   : > { %vm2214_vm1 = vcmp.gt.f32.partialorder %v4379_v22, 0.0  ;;  %vm2203_vm2 = vcmp.gt.f32.partialorder %v4392_v42, 0.0  ;;  %v2249_v12 = vmul.f32 1.442695, %v2226_v50  ;;  %v2166_v52 = vadd.f32 %v4353_v1, %v2141_v44 }
 0x1e4   : > { %v2269_v32 = vmul.f32 1.442695, %v2236_v34  ;;  %v2225_v16 = vmin.f32 %v4448_v11, 0.0  ;;  %v2155_v39 = vadd.f32 %v4353_v1, %v2130_v10  ;;  %v2140_v2 = vadd.f32 %v2115_v7, %v1932_v15 }
 0x1e5   : > { %3520 = vpow2.f32 %v2249_v12  ;;  %v2235_v61 = vmin.f32 %v4450_v5, 0.0  ;;  %v4461_v0 = vadd.f32 %v2174_v55, %v2156_v54  ;;  %v4463_v14 = vadd.f32 %v2184_v57, %v2166_v52  ;;  %v2175_v55 = vld [vmem:[%s3648_s8 + $0x40] sm:$0xff] }
 0x1e6   : > { %v3505_v60 = vpop.eup %3504  ;;  %3522 = vpow2.f32 %v2269_v32  ;;  %v2247_v49 = vmul.f32 1.442695, %v2225_v16  ;;  %vm2213_vm3 = vcmp.gt.f32.partialorder %v4394_v62, 0.0  ;;  %vm2206_vm4 = vcmp.gt.f32.partialorder %v4407_v40, 0.0 }
 0x1e7   : > { %v3507_v4 = vpop.eup %3506  ;;  %v2574_v29 = vadd.f32 -1.0, %v3505_v60  ;;  %v2267_v27 = vmul.f32 1.442695, %v2235_v61  ;;  %v2228_v17 = vmin.f32 %v4461_v0, 0.0  ;;  %v2238_v31 = vmin.f32 %v4463_v14, 0.0 }
 0x1e8   : > { %v2584_v43 = vadd.f32 -1.0, %v3507_v4  ;;  %v3509_v63 = vpop.eup %3508  ;;  %3524 = vpow2.f32 %v2247_v49  ;;  %v2165_v41 = vadd.f32 %v4353_v1, %v2140_v2  ;;  %v2133_v21 = vadd.f32 %v3418_v51, %v4374_v13  ;;  %v2176_v13 = vld [vmem:[%s3648_s8 + $0x48] sm:$0xff] }
 0x1e9   : > { %v2294_v19 = vsel %vm2204_vm0, %v4377_v3, %v2574_v29  ;;  %v3511_v33 = vpop.eup %3510  ;;  %v2573_v6 = vadd.f32 -1.0, %v3509_v63  ;;  %3526 = vpow2.f32 %v2267_v27  ;;  %v2253_v36 = vmul.f32 1.442695, %v2228_v17 }
 0x1ea   : > { %2312 = vst [vmem:[%s3653_s11 + $0x8] sm:$0xff] %v2294_v19  ;;  %v2304_v53 = vsel %vm2214_vm1, %v4379_v22, %v2584_v43  ;;  %v2583_v3 = vadd.f32 -1.0, %v3511_v33  ;;  %v3513_v46 = vpop.eup %3512  ;;  %v4482_v22 = vadd.f32 %v2173_v20, %v2155_v39  ;;  %v2273_v18 = vmul.f32 1.442695, %v2238_v31 }
 0x1eb   : > { %2322 = vst [vmem:[%s3653_s11 + $0x58] sm:$0xff] %v2304_v53  ;;  %v2293_v25 = vsel %vm2203_vm2, %v4392_v42, %v2573_v6  ;;  %v3515_v30 = vpop.eup %3514  ;;  %v2576_v37 = vadd.f32 -1.0, %v3513_v46  ;;  %3528 = vpow2.f32 %v2253_v36  ;;  %vm2216_vm5 = vcmp.gt.f32.partialorder %v4409_v58, 0.0 }
 0x1ec   : > { %2311 = vst [vmem:[%s3653_s11] sm:$0xff] %v2293_v25  ;;  %v2303_v35 = vsel %vm2213_vm3, %v4394_v62, %v2583_v3  ;;  %v2586_v42 = vadd.f32 -1.0, %v3515_v30  ;;  %v2227_v48 = vmin.f32 %v4482_v22, 0.0  ;;  %v4493_v8 = vadd.f32 %v2183_v9, %v2165_v41 }
 0x1ed   : > { %2321 = vst [vmem:[%s3653_s11 + $0x50] sm:$0xff] %v2303_v35  ;;  %v3517_v45 = vpop.eup %3516  ;;  %v2296_v62 = vsel %vm2206_vm4, %v4407_v40, %v2576_v37  ;;  %3530 = vpow2.f32 %v2273_v18  ;;  %v2158_v24 = vadd.f32 %v4353_v1, %v2133_v21  ;;  %v2132_v26 = vadd.f32 %v2075_v56, %v4401_v28 }
 0x1ee   : > { %v3519_v44 = vpop.eup %3518  ;;  %2314 = vst [vmem:[%s3653_s11 + $0x18] sm:$0xff] %v2296_v62  ;;  %v2306_v10 = vsel %vm2216_vm5, %v4409_v58, %v2586_v42  ;;  %vm2205_vm6 = vcmp.gt.f32.partialorder %v4419_v59, 0.0  ;;  %v2575_v15 = vadd.f32 -1.0, %v3517_v45  ;;  %v2251_v50 = vmul.f32 1.442695, %v2227_v48 }
 0x1ef   : > { %2324 = vst [vmem:[%s3653_s11 + $0x68] sm:$0xff] %v2306_v10  ;;  %v2585_v7 = vadd.f32 -1.0, %v3519_v44  ;;  %v2237_v34 = vmin.f32 %v4493_v8, 0.0  ;;  %v4506_v40 = vadd.f32 %v2176_v13, %v2158_v24  ;;  %v2157_v54 = vadd.f32 %v4353_v1, %v2132_v26 }
 0x1f0   : > { %v2295_v28 = vsel %vm2205_vm6, %v4419_v59, %v2575_v15  ;;  %vm2215_vm7 = vcmp.gt.f32.partialorder %v4421_v23, 0.0  ;;  %3532 = vpow2.f32 %v2251_v50  ;;  %vm2208_vm8 = vcmp.gt.f32.partialorder %v4434_v47, 0.0 }
 0x1f1   : > { %2313 = vst [vmem:[%s3653_s11 + $0x10] sm:$0xff] %v2295_v28  ;;  %v2305_v58 = vsel %vm2215_vm7, %v4421_v23, %v2585_v7  ;;  %v2271_v12 = vmul.f32 1.442695, %v2237_v34  ;;  %v2230_v52 = vmin.f32 %v4506_v40, 0.0  ;;  %v2193_v60 = vadd.f32 %v2175_v55, %v2157_v54 }
 0x1f2   : > { %v3521_v57 = vpop.eup %3520  ;;  %2323 = vst [vmem:[%s3653_s11 + $0x60] sm:$0xff] %v2305_v58  ;;  %vm2218_vm9 = vcmp.gt.f32.partialorder %v4436_v38, 0.0  ;;  %vm2207_vm10 = vcmp.gt.f32.partialorder %v4448_v11, 0.0  ;;  %vm2217_vm11 = vcmp.gt.f32.partialorder %v4450_v5, 0.0  ;;  %vm2210_vm12 = vcmp.gt.f32.partialorder %v4461_v0, 0.0 }
 0x1f3   : > { %v3523_v32 = vpop.eup %3522  ;;  %v2578_v16 = vadd.f32 -1.0, %v3521_v57  ;;  %3534 = vpow2.f32 %v2271_v12  ;;  %v2257_v1 = vmul.f32 1.442695, %v2230_v52  ;;  %v2229_v39 = vmin.f32 %v2193_v60, 0.0 }
 0x1f4   : > { %v2588_v59 = vadd.f32 -1.0, %v3523_v32  ;;  %vm2220_vm13 = vcmp.gt.f32.partialorder %v4463_v14, 0.0  ;;  %vm2209_vm14 = vcmp.gt.f32.partialorder %v4482_v22, 0.0  ;;  %vm2219_vm15 = vcmp.gt.f32.partialorder %v4493_v8, 0.0 }
 0x1f5   : > { %v3525_v2 = vpop.eup %3524  ;;  %v2298_v23 = vsel %vm2208_vm8, %v4434_v47, %v2578_v16  ;;  %3536 = vpow2.f32 %v2257_v1  ;;  %v2255_v43 = vmul.f32 1.442695, %v2229_v39  ;;  %vm2212_vm0 = vcmp.gt.f32.partialorder %v4506_v40, 0.0 }
 0x1f6   : > { %v3527_v4 = vpop.eup %3526  ;;  %2316 = vst [vmem:[%s3653_s11 + $0x28] sm:$0xff] %v2298_v23  ;;  %v2308_v29 = vsel %vm2218_vm9, %v4436_v38, %v2588_v59  ;;  %v2577_v61 = vadd.f32 -1.0, %v3525_v2  ;;  %vm2211_vm1 = vcmp.gt.f32.partialorder %v2193_v60, 0.0 }
 0x1f7   : > { %2326 = vst [vmem:[%s3653_s11 + $0x78] sm:$0xff] %v2308_v29  ;;  %v2587_v49 = vadd.f32 -1.0, %v3527_v4  ;;  %3538 = vpow2.f32 %v2255_v43 }
 0x1f8   : > { %v3529_v51 = vpop.eup %3528  ;;  %v2297_v63 = vsel %vm2207_vm10, %v4448_v11, %v2577_v61 }
 0x1f9   : > { %2315 = vst [vmem:[%s3653_s11 + $0x20] sm:$0xff] %v2297_v63  ;;  %v2307_v47 = vsel %vm2217_vm11, %v4450_v5, %v2587_v49  ;;  %v2580_v19 = vadd.f32 -1.0, %v3529_v51 }
 0x1fa   : > { %v3531_v38 = vpop.eup %3530  ;;  %2325 = vst [vmem:[%s3653_s11 + $0x70] sm:$0xff] %v2307_v47 }
 0x1fb   : > { %v2300_v27 = vsel %vm2210_vm12, %v4461_v0, %v2580_v19  ;;  %v2590_v17 = vadd.f32 -1.0, %v3531_v38 }
 0x1fc   : > { %2318 = vst [vmem:[%s3653_s11 + $0x38] sm:$0xff] %v2300_v27 }
 0x1fd   : > { %v3533_v11 = vpop.eup %3532  ;;  %v2310_v20 = vsel %vm2220_vm13, %v4463_v14, %v2590_v17 }
 0x1fe   : > { %2328 = vst [vmem:[%s3653_s11 + $0x88] sm:$0xff] %v2310_v20  ;;  %v2579_v33 = vadd.f32 -1.0, %v3533_v11 }
 0x200   : > { %v3535_v5 = vpop.eup %3534  ;;  %v2299_v53 = vsel %vm2209_vm14, %v4482_v22, %v2579_v33 }
 0x201   : > { %2317 = vst [vmem:[%s3653_s11 + $0x30] sm:$0xff] %v2299_v53  ;;  %v2589_v6 = vadd.f32 -1.0, %v3535_v5 }
 0x202   : > { %v3537_v0 = vpop.eup %3536 }
 0x203   : > { %v2309_v3 = vsel %vm2219_vm15, %v4493_v8, %v2589_v6  ;;  %v2582_v36 = vadd.f32 -1.0, %v3537_v0 }
 0x204   : > { %2327 = vst [vmem:[%s3653_s11 + $0x80] sm:$0xff] %v2309_v3  ;;  %v3539_v14 = vpop.eup %3538 }
 0x205   : > { %v2302_v31 = vsel %vm2212_vm0, %v4506_v40, %v2582_v36  ;;  %v2581_v9 = vadd.f32 -1.0, %v3539_v14 }
 0x206   : > { %2320 = vst [vmem:[%s3653_s11 + $0x48] sm:$0xff] %v2302_v31 }
 0x207   : > { %v2301_v46 = vsel %vm2211_vm1, %v2193_v60, %v2581_v9 }
 0x208   : > { %2319 = vst [vmem:[%s3653_s11 + $0x40] sm:$0xff] %v2301_v46 }
 0x209 PF: > { %s14_s19 = sadd.s32 1, %s3580_s19   ;;  %s4586_s15 = smov %s3572_s17 }
 0x20a   : > { %p11_p7 = scmp.ge.s32.totalorder %s14_s19, 6   ;;  %s4587_s16 = smov %s3576_s18 }
 0x20b   : > { %s4588_s17 = smov %s4591_s20  ;;  %s4589_s18 = smov %s4595_s21 }
 0x20c   :  { %13 = sbr.rel (!%p11_p7) target bundleno = 3 (0x3), region = 113 }
 0x211   :  { %2359 = vsyncmov [#allocation3] }
 0x214   :  { %s2360_s8 = vpop.sfrf %2359 }
 0x215   :  { %p2593_p8 = scmp.ne.s32.totalorder %s2360_s8, 0 }
 0x217   :  { %2364 = shalt.err (%p2593_p8)  }

// kernel: decoder_basic_block.2
= control target key start
LH: loop header
LB: loop body
LE: loop exit
PB: predicated region body
PF: predicated region fallthrough
CT: control target
= control target key end

     0   :  { %s3483_s12 = smov 0   ;;  %s3485_s13 = smov 0   ;;  %s4394_s0 = inlined_call_operand.vmem [shape: f32[672,128], index: 0, kind: input, shape index: {}]   ;;  %s4395_s1 = inlined_call_operand.vmem [shape: f32[9,128,128], index: 1, kind: input, shape index: {}]   ;;  %s4396_s2 = inlined_call_operand.vmem [shape: f32[1,128], index: 2, kind: input, shape index: {}]   ;;  %s4397_s3 = inlined_call_operand.vmem [shape: f32[2,288,128], index: 3, kind: output, shape index: {}]  }
   0x1   :  { %s3487_s14 = smov 0   ;;  %s3489_s15 = smov 0  }
   0x2   :  { %s3491_s16 = smov 0  }
   0x3 LB: > { %s22_s17 = sadd.s32 1, %s3453_s14  ;;  %s25_s18 = sadd.s32 1, %s3457_s15  ;;  %s3461_s16 = sphi %s3491_s16, %s13_s16   ;;  %s3457_s15 = sphi %s3489_s15, %s4425_s15   ;;  %s3453_s14 = sphi %s3487_s14, %s4424_s14   ;;  %s3449_s13 = sphi %s3485_s13, %s4423_s13   ;;  %s3445_s12 = sphi %s3483_s12, %s4422_s12  }
   0x4   : > { %p23_p0 = scmp.ge.s32.totalorder %s22_s17, 2  ;;  %p2323_p1 = scmp.ge.s32.totalorder %s3461_s16, 1 }
   0x5   : > { %p117_p2 = scmp.lt.s32.totalorder %s3461_s16, 5 }
   0x6   : > { %s4427_s17 = smov (%p23_p0, %s22_s17), 0  ;;  %s4429_s18 = smov (!%p23_p0, %s25_s18), %s3457_s15 }
   0x7   : > { %p118_p3 = pnand %p2323_p1, %p117_p2  ;;  %p27_p4 = scmp.ge.s32.totalorder %s4429_s18, 2 }
   0x9   : > { %s4431_s18 = smov (%p27_p4, %s4429_s18), 0  ;;  %121 = sbr.rel (%p118_p3) target bundleno = 516 (0x204), region = 28 }
   0xe   : > { %s138_s19 = smul.u32 18, %s3445_s12  ;;  %p139_p5 = scmp.lt.s32.totalorder %s3449_s13, 1 }
   0xf   : > { %s148_s20 = smul.u32 336, %s3449_s13 }
  0x10   : > { %s4433_s13 = smov (!%p139_p5, %s3449_s13), 1  ;;  %p141_p6 = scmp.lt.s32.totalorder %s138_s19, 35 }
  0x11   : > { %s149_s21 = smul.u32 144, %s3445_s12 }
  0x12   : > { %s3344_s22 = smul.u32 36, %s4433_s13  ;;  %s4435_s19 = smov (!%p141_p6, %s138_s19), 35 }
  0x13   : > { %s150_s23 = sadd.s32 %s149_s21, %s148_s20 }
  0x14   : > { %s144_s24 = sadd.s32 %s3344_s22, %s4435_s19  ;;  %s3516_s27 = scalar_lea.vmem %s4394_s0, %s150_s23 }
  0x15   : > { %s2324_s28 = sshll.u32 %s144_s24, 3  ;;  %v185_v0 = vld [vmem:[%s3516_s27] sm:$0xff]  ;;  %v187_v1 = vld [vmem:[%s3516_s27 + $0x8] sm:$0xff]  ;;  %v189_v2 = vld [vmem:[%s3516_s27 + $0x10] sm:$0xff] }
  0x16   : > { %s3524_s4 = scalar_lea.vmem %s4397_s3, %s2324_s28  ;;  %186 = vst [vmem:[#allocation2] sm:$0xff] %v185_v0  ;;  %188 = vst [vmem:[#allocation2 + $0x8] sm:$0xff] %v187_v1  ;;  %v191_v3 = vld [vmem:[%s3516_s27 + $0x18] sm:$0xff]  ;;  %v193_v4 = vld [vmem:[%s3516_s27 + $0x20] sm:$0xff] }
  0x17   : > { %190 = vst [vmem:[#allocation2 + $0x10] sm:$0xff] %v189_v2  ;;  %v195_v5 = vld [vmem:[%s3516_s27 + $0x28] sm:$0xff]  ;;  %192 = vst [vmem:[#allocation2 + $0x18] sm:$0xff] %v191_v3  ;;  %v197_v6 = vld [vmem:[%s3516_s27 + $0x30] sm:$0xff] }
  0x18   : > { %194 = vst [vmem:[#allocation2 + $0x20] sm:$0xff] %v193_v4  ;;  %196 = vst [vmem:[#allocation2 + $0x28] sm:$0xff] %v195_v5  ;;  %v199_v7 = vld [vmem:[%s3516_s27 + $0x38] sm:$0xff]  ;;  %v201_v8 = vld [vmem:[%s3516_s27 + $0x40] sm:$0xff] }
  0x19   : > { %198 = vst [vmem:[#allocation2 + $0x30] sm:$0xff] %v197_v6  ;;  %200 = vst [vmem:[#allocation2 + $0x38] sm:$0xff] %v199_v7  ;;  %v203_v9 = vld [vmem:[%s3516_s27 + $0x48] sm:$0xff]  ;;  %v205_v10 = vld [vmem:[%s3516_s27 + $0x50] sm:$0xff] }
  0x1a   : > { %202 = vst [vmem:[#allocation2 + $0x40] sm:$0xff] %v201_v8  ;;  %v207_v11 = vld [vmem:[%s3516_s27 + $0x58] sm:$0xff]  ;;  %204 = vst [vmem:[#allocation2 + $0x48] sm:$0xff] %v203_v9  ;;  %v209_v12 = vld [vmem:[%s3516_s27 + $0x60] sm:$0xff] }
  0x1b   : > { %206 = vst [vmem:[#allocation2 + $0x50] sm:$0xff] %v205_v10  ;;  %208 = vst [vmem:[#allocation2 + $0x58] sm:$0xff] %v207_v11  ;;  %v211_v13 = vld [vmem:[%s3516_s27 + $0x68] sm:$0xff]  ;;  %v213_v14 = vld [vmem:[%s3516_s27 + $0x70] sm:$0xff] }
  0x1c   : > { %210 = vst [vmem:[#allocation2 + $0x60] sm:$0xff] %v209_v12  ;;  %212 = vst [vmem:[#allocation2 + $0x68] sm:$0xff] %v211_v13  ;;  %v215_v15 = vld [vmem:[%s3516_s27 + $0x78] sm:$0xff]  ;;  %v217_v16 = vld [vmem:[%s3516_s27 + $0x80] sm:$0xff] }
  0x1d   : > { %214 = vst [vmem:[#allocation2 + $0x70] sm:$0xff] %v213_v14  ;;  %v219_v17 = vld [vmem:[%s3516_s27 + $0x88] sm:$0xff]  ;;  %216 = vst [vmem:[#allocation2 + $0x78] sm:$0xff] %v215_v15  ;;  %v221_v18 = vld [vmem:[%s3516_s27 + $0x90] sm:$0xff] }
  0x1e   : > { %218 = vst [vmem:[#allocation2 + $0x80] sm:$0xff] %v217_v16  ;;  %220 = vst [vmem:[#allocation2 + $0x88] sm:$0xff] %v219_v17  ;;  %v223_v19 = vld [vmem:[%s3516_s27 + $0x98] sm:$0xff]  ;;  %v225_v20 = vld [vmem:[%s3516_s27 + $0xa0] sm:$0xff] }
  0x1f   : > { %222 = vst [vmem:[#allocation2 + $0x90] sm:$0xff] %v221_v18  ;;  %224 = vst [vmem:[#allocation2 + $0x98] sm:$0xff] %v223_v19  ;;  %v227_v21 = vld [vmem:[%s3516_s27 + $0xa8] sm:$0xff]  ;;  %v229_v22 = vld [vmem:[%s3516_s27 + $0xb0] sm:$0xff] }
  0x20   : > { %226 = vst [vmem:[#allocation2 + $0xa0] sm:$0xff] %v225_v20  ;;  %228 = vst [vmem:[#allocation2 + $0xa8] sm:$0xff] %v227_v21 }
  0x21   : > { %230 = vst [vmem:[#allocation2 + $0xb0] sm:$0xff] %v229_v22 }
  0x22   : > { %240 = vsyncadd [#allocation3], 3072 }
  0x23   : > { %3441 = dma.done.wait [#allocation3], 3072 }
  0x24   : > { %3442 = vsyncadd [#allocation3], 4294964224  ;;  %v2340_v23 = vld [vmem:[%s4395_s1 + $0xf8] sm:$0xff]  ;;  %v2339_v25 = vld [vmem:[%s4395_s1 + $0xf0] sm:$0xff] }
  0x25   : > { %v277_v24 = vld [vmem:[%s4395_s1 + $0x78] sm:$0xff]  ;;  %2781 = vmatprep.subr.mxu0 %v2340_v23  ;;  %v276_v26 = vld [vmem:[%s4395_s1 + $0x70] sm:$0xff]  ;;  %v2338_v27 = vld [vmem:[%s4395_s1 + $0xe8] sm:$0xff] }
  0x26   : > { %2840 = vmatprep.subr.mxu1 %v277_v24  ;;  %2782 = vmatpush3.msra.mxu0 %v2340_v23  ;;  %v275_v28 = vld [vmem:[%s4395_s1 + $0x68] sm:$0xff]  ;;  %v2337_v29 = vld [vmem:[%s4395_s1 + $0xe0] sm:$0xff]  ;;  %v2336_v31 = vld [vmem:[%s4395_s1 + $0xd8] sm:$0xff] }
  0x27   : > { %2841 = vmatpush3.msra.mxu1 %v277_v24  ;;  %2783 = vmatprep.subr.mxu0 %v2339_v25  ;;  %v274_v30 = vld [vmem:[%s4395_s1 + $0x60] sm:$0xff]  ;;  %v273_v32 = vld [vmem:[%s4395_s1 + $0x58] sm:$0xff]  ;;  %v2335_v33 = vld [vmem:[%s4395_s1 + $0xd0] sm:$0xff] }
  0x28   : > { %2842 = vmatprep.subr.mxu1 %v276_v26  ;;  %2784 = vmatpush3.msra.mxu0 %v2339_v25  ;;  %v272_v34 = vld [vmem:[%s4395_s1 + $0x50] sm:$0xff]  ;;  %v2334_v35 = vld [vmem:[%s4395_s1 + $0xc8] sm:$0xff]  ;;  %v2333_v37 = vld [vmem:[%s4395_s1 + $0xc0] sm:$0xff] }
  0x29   : > { %2843 = vmatpush3.msra.mxu1 %v276_v26  ;;  %2785 = vmatprep.subr.mxu0 %v2338_v27  ;;  %v271_v36 = vld [vmem:[%s4395_s1 + $0x48] sm:$0xff]  ;;  %v270_v38 = vld [vmem:[%s4395_s1 + $0x40] sm:$0xff]  ;;  %v2332_v39 = vld [vmem:[%s4395_s1 + $0xb8] sm:$0xff] }
  0x2a   : > { %2844 = vmatprep.subr.mxu1 %v275_v28  ;;  %2786 = vmatpush3.msra.mxu0 %v2338_v27  ;;  %v269_v40 = vld [vmem:[%s4395_s1 + $0x38] sm:$0xff]  ;;  %v2331_v41 = vld [vmem:[%s4395_s1 + $0xb0] sm:$0xff]  ;;  %v2330_v43 = vld [vmem:[%s4395_s1 + $0xa8] sm:$0xff] }
  0x2b   : > { %2845 = vmatpush3.msra.mxu1 %v275_v28  ;;  %2787 = vmatprep.subr.mxu0 %v2337_v29  ;;  %v268_v42 = vld [vmem:[%s4395_s1 + $0x30] sm:$0xff]  ;;  %v267_v44 = vld [vmem:[%s4395_s1 + $0x28] sm:$0xff]  ;;  %v2329_v45 = vld [vmem:[%s4395_s1 + $0xa0] sm:$0xff] }
  0x2c   : > { %2846 = vmatprep.subr.mxu1 %v274_v30  ;;  %2788 = vmatpush3.msra.mxu0 %v2337_v29  ;;  %v266_v46 = vld [vmem:[%s4395_s1 + $0x20] sm:$0xff]  ;;  %v2328_v47 = vld [vmem:[%s4395_s1 + $0x98] sm:$0xff]  ;;  %v2327_v49 = vld [vmem:[%s4395_s1 + $0x90] sm:$0xff] }
  0x2d   : > { %2847 = vmatpush3.msra.mxu1 %v274_v30  ;;  %2789 = vmatprep.subr.mxu0 %v2336_v31  ;;  %v265_v48 = vld [vmem:[%s4395_s1 + $0x18] sm:$0xff]  ;;  %v264_v50 = vld [vmem:[%s4395_s1 + $0x10] sm:$0xff]  ;;  %v2326_v51 = vld [vmem:[%s4395_s1 + $0x88] sm:$0xff] }
  0x2e   : > { %2848 = vmatprep.subr.mxu1 %v273_v32  ;;  %2790 = vmatpush3.msra.mxu0 %v2336_v31  ;;  %v263_v52 = vld [vmem:[%s4395_s1 + $0x8] sm:$0xff]  ;;  %v2325_v53 = vld [vmem:[%s4395_s1 + $0x80] sm:$0xff]  ;;  %v2356_v59 = vld [vmem:[%s4395_s1 + $0x178] sm:$0xff] }
  0x2f   : > { %2849 = vmatpush3.msra.mxu1 %v273_v32  ;;  %2791 = vmatprep.subr.mxu0 %v2335_v33  ;;  %v262_v54 = vld [vmem:[%s4395_s1] sm:$0xff]  ;;  %v279_v57 = vld [vmem:[#allocation2 + $0x9] sm:$0xff]  ;;  %v280_v60 = vld [vmem:[#allocation2 + $0x11] sm:$0xff] }
  0x30   : > { %2850 = vmatprep.subr.mxu1 %v272_v34  ;;  %2792 = vmatpush3.msra.mxu0 %v2335_v33  ;;  %v278_v55 = vld [vmem:[#allocation2 + $0x1] sm:$0xff]  ;;  %v246_v61 = vld [vmem:[#allocation2 + $0x10] sm:$0xff]  ;;  %v2372_v63 = vld [vmem:[%s4395_s1 + $0x1f8] sm:$0xff] }
  0x31   : > { %2851 = vmatpush3.msra.mxu1 %v272_v34  ;;  %2793 = vmatprep.subr.mxu0 %v2334_v35  ;;  %v244_v56 = vld [vmem:[#allocation2] sm:$0xff]  ;;  %v245_v58 = vld [vmem:[#allocation2 + $0x8] sm:$0xff]  ;;  %v2355_v62 = vld [vmem:[%s4395_s1 + $0x170] sm:$0xff] }
  0x32   : > { %2852 = vmatprep.subr.mxu1 %v271_v36  ;;  %2794 = vmatpush3.msra.mxu0 %v2334_v35  ;;  %v281_v0 = vld [vmem:[#allocation2 + $0x19] sm:$0xff]  ;;  %v2354_v2 = vld [vmem:[%s4395_s1 + $0x168] sm:$0xff]  ;;  %v2371_v3 = vld [vmem:[%s4395_s1 + $0x1f0] sm:$0xff] }
  0x33   : > { %2853 = vmatpush3.msra.mxu1 %v271_v36  ;;  %2795 = vmatprep.subr.mxu0 %v2333_v37  ;;  %v247_v1 = vld [vmem:[#allocation2 + $0x18] sm:$0xff]  ;;  %v282_v4 = vld [vmem:[#allocation2 + $0x21] sm:$0xff]  ;;  %v283_v7 = vld [vmem:[#allocation2 + $0x29] sm:$0xff] }
  0x34   : > { %2854 = vmatprep.subr.mxu1 %v270_v38  ;;  %2796 = vmatpush3.msra.mxu0 %v2333_v37  ;;  %v248_v5 = vld [vmem:[#allocation2 + $0x20] sm:$0xff]  ;;  %v249_v8 = vld [vmem:[#allocation2 + $0x28] sm:$0xff]  ;;  %v2352_v10 = vld [vmem:[%s4395_s1 + $0x158] sm:$0xff] }
  0x35   : > { %2855 = vmatpush3.msra.mxu1 %v270_v38  ;;  %2797 = vmatprep.subr.mxu0 %v2332_v39  ;;  %v2353_v6 = vld [vmem:[%s4395_s1 + $0x160] sm:$0xff]  ;;  %v2370_v9 = vld [vmem:[%s4395_s1 + $0x1e8] sm:$0xff]  ;;  %v284_v12 = vld [vmem:[#allocation2 + $0x31] sm:$0xff] }
  0x36   : > { %2856 = vmatprep.subr.mxu1 %v269_v40  ;;  %2798 = vmatpush3.msra.mxu0 %v2332_v39  ;;  %v2369_v11 = vld [vmem:[%s4395_s1 + $0x1e0] sm:$0xff]  ;;  %v250_v13 = vld [vmem:[#allocation2 + $0x30] sm:$0xff]  ;;  %v251_v15 = vld [vmem:[#allocation2 + $0x38] sm:$0xff] }
  0x37   : > { %2857 = vmatpush3.msra.mxu1 %v269_v40  ;;  %2799 = vmatprep.subr.mxu0 %v2331_v41  ;;  %v285_v14 = vld [vmem:[#allocation2 + $0x39] sm:$0xff]  ;;  %v2351_v16 = vld [vmem:[%s4395_s1 + $0x150] sm:$0xff]  ;;  %v2350_v18 = vld [vmem:[%s4395_s1 + $0x148] sm:$0xff] }
  0x38   : > { %2858 = vmatprep.subr.mxu1 %v268_v42  ;;  %2800 = vmatpush3.msra.mxu0 %v2331_v41  ;;  %v2368_v17 = vld [vmem:[%s4395_s1 + $0x1d8] sm:$0xff]  ;;  %v2367_v19 = vld [vmem:[%s4395_s1 + $0x1d0] sm:$0xff]  ;;  %v286_v20 = vld [vmem:[#allocation2 + $0x41] sm:$0xff] }
  0x39   : > { %2859 = vmatpush3.msra.mxu1 %v268_v42  ;;  %2801 = vmatprep.subr.mxu0 %v2330_v43  ;;  %v252_v21 = vld [vmem:[#allocation2 + $0x40] sm:$0xff]  ;;  %v287_v22 = vld [vmem:[#allocation2 + $0x49] sm:$0xff]  ;;  %v2348_v26 = vld [vmem:[%s4395_s1 + $0x138] sm:$0xff] }
  0x3a   : > { %2860 = vmatprep.subr.mxu1 %v267_v44  ;;  %2802 = vmatpush3.msra.mxu0 %v2330_v43  ;;  %v253_v23 = vld [vmem:[#allocation2 + $0x48] sm:$0xff]  ;;  %v2349_v24 = vld [vmem:[%s4395_s1 + $0x140] sm:$0xff]  ;;  %v288_v28 = vld [vmem:[#allocation2 + $0x51] sm:$0xff] }
  0x3b   : > { %2861 = vmatpush3.msra.mxu1 %v267_v44  ;;  %2803 = vmatprep.subr.mxu0 %v2329_v45  ;;  %v2366_v25 = vld [vmem:[%s4395_s1 + $0x1c8] sm:$0xff]  ;;  %v2365_v27 = vld [vmem:[%s4395_s1 + $0x1c0] sm:$0xff]  ;;  %v254_v29 = vld [vmem:[#allocation2 + $0x50] sm:$0xff] }
  0x3c   : > { %2862 = vmatprep.subr.mxu1 %v266_v46  ;;  %2804 = vmatpush3.msra.mxu0 %v2329_v45  ;;  %v289_v30 = vld [vmem:[#allocation2 + $0x59] sm:$0xff]  ;;  %v2347_v33 = vld [vmem:[%s4395_s1 + $0x130] sm:$0xff]  ;;  %v290_v35 = vld [vmem:[#allocation2 + $0x61] sm:$0xff] }
  0x3d   : > { %2863 = vmatpush3.msra.mxu1 %v266_v46  ;;  %2805 = vmatprep.subr.mxu0 %v2328_v47  ;;  %v255_v31 = vld [vmem:[#allocation2 + $0x58] sm:$0xff]  ;;  %v2363_v34 = vld [vmem:[%s4395_s1 + $0x1b0] sm:$0xff]  ;;  %v256_v36 = vld [vmem:[#allocation2 + $0x60] sm:$0xff] }
  0x3e   : > { %2864 = vmatprep.subr.mxu1 %v265_v48  ;;  %2806 = vmatpush3.msra.mxu0 %v2328_v47  ;;  %v2364_v32 = vld [vmem:[%s4395_s1 + $0x1b8] sm:$0xff]  ;;  %v2346_v37 = vld [vmem:[%s4395_s1 + $0x128] sm:$0xff]  ;;  %v2345_v41 = vld [vmem:[%s4395_s1 + $0x120] sm:$0xff] }
  0x3f   : > { %2865 = vmatpush3.msra.mxu1 %v265_v48  ;;  %2807 = vmatprep.subr.mxu0 %v2327_v49  ;;  %v291_v38 = vld [vmem:[#allocation2 + $0x69] sm:$0xff]  ;;  %v2361_v42 = vld [vmem:[%s4395_s1 + $0x1a0] sm:$0xff]  ;;  %v292_v43 = vld [vmem:[#allocation2 + $0x71] sm:$0xff] }
  0x40   : > { %2866 = vmatprep.subr.mxu1 %v264_v50  ;;  %2808 = vmatpush3.msra.mxu0 %v2327_v49  ;;  %v257_v39 = vld [vmem:[#allocation2 + $0x68] sm:$0xff]  ;;  %v258_v44 = vld [vmem:[#allocation2 + $0x70] sm:$0xff]  ;;  %v2344_v45 = vld [vmem:[%s4395_s1 + $0x118] sm:$0xff] }
  0x41   : > { %2867 = vmatpush3.msra.mxu1 %v264_v50  ;;  %2809 = vmatprep.subr.mxu0 %v2326_v51  ;;  %v2362_v40 = vld [vmem:[%s4395_s1 + $0x1a8] sm:$0xff]  ;;  %v293_v46 = vld [vmem:[#allocation2 + $0x79] sm:$0xff]  ;;  %v2343_v49 = vld [vmem:[%s4395_s1 + $0x110] sm:$0xff] }
  0x42   : > { %2868 = vmatprep.subr.mxu1 %v263_v52  ;;  %2810 = vmatpush3.msra.mxu0 %v2326_v51  ;;  %v259_v47 = vld [vmem:[#allocation2 + $0x78] sm:$0xff]  ;;  %v294_v50 = vld [vmem:[#allocation2 + $0x81] sm:$0xff]  ;;  %v2359_v51 = vld [vmem:[%s4395_s1 + $0x190] sm:$0xff] }
  0x43   : > { %2869 = vmatpush3.msra.mxu1 %v263_v52  ;;  %2811 = vmatprep.subr.mxu0 %v2325_v53  ;;  %v2360_v48 = vld [vmem:[%s4395_s1 + $0x198] sm:$0xff]  ;;  %v260_v52 = vld [vmem:[#allocation2 + $0x80] sm:$0xff] }
  0x44   : > { %2870 = vmatprep.subr.mxu1 %v262_v54  ;;  %2812 = vmatpush3.msra.mxu0 %v2325_v53  ;;  %v295_v53 = vld [vmem:[#allocation2 + $0x89] sm:$0xff] }
  0x45   : > { %2813 = vmatprep.mubr.f32.mxu0 %v278_v55  ;;  %2871 = vmatpush3.msra.mxu1 %v262_v54  ;;  %v261_v54 = vld [vmem:[#allocation2 + $0x88] sm:$0xff] }
  0x46   : > { %2872 = vmatprep.mubr.f32.mxu1 %v244_v56  ;;  %2814 = vmatmul.mubr.f32.vlgmr.msra.gmra.mxu0 %v279_v57  ;;  %v2342_v55 = vld [vmem:[%s4395_s1 + $0x108] sm:$0xff]  ;;  %v2341_v57 = vld [vmem:[%s4395_s1 + $0x100] sm:$0xff] }
  0x47   : > { %2873 = vmatmul.mubr.f32.vlgmr.msra.gmra.mxu1 %v245_v58  ;;  %2899 = vmatprep.subr.mxu0 %v2356_v59  ;;  %v2358_v56 = vld [vmem:[%s4395_s1 + $0x188] sm:$0xff]  ;;  %v2357_v58 = vld [vmem:[%s4395_s1 + $0x180] sm:$0xff] }
  0x48   : > { %2816 = vmatprep.mubr.f32.mxu0 %v280_v60  ;;  %2900 = vmatpush3.msra.mxu0 %v2356_v59  ;;  %v623_v59 = vld [vmem:[#allocation2 + $0x2] sm:$0xff]  ;;  %v831_v60 = vld [vmem:[#allocation2 + $0x12] sm:$0xff] }
  0x49   : > { %2875 = vmatprep.mubr.f32.mxu1 %v246_v61  ;;  %2901 = vmatprep.subr.mxu0 %v2355_v62  ;;  %v624_v61 = vld [vmem:[#allocation2 + $0xa] sm:$0xff] }
  0x4a   : > { %2958 = vmatprep.subr.mxu1 %v2372_v63  ;;  %2817 = vmatmul.mubr.f32.gmra.mxu0 %v281_v0  ;;  %v833_v0 = vld [vmem:[#allocation2 + $0x22] sm:$0xff] }
  0x4b   : > { %2876 = vmatmul.mubr.f32.gmra.mxu1 %v247_v1  ;;  %2902 = vmatpush3.msra.mxu0 %v2355_v62  ;;  %v832_v62 = vld [vmem:[#allocation2 + $0x1a] sm:$0xff]  ;;  %v2387_v1 = vld [vmem:[%s4395_s1 + $0x270] sm:$0xff] }
  0x4c   : > { %2959 = vmatpush3.msra.mxu1 %v2372_v63  ;;  %2903 = vmatprep.subr.mxu0 %v2354_v2  ;;  %v2388_v63 = vld [vmem:[%s4395_s1 + $0x278] sm:$0xff] }
  0x4d   : > { %2960 = vmatprep.subr.mxu1 %v2371_v3  ;;  %2904 = vmatpush3.msra.mxu0 %v2354_v2  ;;  %v2404_v2 = vld [vmem:[%s4395_s1 + $0x2f8] sm:$0xff] }
  0x4e   : > { %2819 = vmatprep.mubr.f32.mxu0 %v282_v4  ;;  %2878 = vmatprep.mubr.f32.mxu1 %v248_v5  ;;  %v2386_v4 = vld [vmem:[%s4395_s1 + $0x268] sm:$0xff]  ;;  %v2403_v5 = vld [vmem:[%s4395_s1 + $0x2f0] sm:$0xff] }
  0x4f   : > { %2905 = vmatprep.subr.mxu0 %v2353_v6  ;;  %2961 = vmatpush3.msra.mxu1 %v2371_v3  ;;  %v834_v3 = vld [vmem:[#allocation2 + $0x2a] sm:$0xff] }
  0x50   : > { %2820 = vmatmul.mubr.f32.gmra.mxu0 %v283_v7  ;;  %2879 = vmatmul.mubr.f32.gmra.mxu1 %v249_v8  ;;  %v2385_v7 = vld [vmem:[%s4395_s1 + $0x260] sm:$0xff] }
  0x51   : > { %2906 = vmatpush3.msra.mxu0 %v2353_v6  ;;  %2962 = vmatprep.subr.mxu1 %v2370_v9  ;;  %v835_v6 = vld [vmem:[#allocation2 + $0x32] sm:$0xff]  ;;  %v836_v8 = vld [vmem:[#allocation2 + $0x3a] sm:$0xff] }
  0x52   : > { %2907 = vmatprep.subr.mxu0 %v2352_v10  ;;  %2963 = vmatpush3.msra.mxu1 %v2370_v9  ;;  %v2402_v9 = vld [vmem:[%s4395_s1 + $0x2e8] sm:$0xff] }
  0x53   : > { %2908 = vmatpush3.msra.mxu0 %v2352_v10  ;;  %2964 = vmatprep.subr.mxu1 %v2369_v11  ;;  %v2384_v10 = vld [vmem:[%s4395_s1 + $0x258] sm:$0xff] }
  0x54   : > { %2822 = vmatprep.mubr.f32.mxu0 %v284_v12  ;;  %2881 = vmatprep.mubr.f32.mxu1 %v250_v13  ;;  %v837_v12 = vld [vmem:[#allocation2 + $0x42] sm:$0xff]  ;;  %v838_v13 = vld [vmem:[#allocation2 + $0x4a] sm:$0xff] }
  0x55   : > { %2965 = vmatpush3.msra.mxu1 %v2369_v11  ;;  %2823 = vmatmul.mubr.f32.gmra.mxu0 %v285_v14  ;;  %v2401_v11 = vld [vmem:[%s4395_s1 + $0x2e0] sm:$0xff]  ;;  %v2383_v14 = vld [vmem:[%s4395_s1 + $0x250] sm:$0xff] }
  0x56   : > { %2882 = vmatmul.mubr.f32.gmra.mxu1 %v251_v15  ;;  %2909 = vmatprep.subr.mxu0 %v2351_v16  ;;  %v2400_v15 = vld [vmem:[%s4395_s1 + $0x2d8] sm:$0xff] }
  0x57   : > { %2966 = vmatprep.subr.mxu1 %v2368_v17  ;;  %2910 = vmatpush3.msra.mxu0 %v2351_v16  ;;  %v2382_v16 = vld [vmem:[%s4395_s1 + $0x248] sm:$0xff] }
  0x58   : > { %2967 = vmatpush3.msra.mxu1 %v2368_v17  ;;  %2911 = vmatprep.subr.mxu0 %v2350_v18  ;;  %v2399_v17 = vld [vmem:[%s4395_s1 + $0x2d0] sm:$0xff] }
  0x59   : > { %2968 = vmatprep.subr.mxu1 %v2367_v19  ;;  %2825 = vmatprep.mubr.f32.mxu0 %v286_v20  ;;  %v2381_v20 = vld [vmem:[%s4395_s1 + $0x240] sm:$0xff] }
  0x5a   : > { %2884 = vmatprep.mubr.f32.mxu1 %v252_v21  ;;  %2912 = vmatpush3.msra.mxu0 %v2350_v18  ;;  %v839_v18 = vld [vmem:[#allocation2 + $0x52] sm:$0xff]  ;;  %v2398_v21 = vld [vmem:[%s4395_s1 + $0x2c8] sm:$0xff] }
  0x5b   : > { %2969 = vmatpush3.msra.mxu1 %v2367_v19  ;;  %2826 = vmatmul.mubr.f32.gmra.mxu0 %v287_v22  ;;  %v840_v19 = vld [vmem:[#allocation2 + $0x5a] sm:$0xff] }
  0x5c   : > { %2885 = vmatmul.mubr.f32.gmra.mxu1 %v253_v23  ;;  %2913 = vmatprep.subr.mxu0 %v2349_v24  ;;  %v2380_v22 = vld [vmem:[%s4395_s1 + $0x238] sm:$0xff]  ;;  %v2397_v23 = vld [vmem:[%s4395_s1 + $0x2c0] sm:$0xff] }
  0x5d   : > { %2970 = vmatprep.subr.mxu1 %v2366_v25  ;;  %2914 = vmatpush3.msra.mxu0 %v2349_v24  ;;  %v841_v24 = vld [vmem:[#allocation2 + $0x62] sm:$0xff] }
  0x5e   : > { %2971 = vmatpush3.msra.mxu1 %v2366_v25  ;;  %2915 = vmatprep.subr.mxu0 %v2348_v26  ;;  %v842_v25 = vld [vmem:[#allocation2 + $0x6a] sm:$0xff] }
  0x5f   : > { %2972 = vmatprep.subr.mxu1 %v2365_v27  ;;  %2828 = vmatprep.mubr.f32.mxu0 %v288_v28  ;;  %v2395_v28 = vld [vmem:[%s4395_s1 + $0x2b0] sm:$0xff] }
  0x60   : > { %2887 = vmatprep.mubr.f32.mxu1 %v254_v29  ;;  %2916 = vmatpush3.msra.mxu0 %v2348_v26  ;;  %v2396_v26 = vld [vmem:[%s4395_s1 + $0x2b8] sm:$0xff] }
  0x61   : > { %2973 = vmatpush3.msra.mxu1 %v2365_v27  ;;  %2829 = vmatmul.mubr.f32.gmra.mxu0 %v289_v30  ;;  %v2379_v27 = vld [vmem:[%s4395_s1 + $0x230] sm:$0xff]  ;;  %v2378_v30 = vld [vmem:[%s4395_s1 + $0x228] sm:$0xff] }
  0x62   : > { %2888 = vmatmul.mubr.f32.gmra.mxu1 %v255_v31  ;;  %2974 = vmatprep.subr.mxu1 %v2364_v32  ;;  %v843_v29 = vld [vmem:[#allocation2 + $0x72] sm:$0xff]  ;;  %v844_v31 = vld [vmem:[#allocation2 + $0x7a] sm:$0xff] }
  0x63   : > { %2917 = vmatprep.subr.mxu0 %v2347_v33  ;;  %2975 = vmatpush3.msra.mxu1 %v2364_v32  ;;  %v2394_v32 = vld [vmem:[%s4395_s1 + $0x2a8] sm:$0xff] }
  0x64   : > { %2918 = vmatpush3.msra.mxu0 %v2347_v33  ;;  %2976 = vmatprep.subr.mxu1 %v2363_v34  ;;  %v2377_v33 = vld [vmem:[%s4395_s1 + $0x220] sm:$0xff] }
  0x65   : > { %2831 = vmatprep.mubr.f32.mxu0 %v290_v35  ;;  %2890 = vmatprep.mubr.f32.mxu1 %v256_v36  ;;  %v845_v35 = vld [vmem:[#allocation2 + $0x82] sm:$0xff]  ;;  %v2376_v36 = vld [vmem:[%s4395_s1 + $0x218] sm:$0xff] }
  0x66   : > { %2919 = vmatprep.subr.mxu0 %v2346_v37  ;;  %2977 = vmatpush3.msra.mxu1 %v2363_v34  ;;  %v2393_v34 = vld [vmem:[%s4395_s1 + $0x2a0] sm:$0xff] }
  0x67   : > { %2832 = vmatmul.mubr.f32.gmra.mxu0 %v291_v38  ;;  %2891 = vmatmul.mubr.f32.gmra.mxu1 %v257_v39  ;;  %v2392_v38 = vld [vmem:[%s4395_s1 + $0x298] sm:$0xff]  ;;  %v2375_v39 = vld [vmem:[%s4395_s1 + $0x210] sm:$0xff] }
  0x68   : > { %2920 = vmatpush3.msra.mxu0 %v2346_v37  ;;  %2978 = vmatprep.subr.mxu1 %v2362_v40  ;;  %v846_v37 = vld [vmem:[#allocation2 + $0x8a] sm:$0xff] }
  0x69   : > { %2921 = vmatprep.subr.mxu0 %v2345_v41  ;;  %2979 = vmatpush3.msra.mxu1 %v2362_v40  ;;  %v2391_v40 = vld [vmem:[%s4395_s1 + $0x290] sm:$0xff] }
  0x6a   : > { %2922 = vmatpush3.msra.mxu0 %v2345_v41  ;;  %2980 = vmatprep.subr.mxu1 %v2361_v42  ;;  %v847_v41 = vld [vmem:[#allocation2 + $0x92] sm:$0xff] }
  0x6b   : > { %2834 = vmatprep.mubr.f32.mxu0 %v292_v43  ;;  %2893 = vmatprep.mubr.f32.mxu1 %v258_v44  ;;  %v2374_v43 = vld [vmem:[%s4395_s1 + $0x208] sm:$0xff] }
  0x6c   : > { %2923 = vmatprep.subr.mxu0 %v2344_v45  ;;  %2981 = vmatpush3.msra.mxu1 %v2361_v42  ;;  %v848_v42 = vld [vmem:[#allocation2 + $0x9a] sm:$0xff]  ;;  %v2390_v44 = vld [vmem:[%s4395_s1 + $0x288] sm:$0xff] }
  0x6d   : > { %2835 = vmatmul.mubr.f32.gmra.mxu0 %v293_v46  ;;  %2894 = vmatmul.mubr.f32.gmra.mxu1 %v259_v47  ;;  %v2389_v46 = vld [vmem:[%s4395_s1 + $0x280] sm:$0xff]  ;;  %v1039_v47 = vld [vmem:[#allocation2 + $0x13] sm:$0xff] }
  0x6e   : > { %2924 = vmatpush3.msra.mxu0 %v2344_v45  ;;  %2982 = vmatprep.subr.mxu1 %v2360_v48  ;;  %v2373_v45 = vld [vmem:[%s4395_s1 + $0x200] sm:$0xff] }
  0x6f   : > { %2925 = vmatprep.subr.mxu0 %v2343_v49  ;;  %2983 = vmatpush3.msra.mxu1 %v2360_v48  ;;  %v1247_v48 = vld [vmem:[#allocation2 + $0x14] sm:$0xff] }
  0x70   : > { %2837 = vmatprep.mubr.f32.mxu0 %v294_v50  ;;  %2984 = vmatprep.subr.mxu1 %v2359_v51  ;;  %v1248_v50 = vld [vmem:[#allocation2 + $0x1c] sm:$0xff] }
  0x71   : > { %2896 = vmatprep.mubr.f32.mxu1 %v260_v52  ;;  %2926 = vmatpush3.msra.mxu0 %v2343_v49  ;;  %v1040_v49 = vld [vmem:[#allocation2 + $0x1b] sm:$0xff]  ;;  %v1041_v52 = vld [vmem:[#allocation2 + $0x23] sm:$0xff] }
  0x72   : > { %2985 = vmatpush3.msra.mxu1 %v2359_v51  ;;  %2838 = vmatmul.mubr.f32.gmra.mxu0 %v295_v53  ;;  %v2420_v51 = vld [vmem:[%s4395_s1 + $0x378] sm:$0xff]  ;;  %v3837_v53 = vld [vmem:[#allocation2 + $0x24] sm:$0xff] }
  0x73   : > { %2897 = vmatmul.mubr.f32.gmra.mxu1 %v261_v54  ;;  %2927 = vmatprep.subr.mxu0 %v2342_v55  ;;  %v2419_v54 = vld [vmem:[%s4395_s1 + $0x370] sm:$0xff] }
  0x74   : > { %2986 = vmatprep.subr.mxu1 %v2358_v56  ;;  %2928 = vmatpush3.msra.mxu0 %v2342_v55  ;;  %v2436_v55 = vld [vmem:[%s4395_s1 + $0x3f8] sm:$0xff] }
  0x75   : > { %2987 = vmatpush3.msra.mxu1 %v2358_v56  ;;  %2929 = vmatprep.subr.mxu0 %v2341_v57  ;;  %v1042_v56 = vld [vmem:[#allocation2 + $0x2b] sm:$0xff] }
  0x76   : > { %2988 = vmatprep.subr.mxu1 %v2357_v58  ;;  %2930 = vmatpush3.msra.mxu0 %v2341_v57  ;;  %v3845_v57 = vld [vmem:[#allocation2 + $0x2c] sm:$0xff] }
  0x77   : > { %2931 = vmatprep.mubr.f32.mxu0 %v623_v59  ;;  %2989 = vmatpush3.msra.mxu1 %v2357_v58  ;;  %v2418_v58 = vld [vmem:[%s4395_s1 + $0x368] sm:$0xff]  ;;  %v2435_v59 = vld [vmem:[%s4395_s1 + $0x3f0] sm:$0xff] }
  0x78   : > { %2990 = vmatprep.mubr.f32.mxu1 %v831_v60  ;;  %2932 = vmatmul.mubr.f32.vlgmr.msra.gmra.mxu0 %v624_v61  ;;  %v3855_v61 = vld [vmem:[#allocation2 + $0x34] sm:$0xff] }
  0x79   : > { %2991 = vmatmul.mubr.f32.vlgmr.msra.gmra.mxu1 %v832_v62  ;;  %3017 = vmatprep.subr.mxu0 %v2388_v63 }
  0x7a   : > { %2934 = vmatprep.mubr.f32.mxu0 %v831_v60  ;;  %3018 = vmatpush3.msra.mxu0 %v2388_v63  ;;  %v1043_v60 = vld [vmem:[#allocation2 + $0x33] sm:$0xff]  ;;  %v1044_v63 = vld [vmem:[#allocation2 + $0x3b] sm:$0xff] }
  0x7b   : > { %2993 = vmatprep.mubr.f32.mxu1 %v833_v0  ;;  %3019 = vmatprep.subr.mxu0 %v2387_v1 }
  0x7c   : > { %3076 = vmatprep.subr.mxu1 %v2404_v2  ;;  %2935 = vmatmul.mubr.f32.gmra.mxu0 %v832_v62  ;;  %v2417_v62 = vld [vmem:[%s4395_s1 + $0x360] sm:$0xff] }
  0x7d   : > { %2994 = vmatmul.mubr.f32.gmra.mxu1 %v834_v3  ;;  %3020 = vmatpush3.msra.mxu0 %v2387_v1  ;;  %v2434_v1 = vld [vmem:[%s4395_s1 + $0x3e8] sm:$0xff] }
  0x7e   : > { %3077 = vmatpush3.msra.mxu1 %v2404_v2  ;;  %3021 = vmatprep.subr.mxu0 %v2386_v4  ;;  %v2416_v2 = vld [vmem:[%s4395_s1 + $0x358] sm:$0xff] }
  0x7f   : > { %3078 = vmatprep.subr.mxu1 %v2403_v5  ;;  %3022 = vmatpush3.msra.mxu0 %v2386_v4  ;;  %v1045_v4 = vld [vmem:[#allocation2 + $0x43] sm:$0xff] }
  0x80   : > { %2937 = vmatprep.mubr.f32.mxu0 %v833_v0  ;;  %2996 = vmatprep.mubr.f32.mxu1 %v835_v6  ;;  %v3860_v0 = vld [vmem:[#allocation2 + $0x3c] sm:$0xff] }
  0x81   : > { %3023 = vmatprep.subr.mxu0 %v2385_v7  ;;  %3079 = vmatpush3.msra.mxu1 %v2403_v5  ;;  %v3873_v5 = vld [vmem:[#allocation2 + $0x44] sm:$0xff] }
  0x82   : > { %2938 = vmatmul.mubr.f32.gmra.mxu0 %v834_v3  ;;  %2997 = vmatmul.mubr.f32.gmra.mxu1 %v836_v8  ;;  %v2433_v3 = vld [vmem:[%s4395_s1 + $0x3e0] sm:$0xff] }
  0x83   : > { %3024 = vmatpush3.msra.mxu0 %v2385_v7  ;;  %3080 = vmatprep.subr.mxu1 %v2402_v9  ;;  %v3875_v7 = vld [vmem:[#allocation2 + $0x4c] sm:$0xff] }
  0x84   : > { %3025 = vmatprep.subr.mxu0 %v2384_v10  ;;  %3081 = vmatpush3.msra.mxu1 %v2402_v9  ;;  %v2432_v9 = vld [vmem:[%s4395_s1 + $0x3d8] sm:$0xff] }
  0x85   : > { %3026 = vmatpush3.msra.mxu0 %v2384_v10  ;;  %3082 = vmatprep.subr.mxu1 %v2401_v11  ;;  %v2414_v10 = vld [vmem:[%s4395_s1 + $0x348] sm:$0xff] }
  0x86   : > { %2940 = vmatprep.mubr.f32.mxu0 %v835_v6  ;;  %2999 = vmatprep.mubr.f32.mxu1 %v837_v12  ;;  %v1046_v6 = vld [vmem:[#allocation2 + $0x4b] sm:$0xff] }
  0x87   : > { %3083 = vmatpush3.msra.mxu1 %v2401_v11  ;;  %2941 = vmatmul.mubr.f32.gmra.mxu0 %v836_v8  ;;  %v2415_v8 = vld [vmem:[%s4395_s1 + $0x350] sm:$0xff] }
  0x88   : > { %3000 = vmatmul.mubr.f32.gmra.mxu1 %v838_v13  ;;  %3027 = vmatprep.subr.mxu0 %v2383_v14  ;;  %v2431_v11 = vld [vmem:[%s4395_s1 + $0x3d0] sm:$0xff] }
  0x89   : > { %3084 = vmatprep.subr.mxu1 %v2400_v15  ;;  %3028 = vmatpush3.msra.mxu0 %v2383_v14  ;;  %v1048_v14 = vld [vmem:[#allocation2 + $0x5b] sm:$0xff] }
  0x8a   : > { %3085 = vmatpush3.msra.mxu1 %v2400_v15  ;;  %3029 = vmatprep.subr.mxu0 %v2382_v16  ;;  %v3893_v15 = vld [vmem:[#allocation2 + $0x5c] sm:$0xff] }
  0x8b   : > { %3086 = vmatprep.subr.mxu1 %v2399_v17  ;;  %2943 = vmatprep.mubr.f32.mxu0 %v837_v12  ;;  %v1047_v12 = vld [vmem:[#allocation2 + $0x53] sm:$0xff] }
  0x8c   : > { %3002 = vmatprep.mubr.f32.mxu1 %v839_v18  ;;  %3030 = vmatpush3.msra.mxu0 %v2382_v16  ;;  %v2413_v16 = vld [vmem:[%s4395_s1 + $0x340] sm:$0xff] }
  0x8d   : > { %3087 = vmatpush3.msra.mxu1 %v2399_v17  ;;  %2944 = vmatmul.mubr.f32.gmra.mxu0 %v838_v13  ;;  %v3891_v13 = vld [vmem:[#allocation2 + $0x54] sm:$0xff]  ;;  %v2430_v17 = vld [vmem:[%s4395_s1 + $0x3c8] sm:$0xff] }
  0x8e   : > { %3003 = vmatmul.mubr.f32.gmra.mxu1 %v840_v19  ;;  %3031 = vmatprep.subr.mxu0 %v2381_v20 }
  0x8f   : > { %3088 = vmatprep.subr.mxu1 %v2398_v21  ;;  %3032 = vmatpush3.msra.mxu0 %v2381_v20  ;;  %v1049_v20 = vld [vmem:[#allocation2 + $0x63] sm:$0xff] }
  0x90   : > { %3089 = vmatpush3.msra.mxu1 %v2398_v21  ;;  %3033 = vmatprep.subr.mxu0 %v2380_v22  ;;  %v3909_v21 = vld [vmem:[#allocation2 + $0x64] sm:$0xff] }
  0x91   : > { %3090 = vmatprep.subr.mxu1 %v2397_v23  ;;  %2946 = vmatprep.mubr.f32.mxu0 %v839_v18  ;;  %v2412_v18 = vld [vmem:[%s4395_s1 + $0x338] sm:$0xff] }
  0x92   : > { %3005 = vmatprep.mubr.f32.mxu1 %v841_v24  ;;  %3034 = vmatpush3.msra.mxu0 %v2380_v22  ;;  %v1050_v22 = vld [vmem:[#allocation2 + $0x6b] sm:$0xff] }
  0x93   : > { %3091 = vmatpush3.msra.mxu1 %v2397_v23  ;;  %2947 = vmatmul.mubr.f32.gmra.mxu0 %v840_v19  ;;  %v2429_v19 = vld [vmem:[%s4395_s1 + $0x3c0] sm:$0xff]  ;;  %v3911_v23 = vld [vmem:[#allocation2 + $0x6c] sm:$0xff] }
  0x94   : > { %3006 = vmatmul.mubr.f32.gmra.mxu1 %v842_v25  ;;  %3092 = vmatprep.subr.mxu1 %v2396_v26 }
  0x95   : > { %3035 = vmatprep.subr.mxu0 %v2379_v27  ;;  %3093 = vmatpush3.msra.mxu1 %v2396_v26  ;;  %v2427_v26 = vld [vmem:[%s4395_s1 + $0x3b0] sm:$0xff] }
  0x96   : > { %3036 = vmatpush3.msra.mxu0 %v2379_v27  ;;  %3094 = vmatprep.subr.mxu1 %v2395_v28  ;;  %v1051_v27 = vld [vmem:[#allocation2 + $0x73] sm:$0xff] }
  0x97   : > { %2949 = vmatprep.mubr.f32.mxu0 %v841_v24  ;;  %3008 = vmatprep.mubr.f32.mxu1 %v843_v29  ;;  %v2428_v24 = vld [vmem:[%s4395_s1 + $0x3b8] sm:$0xff] }
  0x98   : > { %3037 = vmatprep.subr.mxu0 %v2378_v30  ;;  %3095 = vmatpush3.msra.mxu1 %v2395_v28  ;;  %v3924_v28 = vld [vmem:[#allocation2 + $0x74] sm:$0xff] }
  0x99   : > { %2950 = vmatmul.mubr.f32.gmra.mxu0 %v842_v25  ;;  %3009 = vmatmul.mubr.f32.gmra.mxu1 %v844_v31  ;;  %v2411_v25 = vld [vmem:[%s4395_s1 + $0x330] sm:$0xff] }
  0x9a   : > { %3038 = vmatpush3.msra.mxu0 %v2378_v30  ;;  %3096 = vmatprep.subr.mxu1 %v2394_v32  ;;  %v1052_v30 = vld [vmem:[#allocation2 + $0x7b] sm:$0xff] }
  0x9b   : > { %3039 = vmatprep.subr.mxu0 %v2377_v33  ;;  %3097 = vmatpush3.msra.mxu1 %v2394_v32  ;;  %v2426_v32 = vld [vmem:[%s4395_s1 + $0x3a8] sm:$0xff] }
  0x9c   : > { %3040 = vmatpush3.msra.mxu0 %v2377_v33  ;;  %3098 = vmatprep.subr.mxu1 %v2393_v34  ;;  %v2409_v33 = vld [vmem:[%s4395_s1 + $0x320] sm:$0xff] }
  0x9d   : > { %2952 = vmatprep.mubr.f32.mxu0 %v843_v29  ;;  %3011 = vmatprep.mubr.f32.mxu1 %v845_v35  ;;  %v2410_v29 = vld [vmem:[%s4395_s1 + $0x328] sm:$0xff] }
  0x9e   : > { %3041 = vmatprep.subr.mxu0 %v2376_v36  ;;  %3099 = vmatpush3.msra.mxu1 %v2393_v34  ;;  %v2425_v34 = vld [vmem:[%s4395_s1 + $0x3a0] sm:$0xff] }
  0x9f   : > { %2953 = vmatmul.mubr.f32.gmra.mxu0 %v844_v31  ;;  %3012 = vmatmul.mubr.f32.gmra.mxu1 %v846_v37  ;;  %v3929_v31 = vld [vmem:[#allocation2 + $0x7c] sm:$0xff] }
  0xa0   : > { %3042 = vmatpush3.msra.mxu0 %v2376_v36  ;;  %3100 = vmatprep.subr.mxu1 %v2392_v38  ;;  %v3942_v36 = vld [vmem:[#allocation2 + $0x84] sm:$0xff] }
  0xa1   : > { %3043 = vmatprep.subr.mxu0 %v2375_v39  ;;  %3101 = vmatpush3.msra.mxu1 %v2392_v38  ;;  %v1054_v38 = vld [vmem:[#allocation2 + $0x8b] sm:$0xff] }
  0xa2   : > { %2955 = vmatprep.mubr.f32.mxu0 %v845_v35  ;;  %3102 = vmatprep.subr.mxu1 %v2391_v40  ;;  %v1053_v35 = vld [vmem:[#allocation2 + $0x83] sm:$0xff] }
  0xa3   : > { %3014 = vmatprep.mubr.f32.mxu1 %v847_v41  ;;  %3044 = vmatpush3.msra.mxu0 %v2375_v39  ;;  %v3947_v39 = vld [vmem:[#allocation2 + $0x8c] sm:$0xff] }
  0xa4   : > { %3103 = vmatpush3.msra.mxu1 %v2391_v40  ;;  %2956 = vmatmul.mubr.f32.gmra.mxu0 %v846_v37  ;;  %v2408_v37 = vld [vmem:[%s4395_s1 + $0x318] sm:$0xff]  ;;  %v2407_v41 = vld [vmem:[%s4395_s1 + $0x310] sm:$0xff] }
  0xa5   : > { %3015 = vmatmul.mubr.f32.gmra.mxu1 %v848_v42  ;;  %3045 = vmatprep.subr.mxu0 %v2374_v43  ;;  %v2424_v40 = vld [vmem:[%s4395_s1 + $0x398] sm:$0xff] }
  0xa6   : > { %3104 = vmatprep.subr.mxu1 %v2390_v44  ;;  %3046 = vmatpush3.msra.mxu0 %v2374_v43  ;;  %v1055_v42 = vld [vmem:[#allocation2 + $0x93] sm:$0xff] }
  0xa7   : > { %3105 = vmatpush3.msra.mxu1 %v2390_v44  ;;  %3047 = vmatprep.subr.mxu0 %v2373_v45  ;;  %v2423_v43 = vld [vmem:[%s4395_s1 + $0x390] sm:$0xff] }
  0xa8   : > { %3106 = vmatprep.subr.mxu1 %v2389_v46  ;;  %3048 = vmatpush3.msra.mxu0 %v2373_v45  ;;  %v3960_v44 = vld [vmem:[#allocation2 + $0x94] sm:$0xff] }
  0xa9   : > { %3049 = vmatprep.mubr.f32.mxu0 %v1039_v47  ;;  %3107 = vmatpush3.msra.mxu1 %v2389_v46  ;;  %v1056_v45 = vld [vmem:[#allocation2 + $0x9b] sm:$0xff]  ;;  %v2406_v47 = vld [vmem:[%s4395_s1 + $0x308] sm:$0xff] }
  0xaa   : > { %3108 = vmatprep.mubr.f32.mxu1 %v1247_v48  ;;  %3050 = vmatmul.mubr.f32.vlgmr.msra.gmra.mxu0 %v1040_v49  ;;  %v3962_v46 = vld [vmem:[#allocation2 + $0x9c] sm:$0xff]  ;;  %v2422_v48 = vld [vmem:[%s4395_s1 + $0x388] sm:$0xff] }
  0xab   : > { %3109 = vmatmul.mubr.f32.vlgmr.msra.gmra.mxu1 %v1248_v50  ;;  %3135 = vmatprep.subr.mxu0 %v2420_v51  ;;  %v2405_v49 = vld [vmem:[%s4395_s1 + $0x300] sm:$0xff] }
  0xac   : > { %3052 = vmatprep.mubr.f32.mxu0 %v1041_v52  ;;  %3136 = vmatpush3.msra.mxu0 %v2420_v51  ;;  %v2421_v50 = vld [vmem:[%s4395_s1 + $0x380] sm:$0xff]  ;;  %v1664_v52 = vld [vmem:[#allocation2 + $0x2d] sm:$0xff] }
  0xad   : > { %3111 = vmatprep.mubr.f32.mxu1 %v3837_v53  ;;  %3137 = vmatprep.subr.mxu0 %v2419_v54  ;;  %v1663_v51 = vld [vmem:[#allocation2 + $0x25] sm:$0xff] }
  0xae   : > { %3194 = vmatprep.subr.mxu1 %v2436_v55  ;;  %3053 = vmatmul.mubr.f32.gmra.mxu0 %v1042_v56  ;;  %v2451_v56 = vld [vmem:[%s4395_s1 + $0x470] sm:$0xff] }
  0xaf   : > { %3112 = vmatmul.mubr.f32.gmra.mxu1 %v3845_v57  ;;  %3138 = vmatpush3.msra.mxu0 %v2419_v54  ;;  %v2452_v54 = vld [vmem:[%s4395_s1 + $0x478] sm:$0xff] }
  0xb0   : > { %3195 = vmatpush3.msra.mxu1 %v2436_v55  ;;  %3139 = vmatprep.subr.mxu0 %v2418_v58  ;;  %v1665_v55 = vld [vmem:[#allocation2 + $0x35] sm:$0xff] }
  0xb1   : > { %3196 = vmatprep.subr.mxu1 %v2435_v59  ;;  %3140 = vmatpush3.msra.mxu0 %v2418_v58  ;;  %v1666_v58 = vld [vmem:[#allocation2 + $0x3d] sm:$0xff] }
  0xb2   : > { %3055 = vmatprep.mubr.f32.mxu0 %v1043_v60  ;;  %3114 = vmatprep.mubr.f32.mxu1 %v3855_v61  ;;  %v1668_v60 = vld [vmem:[#allocation2 + $0x4d] sm:$0xff] }
  0xb3   : > { %3141 = vmatprep.subr.mxu0 %v2417_v62  ;;  %3197 = vmatpush3.msra.mxu1 %v2435_v59  ;;  %v2449_v59 = vld [vmem:[%s4395_s1 + $0x460] sm:$0xff] }
  0xb4   : > { %3056 = vmatmul.mubr.f32.gmra.mxu0 %v1044_v63  ;;  %3115 = vmatmul.mubr.f32.gmra.mxu1 %v3860_v0  ;;  %v1670_v63 = vld [vmem:[#allocation2 + $0x5d] sm:$0xff] }
  0xb5   : > { %3142 = vmatpush3.msra.mxu0 %v2417_v62  ;;  %3198 = vmatprep.subr.mxu1 %v2434_v1  ;;  %v1669_v62 = vld [vmem:[#allocation2 + $0x55] sm:$0xff] }
  0xb6   : > { %3143 = vmatprep.subr.mxu0 %v2416_v2  ;;  %3199 = vmatpush3.msra.mxu1 %v2434_v1  ;;  %v2446_v1 = vld [vmem:[%s4395_s1 + $0x448] sm:$0xff] }
  0xb7   : > { %3144 = vmatpush3.msra.mxu0 %v2416_v2  ;;  %3200 = vmatprep.subr.mxu1 %v2433_v3  ;;  %v1671_v2 = vld [vmem:[#allocation2 + $0x65] sm:$0xff] }
  0xb8   : > { %3058 = vmatprep.mubr.f32.mxu0 %v1045_v4  ;;  %3117 = vmatprep.mubr.f32.mxu1 %v3873_v5  ;;  %v2445_v4 = vld [vmem:[%s4395_s1 + $0x440] sm:$0xff] }
  0xb9   : > { %3201 = vmatpush3.msra.mxu1 %v2433_v3  ;;  %3059 = vmatmul.mubr.f32.gmra.mxu0 %v1046_v6  ;;  %v1672_v3 = vld [vmem:[#allocation2 + $0x6d] sm:$0xff]  ;;  %v1673_v6 = vld [vmem:[#allocation2 + $0x75] sm:$0xff] }
  0xba   : > { %3118 = vmatmul.mubr.f32.gmra.mxu1 %v3875_v7  ;;  %3145 = vmatprep.subr.mxu0 %v2415_v8 }
  0xbb   : > { %3202 = vmatprep.subr.mxu1 %v2432_v9  ;;  %3146 = vmatpush3.msra.mxu0 %v2415_v8  ;;  %v2443_v8 = vld [vmem:[%s4395_s1 + $0x430] sm:$0xff] }
  0xbc   : > { %3203 = vmatpush3.msra.mxu1 %v2432_v9  ;;  %3147 = vmatprep.subr.mxu0 %v2414_v10  ;;  %v1675_v9 = vld [vmem:[#allocation2 + $0x85] sm:$0xff] }
  0xbd   : > { %3204 = vmatprep.subr.mxu1 %v2431_v11  ;;  %3061 = vmatprep.mubr.f32.mxu0 %v1047_v12  ;;  %v2441_v12 = vld [vmem:[%s4395_s1 + $0x420] sm:$0xff] }
  0xbe   : > { %3120 = vmatprep.mubr.f32.mxu1 %v3891_v13  ;;  %3148 = vmatpush3.msra.mxu0 %v2414_v10  ;;  %v2442_v10 = vld [vmem:[%s4395_s1 + $0x428] sm:$0xff] }
  0xbf   : > { %3205 = vmatpush3.msra.mxu1 %v2431_v11  ;;  %3062 = vmatmul.mubr.f32.gmra.mxu0 %v1048_v14  ;;  %v1676_v11 = vld [vmem:[#allocation2 + $0x8d] sm:$0xff]  ;;  %v2440_v14 = vld [vmem:[%s4395_s1 + $0x418] sm:$0xff] }
  0xc0   : > { %3121 = vmatmul.mubr.f32.gmra.mxu1 %v3893_v15  ;;  %3149 = vmatprep.subr.mxu0 %v2413_v16 }
  0xc1   : > { %3206 = vmatprep.subr.mxu1 %v2430_v17  ;;  %3150 = vmatpush3.msra.mxu0 %v2413_v16  ;;  %v2439_v16 = vld [vmem:[%s4395_s1 + $0x410] sm:$0xff] }
  0xc2   : > { %3207 = vmatpush3.msra.mxu1 %v2430_v17  ;;  %3151 = vmatprep.subr.mxu0 %v2412_v18  ;;  %v1471_v17 = vld [vmem:[#allocation2 + $0xa4] sm:$0xff] }
  0xc3   : > { %3208 = vmatprep.subr.mxu1 %v2429_v19  ;;  %3064 = vmatprep.mubr.f32.mxu0 %v1049_v20  ;;  %v1680_v20 = vld [vmem:[#allocation2 + $0xad] sm:$0xff] }
  0xc4   : > { %3123 = vmatprep.mubr.f32.mxu1 %v3909_v21  ;;  %3152 = vmatpush3.msra.mxu0 %v2412_v18  ;;  %v1679_v18 = vld [vmem:[#allocation2 + $0xa5] sm:$0xff] }
  0xc5   : > { %3209 = vmatpush3.msra.mxu1 %v2429_v19  ;;  %3065 = vmatmul.mubr.f32.gmra.mxu0 %v1050_v22  ;;  %v1472_v19 = vld [vmem:[#allocation2 + $0xac] sm:$0xff] }
  0xc6   : > { %3124 = vmatmul.mubr.f32.gmra.mxu1 %v3911_v23  ;;  %3210 = vmatprep.subr.mxu1 %v2428_v24 }
  0xc7   : > { %3153 = vmatprep.subr.mxu0 %v2411_v25  ;;  %3211 = vmatpush3.msra.mxu1 %v2428_v24 }
  0xc8   : > { %3154 = vmatpush3.msra.mxu0 %v2411_v25  ;;  %3212 = vmatprep.subr.mxu1 %v2427_v26  ;;  %v2437_v25 = vld [vmem:[%s4395_s1 + $0x400] sm:$0xff] }
  0xc9   : > { %3067 = vmatprep.mubr.f32.mxu0 %v1051_v27  ;;  %3126 = vmatprep.mubr.f32.mxu1 %v3924_v28 }
  0xca   : > { %3155 = vmatprep.subr.mxu0 %v2410_v29  ;;  %3213 = vmatpush3.msra.mxu1 %v2427_v26 }
  0xcb   : > { %3068 = vmatmul.mubr.f32.gmra.mxu0 %v1052_v30  ;;  %3127 = vmatmul.mubr.f32.gmra.mxu1 %v3929_v31  ;;  %v1881_v30 = vld [vmem:[#allocation2 + $0x76] sm:$0xff] }
  0xcc   : > { %3156 = vmatpush3.msra.mxu0 %v2410_v29  ;;  %3214 = vmatprep.subr.mxu1 %v2426_v32  ;;  %v1871_v29 = vld [vmem:[#allocation2 + $0x26] sm:$0xff] }
  0xcd   : > { %3157 = vmatprep.subr.mxu0 %v2409_v33  ;;  %3215 = vmatpush3.msra.mxu1 %v2426_v32 }
  0xce   : > { %3158 = vmatpush3.msra.mxu0 %v2409_v33  ;;  %3216 = vmatprep.subr.mxu1 %v2425_v34  ;;  %v1872_v33 = vld [vmem:[#allocation2 + $0x2e] sm:$0xff] }
  0xcf   : > { %3070 = vmatprep.mubr.f32.mxu0 %v1053_v35  ;;  %3129 = vmatprep.mubr.f32.mxu1 %v3942_v36 }
  0xd0   : > { %3159 = vmatprep.subr.mxu0 %v2408_v37  ;;  %3217 = vmatpush3.msra.mxu1 %v2425_v34  ;;  %v1882_v34 = vld [vmem:[#allocation2 + $0x7e] sm:$0xff] }
  0xd1   : > { %3071 = vmatmul.mubr.f32.gmra.mxu0 %v1054_v38  ;;  %3130 = vmatmul.mubr.f32.gmra.mxu1 %v3947_v39 }
  0xd2   : > { %3160 = vmatpush3.msra.mxu0 %v2408_v37  ;;  %3218 = vmatprep.subr.mxu1 %v2424_v40  ;;  %v1883_v37 = vld [vmem:[#allocation2 + $0x86] sm:$0xff] }
  0xd3   : > { %3161 = vmatprep.subr.mxu0 %v2407_v41  ;;  %3219 = vmatpush3.msra.mxu1 %v2424_v40 }
  0xd4   : > { %3073 = vmatprep.mubr.f32.mxu0 %v1055_v42  ;;  %3220 = vmatprep.subr.mxu1 %v2423_v43  ;;  %v1884_v42 = vld [vmem:[#allocation2 + $0x8e] sm:$0xff] }
  0xd5   : > { %3132 = vmatprep.mubr.f32.mxu1 %v3960_v44  ;;  %3162 = vmatpush3.msra.mxu0 %v2407_v41  ;;  %v1874_v41 = vld [vmem:[#allocation2 + $0x3e] sm:$0xff] }
  0xd6   : > { %3221 = vmatpush3.msra.mxu1 %v2423_v43  ;;  %3074 = vmatmul.mubr.f32.gmra.mxu0 %v1056_v45  ;;  %v1885_v45 = vld [vmem:[#allocation2 + $0x96] sm:$0xff] }
  0xd7   : > { %3133 = vmatmul.mubr.f32.gmra.mxu1 %v3962_v46  ;;  %3163 = vmatprep.subr.mxu0 %v2406_v47 }
  0xd8   : > { %3222 = vmatprep.subr.mxu1 %v2422_v48  ;;  %3164 = vmatpush3.msra.mxu0 %v2406_v47 }
  0xd9   : > { %3223 = vmatpush3.msra.mxu1 %v2422_v48  ;;  %3165 = vmatprep.subr.mxu0 %v2405_v49 }
  0xda   : > { %3224 = vmatprep.subr.mxu1 %v2421_v50  ;;  %3166 = vmatpush3.msra.mxu0 %v2405_v49 }
  0xdb   : > { %3167 = vmatprep.mubr.f32.mxu0 %v3837_v53  ;;  %3225 = vmatpush3.msra.mxu1 %v2421_v50  ;;  %v2450_v53 = vld [vmem:[%s4395_s1 + $0x468] sm:$0xff] }
  0xdc   : > { %3226 = vmatprep.mubr.f32.mxu1 %v1663_v51  ;;  %3168 = vmatmul.mubr.f32.vlgmr.msra.gmra.mxu0 %v3845_v57  ;;  %v1667_v57 = vld [vmem:[#allocation2 + $0x45] sm:$0xff]  ;;  %v1876_v50 = vld [vmem:[#allocation2 + $0x4e] sm:$0xff] }
  0xdd   : > { %3227 = vmatmul.mubr.f32.vlgmr.msra.gmra.mxu1 %v1664_v52  ;;  %3253 = vmatprep.subr.mxu0 %v2452_v54  ;;  %v1886_v51 = vld [vmem:[#allocation2 + $0x9e] sm:$0xff] }
  0xde   : > { %3170 = vmatprep.mubr.f32.mxu0 %v3855_v61  ;;  %3254 = vmatpush3.msra.mxu0 %v2452_v54  ;;  %v2448_v61 = vld [vmem:[%s4395_s1 + $0x458] sm:$0xff] }
  0xdf   : > { %3229 = vmatprep.mubr.f32.mxu1 %v1665_v55  ;;  %3255 = vmatprep.subr.mxu0 %v2451_v56  ;;  %v1887_v55 = vld [vmem:[#allocation2 + $0xa6] sm:$0xff] }
  0xe0   : > { %3312 = vmatprep.subr.mxu1 %v2452_v54  ;;  %3171 = vmatmul.mubr.f32.gmra.mxu0 %v3860_v0  ;;  %v2447_v0 = vld [vmem:[%s4395_s1 + $0x450] sm:$0xff] }
  0xe1   : > { %3230 = vmatmul.mubr.f32.gmra.mxu1 %v1666_v58  ;;  %3256 = vmatpush3.msra.mxu0 %v2451_v56 }
  0xe2   : > { %3328 = vmatpush3.msra.mxu1 %v2452_v54  ;;  %3257 = vmatprep.subr.mxu0 %v2450_v53  ;;  %v1877_v54 = vld [vmem:[#allocation2 + $0x56] sm:$0xff] }
  0xe3   : > { %3313 = vmatprep.subr.mxu1 %v2451_v56  ;;  %3258 = vmatpush3.msra.mxu0 %v2450_v53 }
  0xe4   : > { %3173 = vmatprep.mubr.f32.mxu0 %v3873_v5  ;;  %3232 = vmatprep.mubr.f32.mxu1 %v1667_v57  ;;  %v2444_v5 = vld [vmem:[%s4395_s1 + $0x438] sm:$0xff] }
  0xe5   : > { %3329 = vmatpush3.msra.mxu1 %v2451_v56  ;;  %3259 = vmatprep.subr.mxu0 %v2449_v59  ;;  %v1878_v57 = vld [vmem:[#allocation2 + $0x5e] sm:$0xff] }
  0xe6   : > { %3174 = vmatmul.mubr.f32.gmra.mxu0 %v3875_v7  ;;  %3233 = vmatmul.mubr.f32.gmra.mxu1 %v1668_v60  ;;  %v1674_v7 = vld [vmem:[#allocation2 + $0x7d] sm:$0xff] }
  0xe7   : > { %3314 = vmatprep.subr.mxu1 %v2450_v53  ;;  %3260 = vmatpush3.msra.mxu0 %v2449_v59 }
  0xe8   : > { %3330 = vmatpush3.msra.mxu1 %v2450_v53  ;;  %3261 = vmatprep.subr.mxu0 %v2448_v61 }
  0xe9   : > { %3315 = vmatprep.subr.mxu1 %v2449_v59  ;;  %3262 = vmatpush3.msra.mxu0 %v2448_v61 }
  0xea   : > { %3176 = vmatprep.mubr.f32.mxu0 %v3891_v13  ;;  %3235 = vmatprep.mubr.f32.mxu1 %v1669_v62  ;;  %v1677_v13 = vld [vmem:[#allocation2 + $0x95] sm:$0xff]  ;;  %v1879_v62 = vld [vmem:[#allocation2 + $0x66] sm:$0xff] }
  0xeb   : > { %3331 = vmatpush3.msra.mxu1 %v2449_v59  ;;  %3177 = vmatmul.mubr.f32.gmra.mxu0 %v3893_v15  ;;  %v1678_v15 = vld [vmem:[#allocation2 + $0x9d] sm:$0xff]  ;;  %v1888_v59 = vld [vmem:[#allocation2 + $0xae] sm:$0xff] }
  0xec   : > { %3236 = vmatmul.mubr.f32.gmra.mxu1 %v1670_v63  ;;  %3316 = vmatprep.subr.mxu1 %v2448_v61 }
  0xed   : > { %3263 = vmatprep.subr.mxu0 %v2447_v0  ;;  %3332 = vmatpush3.msra.mxu1 %v2448_v61 }
  0xee   : > { %3264 = vmatpush3.msra.mxu0 %v2447_v0  ;;  %3317 = vmatprep.subr.mxu1 %v2447_v0 }
  0xef   : > { %3265 = vmatprep.subr.mxu0 %v2446_v1  ;;  %3179 = vmatprep.mubr.f32.mxu0 %v3909_v21  ;;  %v2438_v21 = vld [vmem:[%s4395_s1 + $0x408] sm:$0xff] }
  0xf0   : > { %3238 = vmatprep.mubr.f32.mxu1 %v1671_v2  ;;  %3333 = vmatpush3.msra.mxu1 %v2447_v0  ;;  %v1880_v0 = vld [vmem:[#allocation2 + $0x6e] sm:$0xff] }
  0xf1   : > { %3266 = vmatpush3.msra.mxu0 %v2446_v1  ;;  %3239 = vmatmul.mubr.f32.gmra.mxu1 %v1672_v3 }
  0xf2   : > { %3180 = vmatmul.mubr.f32.gmra.mxu0 %v3911_v23  ;;  %3318 = vmatprep.subr.mxu1 %v2446_v1 }
  0xf3   : > { %3267 = vmatprep.subr.mxu0 %v2445_v4  ;;  %3334 = vmatpush3.msra.mxu1 %v2446_v1 }
  0xf4   : > { %3268 = vmatpush3.msra.mxu0 %v2445_v4  ;;  %3319 = vmatprep.subr.mxu1 %v2445_v4 }
  0xf5   : > { %3269 = vmatprep.subr.mxu0 %v2444_v5  ;;  %3182 = vmatprep.mubr.f32.mxu0 %v3924_v28 }
  0xf6   : > { %3241 = vmatprep.mubr.f32.mxu1 %v1673_v6  ;;  %3335 = vmatpush3.msra.mxu1 %v2445_v4 }
  0xf7   : > { %3270 = vmatpush3.msra.mxu0 %v2444_v5  ;;  %3242 = vmatmul.mubr.f32.gmra.mxu1 %v1674_v7 }
  0xf8   : > { %3183 = vmatmul.mubr.f32.gmra.mxu0 %v3929_v31  ;;  %3320 = vmatprep.subr.mxu1 %v2444_v5 }
  0xf9   : > { %3271 = vmatprep.subr.mxu0 %v2443_v8  ;;  %3336 = vmatpush3.msra.mxu1 %v2444_v5 }
  0xfa   : > { %3272 = vmatpush3.msra.mxu0 %v2443_v8  ;;  %3321 = vmatprep.subr.mxu1 %v2443_v8 }
  0xfb   : > { %3185 = vmatprep.mubr.f32.mxu0 %v3942_v36  ;;  %3244 = vmatprep.mubr.f32.mxu1 %v1675_v9  ;;  %v1873_v36 = vld [vmem:[#allocation2 + $0x36] sm:$0xff] }
  0xfc   : > { %3337 = vmatpush3.msra.mxu1 %v2443_v8  ;;  %3273 = vmatprep.subr.mxu0 %v2442_v10 }
  0xfd   : > { %3186 = vmatmul.mubr.f32.gmra.mxu0 %v3947_v39  ;;  %3245 = vmatmul.mubr.f32.gmra.mxu1 %v1676_v11 }
  0xfe   : > { %3322 = vmatprep.subr.mxu1 %v2442_v10  ;;  %3274 = vmatpush3.msra.mxu0 %v2442_v10 }
  0xff   : > { %3338 = vmatpush3.msra.mxu1 %v2442_v10  ;;  %3275 = vmatprep.subr.mxu0 %v2441_v12 }
 0x100   : > { %3323 = vmatprep.subr.mxu1 %v2441_v12  ;;  %3276 = vmatpush3.msra.mxu0 %v2441_v12 }
 0x101   : > { %3188 = vmatprep.mubr.f32.mxu0 %v3960_v44  ;;  %3247 = vmatprep.mubr.f32.mxu1 %v1677_v13  ;;  %v1875_v44 = vld [vmem:[#allocation2 + $0x46] sm:$0xff] }
 0x102   : > { %3339 = vmatpush3.msra.mxu1 %v2441_v12  ;;  %3277 = vmatprep.subr.mxu0 %v2440_v14 }
 0x103   : > { %3189 = vmatmul.mubr.f32.gmra.mxu0 %v3962_v46  ;;  %3248 = vmatmul.mubr.f32.gmra.mxu1 %v1678_v15 }
 0x104   : > { %3324 = vmatprep.subr.mxu1 %v2440_v14  ;;  %3278 = vmatpush3.msra.mxu0 %v2440_v14 }
 0x105   : > { %3340 = vmatpush3.msra.mxu1 %v2440_v14  ;;  %3279 = vmatprep.subr.mxu0 %v2439_v16 }
 0x106   : > { %3325 = vmatprep.subr.mxu1 %v2439_v16  ;;  %3191 = vmatprep.mubr.f32.mxu0 %v1471_v17  ;;  %v2815_v22 = vpop.f32.mrf.mxu0 }
 0x107   : > { %3250 = vmatprep.mubr.f32.mxu1 %v1679_v18  ;;  %v2874_v23 = vpop.f32.mrf.mxu1  ;;  %3280 = vmatpush3.msra.mxu0 %v2439_v16 }
 0x108   : > { %3341 = vmatpush3.msra.mxu1 %v2439_v16  ;;  %v4039_v24 = vadd.f32 %v2874_v23, %v2815_v22  ;;  %3192 = vmatmul.mubr.f32.gmra.mxu0 %v1472_v19  ;;  %v379_v26 = vpop.f32.mrf.mxu0 }
 0x109   : > { %3251 = vmatmul.mubr.f32.gmra.mxu1 %v1680_v20  ;;  %v534_v27 = vpop.f32.mrf.mxu1  ;;  %3281 = vmatprep.subr.mxu0 %v2438_v21 }
 0x10a   : > { %3326 = vmatprep.subr.mxu1 %v2438_v21  ;;  %v4044_v28 = vadd.f32 %v534_v27, %v379_v26  ;;  %3282 = vmatpush3.msra.mxu0 %v2438_v21  ;;  %v2818_v31 = vpop.f32.mrf.mxu0 }
 0x10b   : > { %3342 = vmatpush3.msra.mxu1 %v2438_v21  ;;  %v2877_v32 = vpop.f32.mrf.mxu1  ;;  %3283 = vmatprep.subr.mxu0 %v2437_v25 }
 0x10c   : > { %3327 = vmatprep.subr.mxu1 %v2437_v25  ;;  %v4046_v35 = vadd.f32 %v2877_v32, %v2818_v31  ;;  %3284 = vmatpush3.msra.mxu0 %v2437_v25  ;;  %v389_v38 = vpop.f32.mrf.mxu0 }
 0x10d   : > { %3343 = vmatpush3.msra.mxu1 %v2437_v25  ;;  %v544_v39 = vpop.f32.mrf.mxu1  ;;  %3285 = vmatprep.mubr.f32.mxu0 %v1871_v29 }
 0x10e   : > { %3300 = vmatprep.mubr.f32.mxu1 %v1881_v30  ;;  %v4048_v40 = vadd.f32 %v544_v39, %v389_v38  ;;  %3286 = vmatmul.mubr.f32.vlgmr.msra.gmra.mxu0 %v1872_v33 }
 0x10f   : > { %3301 = vmatmul.mubr.f32.vlgmr.msra.gmra.mxu1 %v1882_v34  ;;  %3288 = vmatprep.mubr.f32.mxu0 %v1873_v36 }
 0x110   : > { %3303 = vmatprep.mubr.f32.mxu1 %v1883_v37  ;;  %v2821_v43 = vpop.f32.mrf.mxu0  ;;  %v2880_v46 = vpop.f32.mrf.mxu1 }
 0x111   : > { %v4050_v47 = vadd.f32 %v2880_v46, %v2821_v43 }
 0x112   : > { %v399_v48 = vpop.f32.mrf.mxu0  ;;  %3289 = vmatmul.mubr.f32.gmra.mxu0 %v1874_v41  ;;  %v554_v49 = vpop.f32.mrf.mxu1 }
 0x113   : > { %3304 = vmatmul.mubr.f32.gmra.mxu1 %v1884_v42  ;;  %3291 = vmatprep.mubr.f32.mxu0 %v1875_v44  ;;  %v4052_v52 = vadd.f32 %v554_v49, %v399_v48 }
 0x114   : > { %3306 = vmatprep.mubr.f32.mxu1 %v1885_v45 }
 0x115   : > { %v2824_v56 = vpop.f32.mrf.mxu0 }
 0x116   : > { %v2883_v58 = vpop.f32.mrf.mxu1  ;;  %3292 = vmatmul.mubr.f32.gmra.mxu0 %v1876_v50 }
 0x117   : > { %3307 = vmatmul.mubr.f32.gmra.mxu1 %v1886_v51  ;;  %v4054_v53 = vadd.f32 %v2883_v58, %v2824_v56  ;;  %3294 = vmatprep.mubr.f32.mxu0 %v1877_v54  ;;  %v409_v60 = vpop.f32.mrf.mxu0 }
 0x118   : > { %3309 = vmatprep.mubr.f32.mxu1 %v1887_v55  ;;  %v564_v61 = vpop.f32.mrf.mxu1 }
 0x119   : > { %v4056_v63 = vadd.f32 %v564_v61, %v409_v60 }
 0x11a   : > { %3295 = vmatmul.mubr.f32.gmra.mxu0 %v1878_v57 }
 0x11b   : > { %3310 = vmatmul.mubr.f32.gmra.mxu1 %v1888_v59  ;;  %3297 = vmatprep.mubr.f32.mxu0 %v1879_v62  ;;  %v2827_v1 = vpop.f32.mrf.mxu0 }
 0x11c   : > { %v2886_v2 = vpop.f32.mrf.mxu1 }
 0x11d   : > { %v4058_v3 = vadd.f32 %v2886_v2, %v2827_v1  ;;  %v419_v4 = vpop.f32.mrf.mxu0 }
 0x11e   : > { %v574_v5 = vpop.f32.mrf.mxu1  ;;  %3298 = vmatmul.mubr.f32.gmra.mxu0 %v1880_v0 }
 0x11f   : > { %v4060_v6 = vadd.f32 %v574_v5, %v419_v4 }
 0x121   : > { %v2830_v7 = vpop.f32.mrf.mxu0 }
 0x122   : > { %v2889_v8 = vpop.f32.mrf.mxu1 }
 0x123   : > { %v4062_v9 = vadd.f32 %v2889_v8, %v2830_v7  ;;  %v429_v10 = vpop.f32.mrf.mxu0 }
 0x124   : > { %v584_v11 = vpop.f32.mrf.mxu1 }
 0x125   : > { %v4064_v12 = vadd.f32 %v584_v11, %v429_v10 }
 0x127   : > { %v2833_v13 = vpop.f32.mrf.mxu0  ;;  %v2892_v14 = vpop.f32.mrf.mxu1 }
 0x128   : > { %v4066_v15 = vadd.f32 %v2892_v14, %v2833_v13 }
 0x129   : > { %v439_v16 = vpop.f32.mrf.mxu0  ;;  %v594_v17 = vpop.f32.mrf.mxu1 }
 0x12a   : > { %v4068_v18 = vadd.f32 %v594_v17, %v439_v16 }
 0x12d   : > { %v2836_v19 = vpop.f32.mrf.mxu0  ;;  %v2895_v20 = vpop.f32.mrf.mxu1 }
 0x12e   : > { %v4070_v21 = vadd.f32 %v2895_v20, %v2836_v19 }
 0x12f   : > { %v449_v22 = vpop.f32.mrf.mxu0  ;;  %v604_v23 = vpop.f32.mrf.mxu1 }
 0x130   : > { %v4072_v25 = vadd.f32 %v604_v23, %v449_v22 }
 0x132   : > { %v2839_v26 = vpop.f32.mrf.mxu0 }
 0x133   : > { %v2898_v27 = vpop.f32.mrf.mxu1 }
 0x134   : > { %v4074_v29 = vadd.f32 %v2898_v27, %v2839_v26  ;;  %v459_v30 = vpop.f32.mrf.mxu0 }
 0x135   : > { %v614_v31 = vpop.f32.mrf.mxu1 }
 0x136   : > { %v4076_v32 = vadd.f32 %v614_v31, %v459_v30 }
 0x138   : > { %v2933_v33 = vpop.f32.mrf.mxu0 }
 0x139   : > { %v2992_v34 = vpop.f32.mrf.mxu1  ;;  %v814_v36 = vadd.f32 %v2933_v33, %v4039_v24 }
 0x13a   : > { %v724_v37 = vpop.f32.mrf.mxu0 }
 0x13b   : > { %v932_v38 = vpop.f32.mrf.mxu1  ;;  %v4079_v39 = vadd.f32 %v2992_v34, %v814_v36  ;;  %v813_v41 = vadd.f32 %v724_v37, %v4044_v28 }
 0x13c   : > { %v2936_v42 = vpop.f32.mrf.mxu0 }
 0x13d   : > { %v2995_v43 = vpop.f32.mrf.mxu1  ;;  %v4082_v44 = vadd.f32 %v932_v38, %v813_v41  ;;  %v816_v45 = vadd.f32 %v2936_v42, %v4046_v35 }
 0x13e   : > { %v734_v46 = vpop.f32.mrf.mxu0 }
 0x13f   : > { %v942_v48 = vpop.f32.mrf.mxu1  ;;  %v4085_v49 = vadd.f32 %v2995_v43, %v816_v45  ;;  %v815_v50 = vadd.f32 %v734_v46, %v4048_v40 }
 0x141   : > { %v4088_v51 = vadd.f32 %v942_v48, %v815_v50 }
 0x142   : > { %v2939_v24 = vpop.f32.mrf.mxu0  ;;  %v2998_v55 = vpop.f32.mrf.mxu1 }
 0x143   : > { %v818_v54 = vadd.f32 %v2939_v24, %v4050_v47 }
 0x144   : > { %v744_v56 = vpop.f32.mrf.mxu0  ;;  %v952_v57 = vpop.f32.mrf.mxu1 }
 0x145   : > { %v4091_v28 = vadd.f32 %v2998_v55, %v818_v54  ;;  %v817_v58 = vadd.f32 %v744_v56, %v4052_v52 }
 0x147   : > { %v4094_v59 = vadd.f32 %v952_v57, %v817_v58  ;;  %v2942_v35 = vpop.f32.mrf.mxu0 }
 0x148   : > { %v3001_v60 = vpop.f32.mrf.mxu1  ;;  %v820_v61 = vadd.f32 %v2942_v35, %v4054_v53 }
 0x149   : > { %v754_v62 = vpop.f32.mrf.mxu0 }
 0x14a   : > { %v962_v40 = vpop.f32.mrf.mxu1  ;;  %v4097_v0 = vadd.f32 %v3001_v60, %v820_v61  ;;  %v819_v1 = vadd.f32 %v754_v62, %v4056_v63 }
 0x14c   : > { %v4100_v47 = vadd.f32 %v962_v40, %v819_v1 }
 0x14d   : > { %v2945_v2 = vpop.f32.mrf.mxu0 }
 0x14e   : > { %v3004_v4 = vpop.f32.mrf.mxu1  ;;  %v822_v5 = vadd.f32 %v2945_v2, %v4058_v3 }
 0x14f   : > { %v764_v52 = vpop.f32.mrf.mxu0 }
 0x150   : > { %v972_v7 = vpop.f32.mrf.mxu1  ;;  %v4103_v8 = vadd.f32 %v3004_v4, %v822_v5  ;;  %v821_v10 = vadd.f32 %v764_v52, %v4060_v6 }
 0x152   : > { %v4106_v11 = vadd.f32 %v972_v7, %v821_v10 }
 0x153   : > { %v2948_v53 = vpop.f32.mrf.mxu0 }
 0x154   : > { %v3007_v13 = vpop.f32.mrf.mxu1  ;;  %v824_v14 = vadd.f32 %v2948_v53, %v4062_v9 }
 0x155   : > { %v774_v16 = vpop.f32.mrf.mxu0 }
 0x156   : > { %v982_v63 = vpop.f32.mrf.mxu1  ;;  %v4109_v17 = vadd.f32 %v3007_v13, %v824_v14  ;;  %v823_v19 = vadd.f32 %v774_v16, %v4064_v12 }
 0x158   : > { %v4112_v20 = vadd.f32 %v982_v63, %v823_v19 }
 0x159   : > { %v2951_v3 = vpop.f32.mrf.mxu0  ;;  %v3010_v23 = vpop.f32.mrf.mxu1 }
 0x15a   : > { %v826_v22 = vadd.f32 %v2951_v3, %v4066_v15 }
 0x15b   : > { %v784_v26 = vpop.f32.mrf.mxu0  ;;  %v992_v30 = vpop.f32.mrf.mxu1 }
 0x15c   : > { %v4115_v6 = vadd.f32 %v3010_v23, %v826_v22  ;;  %v825_v27 = vadd.f32 %v784_v26, %v4068_v18 }
 0x15e   : > { %v4118_v31 = vadd.f32 %v992_v30, %v825_v27 }
 0x15f   : > { %v2954_v9 = vpop.f32.mrf.mxu0  ;;  %v3013_v34 = vpop.f32.mrf.mxu1 }
 0x160   : > { %v828_v33 = vadd.f32 %v2954_v9, %v4070_v21 }
 0x161   : > { %v794_v36 = vpop.f32.mrf.mxu0  ;;  %v1002_v38 = vpop.f32.mrf.mxu1 }
 0x162   : > { %v4121_v12 = vadd.f32 %v3013_v34, %v828_v33  ;;  %v827_v37 = vadd.f32 %v794_v36, %v4072_v25 }
 0x164   : > { %v4124_v15 = vadd.f32 %v1002_v38, %v827_v37  ;;  %v2957_v41 = vpop.f32.mrf.mxu0 }
 0x165   : > { %v3016_v42 = vpop.f32.mrf.mxu1  ;;  %v830_v43 = vadd.f32 %v2957_v41, %v4074_v29 }
 0x166   : > { %v804_v18 = vpop.f32.mrf.mxu0 }
 0x167   : > { %v1012_v45 = vpop.f32.mrf.mxu1  ;;  %v4127_v46 = vadd.f32 %v3016_v42, %v830_v43  ;;  %v829_v48 = vadd.f32 %v804_v18, %v4076_v32 }
 0x169   : > { %v4130_v21 = vadd.f32 %v1012_v45, %v829_v48 }
 0x16a   : > { %v3051_v50 = vpop.f32.mrf.mxu0 }
 0x16b   : > { %v3110_v24 = vpop.f32.mrf.mxu1  ;;  %v1230_v54 = vadd.f32 %v3051_v50, %v4079_v39 }
 0x16c   : > { %v1140_v25 = vpop.f32.mrf.mxu0 }
 0x16d   : > { %v1348_v55 = vpop.f32.mrf.mxu1  ;;  %v4133_v56 = vadd.f32 %v3110_v24, %v1230_v54  ;;  %v1229_v58 = vadd.f32 %v1140_v25, %v4082_v44 }
 0x16e   : > { %v3054_v57 = vpop.f32.mrf.mxu0 }
 0x16f   : > { %v3113_v29 = vpop.f32.mrf.mxu1  ;;  %v4136_v35 = vadd.f32 %v1348_v55, %v1229_v58  ;;  %v1232_v60 = vadd.f32 %v3054_v57, %v4085_v49 }
 0x170   : > { %v1150_v61 = vpop.f32.mrf.mxu0 }
 0x171   : > { %v1358_v32 = vpop.f32.mrf.mxu1  ;;  %v4139_v62 = vadd.f32 %v3113_v29, %v1232_v60  ;;  %v1231_v40 = vadd.f32 %v1150_v61, %v4088_v51 }
 0x173   : > { %v4142_v1 = vadd.f32 %v1358_v32, %v1231_v40 }
 0x174   : > { %v3057_v39 = vpop.f32.mrf.mxu0  ;;  %v3116_v4 = vpop.f32.mrf.mxu1 }
 0x175   : > { %v1234_v2 = vadd.f32 %v3057_v39, %v4091_v28 }
 0x176   : > { %v1160_v5 = vpop.f32.mrf.mxu0  ;;  %v1368_v7 = vpop.f32.mrf.mxu1 }
 0x177   : > { %v4145_v44 = vadd.f32 %v3116_v4, %v1234_v2  ;;  %v1233_v52 = vadd.f32 %v1160_v5, %v4094_v59 }
 0x179   : > { %v4148_v10 = vadd.f32 %v1368_v7, %v1233_v52  ;;  %v3060_v49 = vpop.f32.mrf.mxu0 }
 0x17a   : > { %v3119_v53 = vpop.f32.mrf.mxu1  ;;  %v1236_v13 = vadd.f32 %v3060_v49, %v4097_v0 }
 0x17b   : > { %v1170_v14 = vpop.f32.mrf.mxu0 }
 0x17c   : > { %v1378_v51 = vpop.f32.mrf.mxu1  ;;  %v4151_v16 = vadd.f32 %v3119_v53, %v1236_v13  ;;  %v1235_v63 = vadd.f32 %v1170_v14, %v4100_v47 }
 0x17e   : > { %v4154_v28 = vadd.f32 %v1378_v51, %v1235_v63 }
 0x17f   : > { %v3063_v19 = vpop.f32.mrf.mxu0 }
 0x180   : > { %v3122_v3 = vpop.f32.mrf.mxu1  ;;  %v1238_v22 = vadd.f32 %v3063_v19, %v4103_v8 }
 0x181   : > { %v1180_v59 = vpop.f32.mrf.mxu0 }
 0x182   : > { %v1388_v23 = vpop.f32.mrf.mxu1  ;;  %v4157_v26 = vadd.f32 %v3122_v3, %v1238_v22  ;;  %v1237_v27 = vadd.f32 %v1180_v59, %v4106_v11 }
 0x184   : > { %4398 = vst [vmem:[#allocation6_spill] sm:$0xff] %v4157_v26  ;;  %v4160_v30 = vadd.f32 %v1388_v23, %v1237_v27 }
 0x185   : > { %v3066_v0 = vpop.f32.mrf.mxu0 }
 0x186   : > { %4399 = vst [vmem:[#allocation7_spill] sm:$0xff] %v4160_v30  ;;  %v3125_v9 = vpop.f32.mrf.mxu1  ;;  %v1240_v27 = vadd.f32 %v3066_v0, %v4109_v17 }
 0x187   : > { %v1190_v33 = vpop.f32.mrf.mxu0 }
 0x188   : > { %v1398_v34 = vpop.f32.mrf.mxu1 }
 0x18b   : > { %v3069_v36 = vpop.f32.mrf.mxu0  ;;  %v3128_v47 = vpop.f32.mrf.mxu1 }
 0x18d   : > { %v1200_v37 = vpop.f32.mrf.mxu0  ;;  %v1408_v38 = vpop.f32.mrf.mxu1 }
 0x191   : > { %v3072_v41 = vpop.f32.mrf.mxu0  ;;  %v3131_v42 = vpop.f32.mrf.mxu1 }
 0x193   : > { %v1210_v43 = vpop.f32.mrf.mxu0  ;;  %v1418_v8 = vpop.f32.mrf.mxu1 }
 0x196   : > { %v3075_v18 = vpop.f32.mrf.mxu0 }
 0x197   : > { %v3134_v45 = vpop.f32.mrf.mxu1  ;;  %v1246_v0 = vadd.f32 %v3075_v18, %v4127_v46 }
 0x198   : > { %v1220_v48 = vpop.f32.mrf.mxu0 }
 0x199   : > { %v1428_v50 = vpop.f32.mrf.mxu1 }
 0x19c   : > { %v3169_v24 = vpop.f32.mrf.mxu0 }
 0x19d   : > { %v3228_v11 = vpop.f32.mrf.mxu1 }
 0x19e   : > { %v1556_v54 = vpop.f32.mrf.mxu0 }
 0x19f   : > { %v1764_v25 = vpop.f32.mrf.mxu1 }
 0x1a0   : > { %v3172_v55 = vpop.f32.mrf.mxu0 }
 0x1a1   : > { %v4162_v58 = vpop.f32.mrf.mxu1 }
 0x1a2   : > { %v1566_v57 = vpop.f32.mrf.mxu0 }
 0x1a3   : > { %v4164_v29 = vpop.f32.mrf.mxu1  ;;  %v1647_v46 = vadd.f32 %v1566_v57, %v4142_v1  ;;  %v4215_v1 = vld [vmem:[%s4396_s2] ss:$0 sm:$0xff] }
 0x1a4   : > { %4400 = vst [vmem:[#allocation8_spill] sm:$0xff] %v4164_v29 }
 0x1a6   : > { %v3175_v60 = vpop.f32.mrf.mxu0  ;;  %v4166_v61 = vpop.f32.mrf.mxu1 }
 0x1a7   : > { %4401 = vst [vmem:[#allocation9_spill] sm:$0xff] %v4166_v61 }
 0x1a8   : > { %v1576_v32 = vpop.f32.mrf.mxu0  ;;  %v4168_v40 = vpop.f32.mrf.mxu1 }
 0x1a9   : > { %4402 = vst [vmem:[#allocation10_spill] sm:$0xff] %v4168_v40  ;;  %v1243_v40 = vadd.f32 %v1210_v43, %v4124_v15 }
 0x1ab   : > { %v3178_v39 = vpop.f32.mrf.mxu0 }
 0x1ac   : > { %v4170_v2 = vpop.f32.mrf.mxu1 }
 0x1ad   : > { %4403 = vst [vmem:[#allocation11_spill] sm:$0xff] %v4170_v2  ;;  %v1586_v4 = vpop.f32.mrf.mxu0  ;;  %v1244_v2 = vadd.f32 %v3072_v41, %v4121_v12 }
 0x1ae   : > { %v4172_v5 = vpop.f32.mrf.mxu1 }
 0x1af   : > { %4404 = vst [vmem:[#allocation12_spill] sm:$0xff] %v4172_v5  ;;  %v1448_v5 = vadd.f32 %v3125_v9, %v1240_v27  ;;  %v1452_v15 = vadd.f32 %v3131_v42, %v1244_v2  ;;  %v1651_v42 = vadd.f32 %v1586_v4, %v4154_v28 }
 0x1b1   : > { %v4176_v7 = vpop.f32.mrf.mxu1 }
 0x1b2   : > { %v4174_v52 = vpop.f32.mrf.mxu0  ;;  %4406 = vst [vmem:[#allocation14_spill] sm:$0xff] %v4176_v7 }
 0x1b3   : > { %4405 = vst [vmem:[#allocation13_spill] sm:$0xff] %v4174_v52  ;;  %v4180_v53 = vpop.f32.mrf.mxu1  ;;  %v1239_v52 = vadd.f32 %v1190_v33, %v4112_v20  ;;  %v1245_v20 = vadd.f32 %v1220_v48, %v4130_v21  ;;  %v1646_v33 = vadd.f32 %v3169_v24, %v4133_v56  ;;  %v1650_v21 = vadd.f32 %v3175_v60, %v4145_v44 }
 0x1b4   : > { %v4178_v49 = vpop.f32.mrf.mxu0  ;;  %4408 = vst [vmem:[#allocation16_spill] sm:$0xff] %v4180_v53  ;;  %v1242_v53 = vadd.f32 %v3069_v36, %v4115_v6  ;;  %v1649_v56 = vadd.f32 %v1576_v32, %v4148_v10  ;;  %v4413_v57 = vld [vmem:[#allocation11_spill] sm:$0xff] }
 0x1b5   : > { %4407 = vst [vmem:[#allocation15_spill] sm:$0xff] %v4178_v49  ;;  %v1241_v49 = vadd.f32 %v1200_v37, %v4118_v31  ;;  %v1447_v61 = vadd.f32 %v1398_v34, %v1239_v52  ;;  %v1645_v31 = vadd.f32 %v1556_v54, %v4136_v35  ;;  %v1451_v34 = vadd.f32 %v1418_v8, %v1243_v40  ;;  %v4410_v54 = vld [vmem:[#allocation8_spill] sm:$0xff]  ;;  %v4415_v52 = vld [vmem:[#allocation6_spill] sm:$0xff] }
 0x1b6   : > { %v1450_v6 = vadd.f32 %v3128_v47, %v1242_v53  ;;  %v1648_v37 = vadd.f32 %v3172_v55, %v4139_v62  ;;  %v1652_v47 = vadd.f32 %v3178_v39, %v4151_v16  ;;  %v4209_v43 = vadd.f32 %v1428_v50, %v1245_v20  ;;  %v4412_v55 = vld [vmem:[#allocation10_spill] sm:$0xff]  ;;  %v4414_v4 = vld [vmem:[#allocation12_spill] sm:$0xff] }
 0x1b7   : > { %v3243_v14 = vpop.f32.mrf.mxu1  ;;  %v1449_v36 = vadd.f32 %v1408_v38, %v1241_v49  ;;  %v1454_v38 = vadd.f32 %v3134_v45, %v1246_v0  ;;  %v1854_v35 = vadd.f32 %v3228_v11, %v1646_v33  ;;  %v1853_v48 = vadd.f32 %v1764_v25, %v1645_v31 }
 0x1b8   : > { %v3184_v13 = vpop.f32.mrf.mxu0  ;;  %v1856_v10 = vadd.f32 %v4162_v58, %v1648_v37  ;;  %v1855_v11 = vadd.f32 %v4410_v54, %v1647_v46  ;;  %v1857_v28 = vadd.f32 %v4412_v55, %v1649_v56  ;;  %v4222_v60 = vadd.f32 %v4413_v57, %v1652_v47 }
 0x1b9   : > { %v1814_v63 = vpop.f32.mrf.mxu1 }
 0x1ba   : > { %v1606_v51 = vpop.f32.mrf.mxu0  ;;  %v4416_v49 = vld [vmem:[#allocation13_spill] sm:$0xff] }
 0x1bb   : > { %v1655_v41 = vadd.f32 %v1606_v51, %v1447_v61  ;;  %v4235_v53 = vadd.f32 %v4416_v49, %v4415_v52 }
 0x1bd   : > { %v3187_v19 = vpop.f32.mrf.mxu0  ;;  %v3246_v3 = vpop.f32.mrf.mxu1  ;;  %v1863_v16 = vadd.f32 %v1814_v63, %v1655_v41 }
 0x1be   : > { %v1658_v8 = vadd.f32 %v3187_v19, %v1450_v6 }
 0x1bf   : > { %v1616_v22 = vpop.f32.mrf.mxu0  ;;  %v1824_v59 = vpop.f32.mrf.mxu1 }
 0x1c0   : > { %v1657_v24 = vadd.f32 %v1616_v22, %v1449_v36 }
 0x1c3   : > { %v3190_v23 = vpop.f32.mrf.mxu0  ;;  %v4183_v30 = vpop.f32.mrf.mxu1 }
 0x1c4   : > { %v1660_v19 = vadd.f32 %v3190_v23, %v1452_v15  ;;  %v4417_v23 = vld [vmem:[#allocation7_spill] sm:$0xff] }
 0x1c5   : > { %v1626_v7 = vpop.f32.mrf.mxu0  ;;  %v4186_v26 = vpop.f32.mrf.mxu1 }
 0x1c6   : > { %4409 = vst [vmem:[#allocation17_spill] sm:$0xff] %v4186_v26  ;;  %v1656_v26 = vadd.f32 %v3184_v13, %v1448_v5  ;;  %v4231_v5 = vadd.f32 %v4414_v4, %v1651_v42  ;;  %v1866_v13 = vadd.f32 %v3246_v3, %v1658_v8  ;;  %v1659_v22 = vadd.f32 %v1626_v7, %v1451_v34  ;;  %v4418_v7 = vld [vmem:[#allocation15_spill] sm:$0xff] }
 0x1c7   : > { %v1653_v15 = vadd.f32 %v4418_v7, %v4417_v23 }
 0x1c8   : > { %v4192_v29 = vpop.f32.mrf.mxu0  ;;  %v1864_v18 = vadd.f32 %v3243_v14, %v1656_v26  ;;  %v4411_v26 = vld [vmem:[#allocation9_spill] sm:$0xff]  ;;  %v1865_v14 = vadd.f32 %v1824_v59, %v1657_v24 }
 0x1c9   : > { %v4194_v17 = vpop.f32.mrf.mxu1  ;;  %v1858_v25 = vadd.f32 %v4411_v26, %v1650_v21  ;;  %v1662_v34 = vadd.f32 %v4192_v29, %v1454_v38 }
 0x1ca   : > { %v4200_v9 = vpop.f32.mrf.mxu0 }
 0x1cb   : > { %v4202_v12 = vpop.f32.mrf.mxu1  ;;  %v1870_v54 = vadd.f32 %v4194_v17, %v1662_v34 }
 0x1ce   : > { %v3287_v62 = vpop.f32.mrf.mxu0 }
 0x1cf   : > { %v3302_v44 = vpop.f32.mrf.mxu1  ;;  %v2062_v45 = vadd.f32 %v3287_v62, %v1854_v35 }
 0x1d0   : > { %v2072_v50 = vadd.f32 %v3302_v44, %v1864_v18  ;;  %v1972_v61 = vpop.f32.mrf.mxu0  ;;  %v1868_v44 = vadd.f32 %v4183_v30, %v1660_v19 }
 0x1d1   : > { %v2022_v32 = vpop.f32.mrf.mxu1  ;;  %v4225_v40 = vadd.f32 %v4215_v1, %v2062_v45  ;;  %v2061_v58 = vadd.f32 %v1972_v61, %v1853_v48 }
 0x1d2   : > { %v4228_v39 = vadd.f32 %v4215_v1, %v2072_v50  ;;  %v2071_v2 = vadd.f32 %v2022_v32, %v1863_v16  ;;  %v3290_v51 = vpop.f32.mrf.mxu0 }
 0x1d3   : > { %v3305_v63 = vpop.f32.mrf.mxu1  ;;  %v2123_v27 = vmin.f32 %v4225_v40, 0.0  ;;  %v4240_v20 = vadd.f32 %v4215_v1, %v2061_v58  ;;  %v2064_v6 = vadd.f32 %v3290_v51, %v1856_v10  ;;  %v4419_v10 = vld [vmem:[#allocation17_spill] sm:$0xff]  ;;  %vm2105_vm0 = vcmp.gt.f32.partialorder %v4225_v40, 0.0 }
 0x1d4   : > { %v2133_v0 = vmin.f32 %v4228_v39, 0.0  ;;  %v4243_v33 = vadd.f32 %v4215_v1, %v2071_v2  ;;  %v2074_v36 = vadd.f32 %v3305_v63, %v1866_v13  ;;  %v1982_v31 = vpop.f32.mrf.mxu0  ;;  %v1867_v16 = vadd.f32 %v4419_v10, %v1659_v22  ;;  %v4421_v22 = vld [vmem:[#allocation16_spill] sm:$0xff] }
 0x1d5   : > { %v2032_v37 = vpop.f32.mrf.mxu1  ;;  %v2142_v3 = vmul.f32 1.442695, %v2123_v27  ;;  %v2063_v41 = vadd.f32 %v1982_v31, %v1855_v11  ;;  %v2122_v21 = vmin.f32 %v4240_v20, 0.0  ;;  %v4251_v18 = vadd.f32 %v4215_v1, %v2064_v6 }
 0x1d6   : > { %v2162_v59 = vmul.f32 1.442695, %v2133_v0  ;;  %v2073_v46 = vadd.f32 %v2032_v37, %v1865_v14  ;;  %v2132_v56 = vmin.f32 %v4243_v33, 0.0  ;;  %v3293_v47 = vpop.f32.mrf.mxu0  ;;  %v4254_v48 = vadd.f32 %v4215_v1, %v2074_v36 }
 0x1d7   : > { %v3308_v35 = vpop.f32.mrf.mxu1  ;;  %3385 = vpow2.f32 %v2142_v3  ;;  %v4257_v42 = vadd.f32 %v4215_v1, %v2063_v41  ;;  %v2140_v8 = vmul.f32 1.442695, %v2122_v21  ;;  %v2125_v45 = vmin.f32 %v4251_v18, 0.0 }
 0x1d8   : > { %3387 = vpow2.f32 %v2162_v59  ;;  %v2160_v24 = vmul.f32 1.442695, %v2132_v56  ;;  %v4260_v29 = vadd.f32 %v4215_v1, %v2073_v46  ;;  %v1992_v38 = vpop.f32.mrf.mxu0  ;;  %v2135_v50 = vmin.f32 %v4254_v48, 0.0 }
 0x1d9   : > { %v2042_v62 = vpop.f32.mrf.mxu1  ;;  %v1661_v11 = vadd.f32 %v4200_v9, %v4209_v43  ;;  %3389 = vpow2.f32 %v2140_v8  ;;  %v2124_v26 = vmin.f32 %v4257_v42, 0.0  ;;  %v2146_v57 = vmul.f32 1.442695, %v2125_v45 }
 0x1da   : > { %v3296_v55 = vpop.f32.mrf.mxu0  ;;  %3391 = vpow2.f32 %v2160_v24  ;;  %v2166_v61 = vmul.f32 1.442695, %v2135_v50  ;;  %v2134_v30 = vmin.f32 %v4260_v29, 0.0  ;;  %v2066_v58 = vadd.f32 %v3293_v47, %v1858_v25 }
 0x1db   : > { %v2144_v32 = vmul.f32 1.442695, %v2124_v26  ;;  %v2076_v2 = vadd.f32 %v3308_v35, %v1868_v44  ;;  %v2065_v4 = vadd.f32 %v1992_v38, %v1857_v28  ;;  %v3311_v52 = vpop.f32.mrf.mxu1  ;;  %3393 = vpow2.f32 %v2146_v57 }
 0x1dc   : > { %v2164_v49 = vmul.f32 1.442695, %v2134_v30  ;;  %v2075_v17 = vadd.f32 %v2042_v62, %v1867_v16  ;;  %v2068_v13 = vadd.f32 %v3296_v55, %v4222_v60  ;;  %3395 = vpow2.f32 %v2166_v61  ;;  %v2002_v63 = vpop.f32.mrf.mxu0  ;;  %v4420_v60 = vld [vmem:[#allocation14_spill] sm:$0xff] }
 0x1dd   : > { %v4273_v9 = vadd.f32 %v4215_v1, %v2066_v58  ;;  %v4276_v43 = vadd.f32 %v4215_v1, %v2076_v2  ;;  %v4279_v14 = vadd.f32 %v4215_v1, %v2065_v4  ;;  %3397 = vpow2.f32 %v2144_v32  ;;  %v2052_v37 = vpop.f32.mrf.mxu1 }
 0x1de   : > { %v4282_v25 = vadd.f32 %v4215_v1, %v2075_v17  ;;  %v4285_v28 = vadd.f32 %v4215_v1, %v2068_v13  ;;  %v2078_v51 = vadd.f32 %v3311_v52, %v1870_v54  ;;  %v1862_v19 = vadd.f32 %v4420_v60, %v4235_v53  ;;  %v3299_v7 = vpop.f32.mrf.mxu0 }
 0x1df   : > { %v1861_v27 = vadd.f32 %v4421_v22, %v1653_v15  ;;  %3399 = vpow2.f32 %v2164_v49  ;;  %v2127_v0 = vmin.f32 %v4273_v9, 0.0  ;;  %v1869_v6 = vadd.f32 %v4202_v12, %v1661_v11 }
 0x1e0   : > { %v2137_v36 = vmin.f32 %v4276_v43, 0.0  ;;  %v2126_v31 = vmin.f32 %v4279_v14, 0.0  ;;  %vm2115_vm1 = vcmp.gt.f32.partialorder %v4228_v39, 0.0  ;;  %v2136_v59 = vmin.f32 %v4282_v25, 0.0  ;;  %v2012_v45 = vpop.f32.mrf.mxu0 }
 0x1e1   : > { %v2150_v3 = vmul.f32 1.442695, %v2127_v0  ;;  %v2129_v53 = vmin.f32 %v4285_v28, 0.0  ;;  %v4299_v23 = vadd.f32 %v4215_v1, %v2078_v51  ;;  %v2067_v12 = vadd.f32 %v2002_v63, %v4231_v5 }
 0x1e2   : > { %v2170_v41 = vmul.f32 1.442695, %v2137_v36  ;;  %v2148_v46 = vmul.f32 1.442695, %v2126_v31  ;;  %v2168_v34 = vmul.f32 1.442695, %v2136_v59  ;;  %v2077_v56 = vadd.f32 %v2052_v37, %v1869_v6 }
 0x1e3   : > { %3401 = vpow2.f32 %v2150_v3  ;;  %v2154_v21 = vmul.f32 1.442695, %v2129_v53  ;;  %vm2104_vm2 = vcmp.gt.f32.partialorder %v4240_v20, 0.0  ;;  %v2139_v8 = vmin.f32 %v4299_v23, 0.0 }
 0x1e4   : > { %v3386_v15 = vpop.eup %3385  ;;  %3403 = vpow2.f32 %v2170_v41  ;;  %v4305_v38 = vadd.f32 %v4215_v1, %v2067_v12  ;;  %v4308_v5 = vadd.f32 %v4215_v1, %v2077_v56  ;;  %v2070_v16 = vadd.f32 %v3299_v7, %v1862_v19 }
 0x1e5   : > { %v3388_v47 = vpop.eup %3387  ;;  %v2455_v35 = vadd.f32 -1.0, %v3386_v15  ;;  %3405 = vpow2.f32 %v2148_v46  ;;  %v2174_v10 = vmul.f32 1.442695, %v2139_v8  ;;  %vm2114_vm3 = vcmp.gt.f32.partialorder %v4243_v33, 0.0 }
 0x1e6   : > { %v2465_v24 = vadd.f32 -1.0, %v3388_v47  ;;  %v3390_v62 = vpop.eup %3389  ;;  %3407 = vpow2.f32 %v2168_v34  ;;  %vm2107_vm4 = vcmp.gt.f32.partialorder %v4251_v18, 0.0  ;;  %v2138_v61 = vmin.f32 %v4308_v5, 0.0 }
 0x1e7   : > { %v2195_v44 = vsel %vm2105_vm0, %v4225_v40, %v2455_v35  ;;  %v3392_v50 = vpop.eup %3391  ;;  %v2454_v11 = vadd.f32 -1.0, %v3390_v62  ;;  %3409 = vpow2.f32 %v2154_v21  ;;  %v2128_v40 = vmin.f32 %v4305_v38, 0.0 }
 0x1e8   : > { %2213 = vst [vmem:[%s3524_s4 + $0x8] sm:$0xff] %v2195_v44  ;;  %v2205_v54 = vsel %vm2115_vm1, %v4228_v39, %v2465_v24  ;;  %v2464_v26 = vadd.f32 -1.0, %v3392_v50  ;;  %3411 = vpow2.f32 %v2174_v10  ;;  %v3394_v55 = vpop.eup %3393  ;;  %v4326_v39 = vadd.f32 %v4215_v1, %v2070_v16 }
 0x1e9   : > { %2223 = vst [vmem:[%s3524_s4 + $0x58] sm:$0xff] %v2205_v54  ;;  %v2194_v57 = vsel %vm2104_vm2, %v4240_v20, %v2454_v11  ;;  %v2069_v30 = vadd.f32 %v2012_v45, %v1861_v27  ;;  %v3396_v32 = vpop.eup %3395  ;;  %v2457_v2 = vadd.f32 -1.0, %v3394_v55  ;;  %vm2117_vm5 = vcmp.gt.f32.partialorder %v4254_v48, 0.0 }
 0x1ea   : > { %2212 = vst [vmem:[%s3524_s4] sm:$0xff] %v2194_v57  ;;  %v2204_v58 = vsel %vm2114_vm3, %v4243_v33, %v2464_v26  ;;  %v2152_v4 = vmul.f32 1.442695, %v2128_v40  ;;  %v3398_v52 = vpop.eup %3397  ;;  %v2467_v49 = vadd.f32 -1.0, %v3396_v32  ;;  %vm2106_vm6 = vcmp.gt.f32.partialorder %v4257_v42, 0.0 }
 0x1eb   : > { %2222 = vst [vmem:[%s3524_s4 + $0x50] sm:$0xff] %v2204_v58  ;;  %v2172_v20 = vmul.f32 1.442695, %v2138_v61  ;;  %v2131_v17 = vmin.f32 %v4326_v39, 0.0  ;;  %v2197_v51 = vsel %vm2107_vm4, %v4251_v18, %v2457_v2  ;;  %v2456_v33 = vadd.f32 -1.0, %v3398_v52 }
 0x1ec   : > { %v3400_v13 = vpop.eup %3399  ;;  %3413 = vpow2.f32 %v2152_v4  ;;  %v4338_v63 = vadd.f32 %v4215_v1, %v2069_v30  ;;  %2215 = vst [vmem:[%s3524_s4 + $0x18] sm:$0xff] %v2197_v51  ;;  %v2207_v60 = vsel %vm2117_vm5, %v4254_v48, %v2467_v49  ;;  %vm2116_vm7 = vcmp.gt.f32.partialorder %v4260_v29, 0.0 }
 0x1ed   : > { %v2466_v19 = vadd.f32 -1.0, %v3400_v13  ;;  %3415 = vpow2.f32 %v2172_v20  ;;  %v2158_v22 = vmul.f32 1.442695, %v2131_v17  ;;  %2225 = vst [vmem:[%s3524_s4 + $0x68] sm:$0xff] %v2207_v60  ;;  %v2196_v27 = vsel %vm2106_vm6, %v4257_v42, %v2456_v33 }
 0x1ee   : > { %v2130_v0 = vmin.f32 %v4338_v63, 0.0  ;;  %2214 = vst [vmem:[%s3524_s4 + $0x10] sm:$0xff] %v2196_v27  ;;  %vm2109_vm8 = vcmp.gt.f32.partialorder %v4273_v9, 0.0  ;;  %vm2119_vm9 = vcmp.gt.f32.partialorder %v4276_v43, 0.0  ;;  %vm2108_vm10 = vcmp.gt.f32.partialorder %v4279_v14, 0.0 }
 0x1ef   : > { %v2206_v18 = vsel %vm2116_vm7, %v4260_v29, %v2466_v19  ;;  %3417 = vpow2.f32 %v2158_v22  ;;  %vm2118_vm11 = vcmp.gt.f32.partialorder %v4282_v25, 0.0  ;;  %vm2111_vm12 = vcmp.gt.f32.partialorder %v4285_v28, 0.0 }
 0x1f0   : > { %v3402_v1 = vpop.eup %3401  ;;  %2224 = vst [vmem:[%s3524_s4 + $0x60] sm:$0xff] %v2206_v18  ;;  %v2156_v6 = vmul.f32 1.442695, %v2130_v0  ;;  %vm2121_vm13 = vcmp.gt.f32.partialorder %v4299_v23, 0.0  ;;  %vm2110_vm14 = vcmp.gt.f32.partialorder %v4305_v38, 0.0  ;;  %vm2120_vm15 = vcmp.gt.f32.partialorder %v4308_v5, 0.0 }
 0x1f1   : > { %v3404_v36 = vpop.eup %3403  ;;  %v2459_v48 = vadd.f32 -1.0, %v3402_v1  ;;  %vm2113_vm0 = vcmp.gt.f32.partialorder %v4326_v39, 0.0  ;;  %vm2112_vm1 = vcmp.gt.f32.partialorder %v4338_v63, 0.0 }
 0x1f2   : > { %v3406_v31 = vpop.eup %3405  ;;  %v2469_v37 = vadd.f32 -1.0, %v3404_v36  ;;  %3419 = vpow2.f32 %v2156_v6 }
 0x1f3   : > { %v3408_v42 = vpop.eup %3407  ;;  %v2199_v3 = vsel %vm2109_vm8, %v4273_v9, %v2459_v48  ;;  %v2458_v29 = vadd.f32 -1.0, %v3406_v31 }
 0x1f4   : > { %v3410_v59 = vpop.eup %3409  ;;  %2217 = vst [vmem:[%s3524_s4 + $0x28] sm:$0xff] %v2199_v3  ;;  %v2209_v53 = vsel %vm2119_vm9, %v4276_v43, %v2469_v37  ;;  %v2468_v41 = vadd.f32 -1.0, %v3408_v42 }
 0x1f5   : > { %v3412_v46 = vpop.eup %3411  ;;  %2227 = vst [vmem:[%s3524_s4 + $0x78] sm:$0xff] %v2209_v53  ;;  %v2198_v12 = vsel %vm2108_vm10, %v4279_v14, %v2458_v29  ;;  %v2461_v9 = vadd.f32 -1.0, %v3410_v59 }
 0x1f6   : > { %2216 = vst [vmem:[%s3524_s4 + $0x20] sm:$0xff] %v2198_v12  ;;  %v2208_v7 = vsel %vm2118_vm11, %v4282_v25, %v2468_v41  ;;  %v2471_v15 = vadd.f32 -1.0, %v3412_v46 }
 0x1f7   : > { %2226 = vst [vmem:[%s3524_s4 + $0x70] sm:$0xff] %v2208_v7  ;;  %v2201_v43 = vsel %vm2111_vm12, %v4285_v28, %v2461_v9 }
 0x1f8   : > { %2219 = vst [vmem:[%s3524_s4 + $0x38] sm:$0xff] %v2201_v43  ;;  %v2211_v34 = vsel %vm2121_vm13, %v4299_v23, %v2471_v15 }
 0x1f9   : > { %v3414_v14 = vpop.eup %3413  ;;  %2229 = vst [vmem:[%s3524_s4 + $0x88] sm:$0xff] %v2211_v34 }
 0x1fa   : > { %v3416_v21 = vpop.eup %3415  ;;  %v2460_v56 = vadd.f32 -1.0, %v3414_v14 }
 0x1fb   : > { %v2470_v25 = vadd.f32 -1.0, %v3416_v21 }
 0x1fc   : > { %v3418_v47 = vpop.eup %3417  ;;  %v2200_v35 = vsel %vm2110_vm14, %v4305_v38, %v2460_v56 }
 0x1fd   : > { %2218 = vst [vmem:[%s3524_s4 + $0x30] sm:$0xff] %v2200_v35  ;;  %v2210_v28 = vsel %vm2120_vm15, %v4308_v5, %v2470_v25  ;;  %v2463_v8 = vadd.f32 -1.0, %v3418_v47 }
 0x1fe   : > { %2228 = vst [vmem:[%s3524_s4 + $0x80] sm:$0xff] %v2210_v28 }
 0x1ff   : > { %v3420_v23 = vpop.eup %3419  ;;  %v2203_v24 = vsel %vm2113_vm0, %v4326_v39, %v2463_v8 }
 0x200   : > { %2221 = vst [vmem:[%s3524_s4 + $0x48] sm:$0xff] %v2203_v24  ;;  %v2462_v62 = vadd.f32 -1.0, %v3420_v23 }
 0x202   : > { %v2202_v44 = vsel %vm2112_vm1, %v4338_v63, %v2462_v62 }
 0x203   : > { %2220 = vst [vmem:[%s3524_s4 + $0x40] sm:$0xff] %v2202_v44 }
 0x204 PF: > { %s13_s16 = sadd.s32 1, %s3461_s16   ;;  %s4422_s12 = smov %s3453_s14 }
 0x205   : > { %p10_p7 = scmp.ge.s32.totalorder %s13_s16, 6   ;;  %s4423_s13 = smov %s3457_s15 }
 0x206   : > { %s4424_s14 = smov %s4427_s17  ;;  %s4425_s15 = smov %s4431_s18 }
 0x207   :  { %12 = sbr.rel (!%p10_p7) target bundleno = 3 (0x3), region = 106 }
 0x20c   :  { %2260 = vsyncmov [#allocation3] }
 0x20f   :  { %s2261_s4 = vpop.sfrf %2260 }
 0x210   :  { %p2474_p8 = scmp.ne.s32.totalorder %s2261_s4, 0 }
 0x212   :  { %2265 = shalt.err (%p2474_p8)  }

</bundles_post_ra>
